<compile_context>
chip_gen: v6e
topology: v6e:2x2x1
jax: 0.10.0
libtpu: 0.0.40
codegen_flags: <defaults>
</compile_context>

<pallas_src>
import functools

import jax
import jax.numpy as jnp
import numpy as np
from jax.experimental import pallas as pl
from jax.experimental.pallas import tpu as pltpu


def _deconv_kernel(x_ref, wm_ref, wr_ref, wl_ref, b_ref, se_ref, sr_ref, sl_ref,
                   out_ref, *, c_out, h_t, w_in):
    """One grid step: one batch element x one tile of H_t input rows.

    x_ref   : (1, C_in, H_t*W)      input rows, channel-major, spatial flattened
    wm/wr/wl: (2*C_out, C_in)       per-tap channel matrices, row = kh*C_out + co
    b_ref   : (2*C_out, 1)          bias tiled for both row parities
    se/sr/sl: (W, 2W)               constant 0/1 column-scatter matrices
    out_ref : (1, C_out, H_t, 4W)   lane-dense output slab (r*2W + 2j + c on lanes)
    """
    x = x_ref[0]                                  # (C_in, H_t*W)
    bias2 = b_ref[...]                            # (2*C_out, 1)

    # --- channel mixing for the three kernel taps (both row parities in the rows) ---
    y_mid = jnp.dot(wm_ref[...], x, preferred_element_type=jnp.float32) + bias2
    y_rgt = jnp.dot(wr_ref[...], x, preferred_element_type=jnp.float32) + bias2
    y_lft = jnp.dot(wl_ref[...], x, preferred_element_type=jnp.float32)   # no bias here

    s_e = se_ref[...]
    s_r = sr_ref[...]
    s_l = sl_ref[...]
    two_w = 2 * w_in

    # --- per input row: MXU scatter-matmul does the even/odd column interleave ---
    for i in range(h_t):                          # static, unrolled
        lo = i * w_in
        hi = lo + w_in
        row = (jnp.dot(y_mid[:, lo:hi], s_e, preferred_element_type=jnp.float32)
               + jnp.dot(y_rgt[:, lo:hi], s_r, preferred_element_type=jnp.float32)
               + jnp.dot(y_lft[:, lo:hi], s_l, preferred_element_type=jnp.float32))
        # row: (2*C_out, 2W); rows [0:C_out] -> output row 2i, rows [C_out:] -> 2i+1
        out_ref[0, :, i, 0:two_w] = row[:c_out, :]
        out_ref[0, :, i, two_w:2 * two_w] = row[c_out:, :]


def _choose_row_tile(H, W, c_in, c_out, budget_bytes):
    """Largest divisor of H whose tile fits the VMEM budget and keeps legal block dims."""
    def tile_bytes(ht):
        st = ht * W
        x_blk = c_in * st * 4
        out_blk = c_out * ht * 4 * W * 4
        interm = 3 * (2 * c_out) * st * 4          # y_mid / y_rgt / y_lft live values
        return 2 * (x_blk + out_blk) + interm      # x2 for double-buffered I/O

    cands = [d for d in range(1, H + 1)
             if H % d == 0 and (d == H or (d % 8 == 0 and (d * W) % 128 == 0))]
    fitting = [d for d in cands if tile_bytes(d) <= budget_bytes]
    return max(fitting) if fitting else min(cands)


def downward_deconv_forward(x, params, *, vmem_budget_bytes=6 * 1024 * 1024):
    """x: (B, C_in, H, W) float32 NCHW.  Returns (B, C_out, 2H, 2W) float32 NCHW.

    Implements weight_norm(ConvTranspose2d(C_in, C_out, kernel=(2,3), stride=(2,2),
    output_padding=1)) followed by the module's crop [..., :-1, 1:-1].
    """
    v, g, bias = params["v"], params["g"], params["bias"]
    B, C_in, H, W = x.shape
    C_out = v.shape[1]

    # ---- weight_norm reconstruction (hoisted out of the kernel) ----
    norm = jnp.sqrt(jnp.sum(v * v, axis=(1, 2, 3), keepdims=True))   # (C_in,1,1,1)
    wgt = (g / norm) * v                                             # (C_in, C_out, 2, 3)

    # per-tap channel matrices, row index = kh*C_out + co
    def tap(kw):
        return jnp.transpose(wgt[:, :, :, kw], (2, 1, 0)).reshape(2 * C_out, C_in)

    w_left, w_mid, w_right = tap(0), tap(1), tap(2)
    bias2 = jnp.tile(bias, 2).reshape(2 * C_out, 1)

    # constant 0/1 column-scatter matrices: W source cols -> 2W interleaved output cols
    idx = np.arange(W)
    s_e = np.zeros((W, 2 * W), np.float32); s_e[idx, 2 * idx] = 1.0          # mid  -> col 2j
    s_r = np.zeros((W, 2 * W), np.float32); s_r[idx, 2 * idx + 1] = 1.0      # right-> col 2j+1
    s_l = np.zeros((W, 2 * W), np.float32); s_l[idx[1:], 2 * idx[1:] - 1] = 1.0  # left -> col 2j-1
    s_e, s_r, s_l = jnp.asarray(s_e), jnp.asarray(s_r), jnp.asarray(s_l)

    x_flat = x.reshape(B, C_in, H * W)            # contiguous reshape (free), stays NCHW

    h_t = _choose_row_tile(H, W, C_in, C_out, vmem_budget_bytes)
    s_t = h_t * W
    grid = (B, H // h_t)

    kernel = functools.partial(_deconv_kernel, c_out=C_out, h_t=h_t, w_in=W)

    out4 = pl.pallas_call(
        kernel,
        out_shape=jax.ShapeDtypeStruct((B, C_out, H, 4 * W), jnp.float32),
        grid_spec=pltpu.PrefetchScalarGridSpec(
            num_scalar_prefetch=0,
            grid=grid,
            in_specs=[
                pl.BlockSpec((1, C_in, s_t), lambda b, h: (b, 0, h)),        # x
                pl.BlockSpec((2 * C_out, C_in), lambda b, h: (0, 0)),        # w_mid
                pl.BlockSpec((2 * C_out, C_in), lambda b, h: (0, 0)),        # w_right
                pl.BlockSpec((2 * C_out, C_in), lambda b, h: (0, 0)),        # w_left
                pl.BlockSpec((2 * C_out, 1), lambda b, h: (0, 0)),           # bias2
                pl.BlockSpec((W, 2 * W), lambda b, h: (0, 0)),               # s_e
                pl.BlockSpec((W, 2 * W), lambda b, h: (0, 0)),               # s_r
                pl.BlockSpec((W, 2 * W), lambda b, h: (0, 0)),               # s_l
            ],
            out_specs=pl.BlockSpec((1, C_out, h_t, 4 * W), lambda b, h: (b, 0, h, 0)),
        ),
        compiler_params=pltpu.CompilerParams(
            dimension_semantics=("parallel", "parallel")),
    )(x_flat, w_mid, w_right, w_left, bias2, s_e, s_r, s_l)

    # (B, C_out, H, 4W) -> (B, C_out, 2H, 2W): pure contiguous reshape, no data movement.
    return out4.reshape(B, C_out, 2 * H, 2 * W)


def init_downward_deconv_params(key, in_channels, out_channels):
    """Parameters of weight_norm(ConvTranspose2d(in, out, (2,3), stride=(2,2), output_padding=1))."""
    kv, kg, kb = jax.random.split(key, 3)
    v = 0.5 * jax.random.normal(kv, (in_channels, out_channels, 2, 3), jnp.float32)
    g = 1.0 + 0.1 * jax.random.normal(kg, (in_channels, 1, 1, 1), jnp.float32)
    bias = 0.1 * jax.random.normal(kb, (out_channels,), jnp.float32)
    return {"v": v, "g": g, "bias": bias}


def _reference_forward(x, params):
    """Pure-JAX reference mirroring the PyTorch forward (explicit transposed-conv scatter)."""
    v, g, bias = params["v"], params["g"], params["bias"]
    norm = jnp.sqrt(jnp.sum(v * v, axis=(1, 2, 3), keepdims=True))
    w = (g / norm) * v                                       # (C_in, C_out, 2, 3)
    B, C_in, H, W = x.shape
    C_out = w.shape[1]
    full = jnp.zeros((B, C_out, 2 * H + 1, 2 * W + 2), jnp.float32)
    for kh in range(2):
        for kw in range(3):
            contrib = jnp.einsum("bchw,co->bohw", x, w[:, :, kh, kw],
                                 precision=jax.lax.Precision.HIGHEST)
            full = full.at[:, :, kh:kh + 2 * H:2, kw:kw + 2 * W:2].add(contrib)
    full = full + bias[None, :, None, None]
    return full[:, :, :-1, 1:-1]                             # crop: rows :-1, cols 1:-1


if __name__ == "__main__":
    key = jax.random.PRNGKey(0)
    k_param, k_x = jax.random.split(key)

    B, C_in, C_out, H, W = 2, 4, 8, 16, 16
    params = init_downward_deconv_params(k_param, C_in, C_out)
    x = jax.random.normal(k_x, (B, C_in, H, W), dtype=jnp.float32)

    out = downward_deconv_forward(x, params)
    out = jax.block_until_ready(out)

    ref = _reference_forward(x, params)
    assert out.shape == (B, C_out, 2 * H, 2 * W), out.shape
    np.testing.assert_allclose(np.asarray(out), np.asarray(ref), rtol=1e-2, atol=1e-3)

    print("KERNEL_OK")
</pallas_src>

<mosaic_0001>
module attributes {stable_mosaic.version = 11 : i64} {
  func.func @_deconv_kernel(%arg0: i32, %arg1: i32, %arg2: memref<1x4x256xf32, #tpu.memory_space<vmem>>, %arg3: memref<16x4xf32, #tpu.memory_space<vmem>>, %arg4: memref<16x4xf32, #tpu.memory_space<vmem>>, %arg5: memref<16x4xf32, #tpu.memory_space<vmem>>, %arg6: memref<16x1xf32, #tpu.memory_space<vmem>>, %arg7: memref<16x32xf32, #tpu.memory_space<vmem>>, %arg8: memref<16x32xf32, #tpu.memory_space<vmem>>, %arg9: memref<16x32xf32, #tpu.memory_space<vmem>>, %arg10: memref<1x8x16x64xf32, #tpu.memory_space<vmem>>) attributes {dimension_semantics = [#tpu.dimension_semantics<parallel>, #tpu.dimension_semantics<parallel>], iteration_bounds = array<i64: 2, 1>, scalar_prefetch = 0 : i64, scratch_operands = 0 : i64, tpu.core_type = #tpu.core_type<tc>, window_params = [{transform_indices = @transform_0, window_bounds = array<i64: 1, 4, 256>}, {pipeline_mode = #tpu.pipeline_mode<synchronous>, transform_indices = @transform_1, window_bounds = array<i64: 16, 4>}, {pipeline_mode = #tpu.pipeline_mode<synchronous>, transform_indices = @transform_2, window_bounds = array<i64: 16, 4>}, {pipeline_mode = #tpu.pipeline_mode<synchronous>, transform_indices = @transform_3, window_bounds = array<i64: 16, 4>}, {pipeline_mode = #tpu.pipeline_mode<synchronous>, transform_indices = @transform_4, window_bounds = array<i64: 16, 1>}, {pipeline_mode = #tpu.pipeline_mode<synchronous>, transform_indices = @transform_5, window_bounds = array<i64: 16, 32>}, {pipeline_mode = #tpu.pipeline_mode<synchronous>, transform_indices = @transform_6, window_bounds = array<i64: 16, 32>}, {pipeline_mode = #tpu.pipeline_mode<synchronous>, transform_indices = @transform_7, window_bounds = array<i64: 16, 32>}, {transform_indices = @transform_8, window_bounds = array<i64: 1, 8, 16, 64>}]} {
    %c0 = arith.constant 0 : index
    %c0_0 = arith.constant 0 : index
    %c0_1 = arith.constant 0 : index
    %0 = vector.load %arg2[%c0, %c0_0, %c0_1] : memref<1x4x256xf32, #tpu.memory_space<vmem>>, vector<1x4x256xf32>
    %1 = vector.shape_cast %0 : vector<1x4x256xf32> to vector<4x256xf32>
    %c0_2 = arith.constant 0 : index
    %c0_3 = arith.constant 0 : index
    %2 = vector.load %arg6[%c0_2, %c0_3] : memref<16x1xf32, #tpu.memory_space<vmem>>, vector<16x1xf32>
    %c0_4 = arith.constant 0 : index
    %c0_5 = arith.constant 0 : index
    %3 = vector.load %arg3[%c0_4, %c0_5] : memref<16x4xf32, #tpu.memory_space<vmem>>, vector<16x4xf32>
    %cst = arith.constant dense<0.000000e+00> : vector<16x256xf32>
    %4 = tpu.matmul %3, %1, %cst {dimension_numbers = #tpu.dot_dimension_numbers<[1], [0], [0], [1], [0, 0, 1, 1], [], []>} : vector<16x4xf32>, vector<4x256xf32>, vector<16x256xf32> -> vector<16x256xf32>
    %5 = vector.broadcast %2 : vector<16x1xf32> to vector<16x256xf32>
    %6 = arith.addf %4, %5 : vector<16x256xf32>
    %c0_6 = arith.constant 0 : index
    %c0_7 = arith.constant 0 : index
    %7 = vector.load %arg4[%c0_6, %c0_7] : memref<16x4xf32, #tpu.memory_space<vmem>>, vector<16x4xf32>
    %cst_8 = arith.constant dense<0.000000e+00> : vector<16x256xf32>
    %8 = tpu.matmul %7, %1, %cst_8 {dimension_numbers = #tpu.dot_dimension_numbers<[1], [0], [0], [1], [0, 0, 1, 1], [], []>} : vector<16x4xf32>, vector<4x256xf32>, vector<16x256xf32> -> vector<16x256xf32>
    %9 = vector.broadcast %2 : vector<16x1xf32> to vector<16x256xf32>
    %10 = arith.addf %8, %9 : vector<16x256xf32>
    %c0_9 = arith.constant 0 : index
    %c0_10 = arith.constant 0 : index
    %11 = vector.load %arg5[%c0_9, %c0_10] : memref<16x4xf32, #tpu.memory_space<vmem>>, vector<16x4xf32>
    %cst_11 = arith.constant dense<0.000000e+00> : vector<16x256xf32>
    %12 = tpu.matmul %11, %1, %cst_11 {dimension_numbers = #tpu.dot_dimension_numbers<[1], [0], [0], [1], [0, 0, 1, 1], [], []>} : vector<16x4xf32>, vector<4x256xf32>, vector<16x256xf32> -> vector<16x256xf32>
    %c0_12 = arith.constant 0 : index
    %c0_13 = arith.constant 0 : index
    %13 = vector.load %arg7[%c0_12, %c0_13] : memref<16x32xf32, #tpu.memory_space<vmem>>, vector<16x32xf32>
    %c0_14 = arith.constant 0 : index
    %c0_15 = arith.constant 0 : index
    %14 = vector.load %arg8[%c0_14, %c0_15] : memref<16x32xf32, #tpu.memory_space<vmem>>, vector<16x32xf32>
    %c0_16 = arith.constant 0 : index
    %c0_17 = arith.constant 0 : index
    %15 = vector.load %arg9[%c0_16, %c0_17] : memref<16x32xf32, #tpu.memory_space<vmem>>, vector<16x32xf32>
    %16 = vector.extract_strided_slice %6 {offsets = [0, 0], sizes = [16, 16], strides = [1, 1]} : vector<16x256xf32> to vector<16x16xf32>
    %cst_18 = arith.constant dense<0.000000e+00> : vector<16x32xf32>
    %17 = tpu.matmul %16, %13, %cst_18 {dimension_numbers = #tpu.dot_dimension_numbers<[1], [0], [0], [1], [0, 0, 1, 1], [], []>} : vector<16x16xf32>, vector<16x32xf32>, vector<16x32xf32> -> vector<16x32xf32>
    %18 = vector.extract_strided_slice %10 {offsets = [0, 0], sizes = [16, 16], strides = [1, 1]} : vector<16x256xf32> to vector<16x16xf32>
    %cst_19 = arith.constant dense<0.000000e+00> : vector<16x32xf32>
    %19 = tpu.matmul %18, %14, %cst_19 {dimension_numbers = #tpu.dot_dimension_numbers<[1], [0], [0], [1], [0, 0, 1, 1], [], []>} : vector<16x16xf32>, vector<16x32xf32>, vector<16x32xf32> -> vector<16x32xf32>
    %20 = arith.addf %17, %19 : vector<16x32xf32>
    %21 = vector.extract_strided_slice %12 {offsets = [0, 0], sizes = [16, 16], strides = [1, 1]} : vector<16x256xf32> to vector<16x16xf32>
    %cst_20 = arith.constant dense<0.000000e+00> : vector<16x32xf32>
    %22 = tpu.matmul %21, %15, %cst_20 {dimension_numbers = #tpu.dot_dimension_numbers<[1], [0], [0], [1], [0, 0, 1, 1], [], []>} : vector<16x16xf32>, vector<16x32xf32>, vector<16x32xf32> -> vector<16x32xf32>
    %23 = arith.addf %20, %22 : vector<16x32xf32>
    %24 = vector.extract_strided_slice %23 {offsets = [0, 0], sizes = [8, 32], strides = [1, 1]} : vector<16x32xf32> to vector<8x32xf32>
    %c0_21 = arith.constant 0 : index
    %c0_22 = arith.constant 0 : index
    %c0_23 = arith.constant 0 : index
    %c0_24 = arith.constant 0 : index
    %25 = vector.load %arg10[%c0_21, %c0_22, %c0_23, %c0_24] : memref<1x8x16x64xf32, #tpu.memory_space<vmem>>, vector<1x8x1x32xf32>
    %26 = vector.shape_cast %25 : vector<1x8x1x32xf32> to vector<8x32xf32>
    %27 = vector.shape_cast %24 : vector<8x32xf32> to vector<1x8x1x32xf32>
    tpu.vector_store %arg10[%c0_21, %c0_22, %c0_23, %c0_24], %27 {strides = array<i32>} : memref<1x8x16x64xf32, #tpu.memory_space<vmem>>, vector<1x8x1x32xf32>,
    %28 = vector.extract_strided_slice %23 {offsets = [8, 0], sizes = [8, 32], strides = [1, 1]} : vector<16x32xf32> to vector<8x32xf32>
    %c0_25 = arith.constant 0 : index
    %c0_26 = arith.constant 0 : index
    %c0_27 = arith.constant 0 : index
    %c32 = arith.constant 32 : index
    %29 = vector.load %arg10[%c0_25, %c0_26, %c0_27, %c32] : memref<1x8x16x64xf32, #tpu.memory_space<vmem>>, vector<1x8x1x32xf32>
    %30 = vector.shape_cast %29 : vector<1x8x1x32xf32> to vector<8x32xf32>
    %31 = vector.shape_cast %28 : vector<8x32xf32> to vector<1x8x1x32xf32>
    tpu.vector_store %arg10[%c0_25, %c0_26, %c0_27, %c32], %31 {strides = array<i32>} : memref<1x8x16x64xf32, #tpu.memory_space<vmem>>, vector<1x8x1x32xf32>,
    %32 = vector.extract_strided_slice %6 {offsets = [0, 16], sizes = [16, 16], strides = [1, 1]} : vector<16x256xf32> to vector<16x16xf32>
    %cst_28 = arith.constant dense<0.000000e+00> : vector<16x32xf32>
    %33 = tpu.matmul %32, %13, %cst_28 {dimension_numbers = #tpu.dot_dimension_numbers<[1], [0], [0], [1], [0, 0, 1, 1], [], []>} : vector<16x16xf32>, vector<16x32xf32>, vector<16x32xf32> -> vector<16x32xf32>
    %34 = vector.extract_strided_slice %10 {offsets = [0, 16], sizes = [16, 16], strides = [1, 1]} : vector<16x256xf32> to vector<16x16xf32>
    %cst_29 = arith.constant dense<0.000000e+00> : vector<16x32xf32>
    %35 = tpu.matmul %34, %14, %cst_29 {dimension_numbers = #tpu.dot_dimension_numbers<[1], [0], [0], [1], [0, 0, 1, 1], [], []>} : vector<16x16xf32>, vector<16x32xf32>, vector<16x32xf32> -> vector<16x32xf32>
    %36 = arith.addf %33, %35 : vector<16x32xf32>
    %37 = vector.extract_strided_slice %12 {offsets = [0, 16], sizes = [16, 16], strides = [1, 1]} : vector<16x256xf32> to vector<16x16xf32>
    %cst_30 = arith.constant dense<0.000000e+00> : vector<16x32xf32>
    %38 = tpu.matmul %37, %15, %cst_30 {dimension_numbers = #tpu.dot_dimension_numbers<[1], [0], [0], [1], [0, 0, 1, 1], [], []>} : vector<16x16xf32>, vector<16x32xf32>, vector<16x32xf32> -> vector<16x32xf32>
    %39 = arith.addf %36, %38 : vector<16x32xf32>
    %40 = vector.extract_strided_slice %39 {offsets = [0, 0], sizes = [8, 32], strides = [1, 1]} : vector<16x32xf32> to vector<8x32xf32>
    %c0_31 = arith.constant 0 : index
    %c0_32 = arith.constant 0 : index
    %c1 = arith.constant 1 : index
    %c0_33 = arith.constant 0 : index
    %41 = vector.load %arg10[%c0_31, %c0_32, %c1, %c0_33] : memref<1x8x16x64xf32, #tpu.memory_space<vmem>>, vector<1x8x1x32xf32>
    %42 = vector.shape_cast %41 : vector<1x8x1x32xf32> to vector<8x32xf32>
    %43 = vector.shape_cast %40 : vector<8x32xf32> to vector<1x8x1x32xf32>
    tpu.vector_store %arg10[%c0_31, %c0_32, %c1, %c0_33], %43 {strides = array<i32>} : memref<1x8x16x64xf32, #tpu.memory_space<vmem>>, vector<1x8x1x32xf32>,
    %44 = vector.extract_strided_slice %39 {offsets = [8, 0], sizes = [8, 32], strides = [1, 1]} : vector<16x32xf32> to vector<8x32xf32>
    %c0_34 = arith.constant 0 : index
    %c0_35 = arith.constant 0 : index
    %c1_36 = arith.constant 1 : index
    %c32_37 = arith.constant 32 : index
    %45 = vector.load %arg10[%c0_34, %c0_35, %c1_36, %c32_37] : memref<1x8x16x64xf32, #tpu.memory_space<vmem>>, vector<1x8x1x32xf32>
    %46 = vector.shape_cast %45 : vector<1x8x1x32xf32> to vector<8x32xf32>
    %47 = vector.shape_cast %44 : vector<8x32xf32> to vector<1x8x1x32xf32>
    tpu.vector_store %arg10[%c0_34, %c0_35, %c1_36, %c32_37], %47 {strides = array<i32>} : memref<1x8x16x64xf32, #tpu.memory_space<vmem>>, vector<1x8x1x32xf32>,
    %48 = vector.extract_strided_slice %6 {offsets = [0, 32], sizes = [16, 16], strides = [1, 1]} : vector<16x256xf32> to vector<16x16xf32>
    %cst_38 = arith.constant dense<0.000000e+00> : vector<16x32xf32>
    %49 = tpu.matmul %48, %13, %cst_38 {dimension_numbers = #tpu.dot_dimension_numbers<[1], [0], [0], [1], [0, 0, 1, 1], [], []>} : vector<16x16xf32>, vector<16x32xf32>, vector<16x32xf32> -> vector<16x32xf32>
    %50 = vector.extract_strided_slice %10 {offsets = [0, 32], sizes = [16, 16], strides = [1, 1]} : vector<16x256xf32> to vector<16x16xf32>
    %cst_39 = arith.constant dense<0.000000e+00> : vector<16x32xf32>
    %51 = tpu.matmul %50, %14, %cst_39 {dimension_numbers = #tpu.dot_dimension_numbers<[1], [0], [0], [1], [0, 0, 1, 1], [], []>} : vector<16x16xf32>, vector<16x32xf32>, vector<16x32xf32> -> vector<16x32xf32>
    %52 = arith.addf %49, %51 : vector<16x32xf32>
    %53 = vector.extract_strided_slice %12 {offsets = [0, 32], sizes = [16, 16], strides = [1, 1]} : vector<16x256xf32> to vector<16x16xf32>
    %cst_40 = arith.constant dense<0.000000e+00> : vector<16x32xf32>
    %54 = tpu.matmul %53, %15, %cst_40 {dimension_numbers = #tpu.dot_dimension_numbers<[1], [0], [0], [1], [0, 0, 1, 1], [], []>} : vector<16x16xf32>, vector<16x32xf32>, vector<16x32xf32> -> vector<16x32xf32>
    %55 = arith.addf %52, %54 : vector<16x32xf32>
    %56 = vector.extract_strided_slice %55 {offsets = [0, 0], sizes = [8, 32], strides = [1, 1]} : vector<16x32xf32> to vector<8x32xf32>
    %c0_41 = arith.constant 0 : index
    %c0_42 = arith.constant 0 : index
    %c2 = arith.constant 2 : index
    %c0_43 = arith.constant 0 : index
    %57 = vector.load %arg10[%c0_41, %c0_42, %c2, %c0_43] : memref<1x8x16x64xf32, #tpu.memory_space<vmem>>, vector<1x8x1x32xf32>
    %58 = vector.shape_cast %57 : vector<1x8x1x32xf32> to vector<8x32xf32>
    %59 = vector.shape_cast %56 : vector<8x32xf32> to vector<1x8x1x32xf32>
    tpu.vector_store %arg10[%c0_41, %c0_42, %c2, %c0_43], %59 {strides = array<i32>} : memref<1x8x16x64xf32, #tpu.memory_space<vmem>>, vector<1x8x1x32xf32>,
    %60 = vector.extract_strided_slice %55 {offsets = [8, 0], sizes = [8, 32], strides = [1, 1]} : vector<16x32xf32> to vector<8x32xf32>
    %c0_44 = arith.constant 0 : index
    %c0_45 = arith.constant 0 : index
    %c2_46 = arith.constant 2 : index
    %c32_47 = arith.constant 32 : index
    %61 = vector.load %arg10[%c0_44, %c0_45, %c2_46, %c32_47] : memref<1x8x16x64xf32, #tpu.memory_space<vmem>>, vector<1x8x1x32xf32>
    %62 = vector.shape_cast %61 : vector<1x8x1x32xf32> to vector<8x32xf32>
    %63 = vector.shape_cast %60 : vector<8x32xf32> to vector<1x8x1x32xf32>
    tpu.vector_store %arg10[%c0_44, %c0_45, %c2_46, %c32_47], %63 {strides = array<i32>} : memref<1x8x16x64xf32, #tpu.memory_space<vmem>>, vector<1x8x1x32xf32>,
    %64 = vector.extract_strided_slice %6 {offsets = [0, 48], sizes = [16, 16], strides = [1, 1]} : vector<16x256xf32> to vector<16x16xf32>
    %cst_48 = arith.constant dense<0.000000e+00> : vector<16x32xf32>
    %65 = tpu.matmul %64, %13, %cst_48 {dimension_numbers = #tpu.dot_dimension_numbers<[1], [0], [0], [1], [0, 0, 1, 1], [], []>} : vector<16x16xf32>, vector<16x32xf32>, vector<16x32xf32> -> vector<16x32xf32>
    %66 = vector.extract_strided_slice %10 {offsets = [0, 48], sizes = [16, 16], strides = [1, 1]} : vector<16x256xf32> to vector<16x16xf32>
    %cst_49 = arith.constant dense<0.000000e+00> : vector<16x32xf32>
    %67 = tpu.matmul %66, %14, %cst_49 {dimension_numbers = #tpu.dot_dimension_numbers<[1], [0], [0], [1], [0, 0, 1, 1], [], []>} : vector<16x16xf32>, vector<16x32xf32>, vector<16x32xf32> -> vector<16x32xf32>
    %68 = arith.addf %65, %67 : vector<16x32xf32>
    %69 = vector.extract_strided_slice %12 {offsets = [0, 48], sizes = [16, 16], strides = [1, 1]} : vector<16x256xf32> to vector<16x16xf32>
    %cst_50 = arith.constant dense<0.000000e+00> : vector<16x32xf32>
    %70 = tpu.matmul %69, %15, %cst_50 {dimension_numbers = #tpu.dot_dimension_numbers<[1], [0], [0], [1], [0, 0, 1, 1], [], []>} : vector<16x16xf32>, vector<16x32xf32>, vector<16x32xf32> -> vector<16x32xf32>
    %71 = arith.addf %68, %70 : vector<16x32xf32>
    %72 = vector.extract_strided_slice %71 {offsets = [0, 0], sizes = [8, 32], strides = [1, 1]} : vector<16x32xf32> to vector<8x32xf32>
    %c0_51 = arith.constant 0 : index
    %c0_52 = arith.constant 0 : index
    %c3 = arith.constant 3 : index
    %c0_53 = arith.constant 0 : index
    %73 = vector.load %arg10[%c0_51, %c0_52, %c3, %c0_53] : memref<1x8x16x64xf32, #tpu.memory_space<vmem>>, vector<1x8x1x32xf32>
    %74 = vector.shape_cast %73 : vector<1x8x1x32xf32> to vector<8x32xf32>
    %75 = vector.shape_cast %72 : vector<8x32xf32> to vector<1x8x1x32xf32>
    tpu.vector_store %arg10[%c0_51, %c0_52, %c3, %c0_53], %75 {strides = array<i32>} : memref<1x8x16x64xf32, #tpu.memory_space<vmem>>, vector<1x8x1x32xf32>,
    %76 = vector.extract_strided_slice %71 {offsets = [8, 0], sizes = [8, 32], strides = [1, 1]} : vector<16x32xf32> to vector<8x32xf32>
    %c0_54 = arith.constant 0 : index
    %c0_55 = arith.constant 0 : index
    %c3_56 = arith.constant 3 : index
    %c32_57 = arith.constant 32 : index
    %77 = vector.load %arg10[%c0_54, %c0_55, %c3_56, %c32_57] : memref<1x8x16x64xf32, #tpu.memory_space<vmem>>, vector<1x8x1x32xf32>
    %78 = vector.shape_cast %77 : vector<1x8x1x32xf32> to vector<8x32xf32>
    %79 = vector.shape_cast %76 : vector<8x32xf32> to vector<1x8x1x32xf32>
    tpu.vector_store %arg10[%c0_54, %c0_55, %c3_56, %c32_57], %79 {strides = array<i32>} : memref<1x8x16x64xf32, #tpu.memory_space<vmem>>, vector<1x8x1x32xf32>,
    %80 = vector.extract_strided_slice %6 {offsets = [0, 64], sizes = [16, 16], strides = [1, 1]} : vector<16x256xf32> to vector<16x16xf32>
    %cst_58 = arith.constant dense<0.000000e+00> : vector<16x32xf32>
    %81 = tpu.matmul %80, %13, %cst_58 {dimension_numbers = #tpu.dot_dimension_numbers<[1], [0], [0], [1], [0, 0, 1, 1], [], []>} : vector<16x16xf32>, vector<16x32xf32>, vector<16x32xf32> -> vector<16x32xf32>
    %82 = vector.extract_strided_slice %10 {offsets = [0, 64], sizes = [16, 16], strides = [1, 1]} : vector<16x256xf32> to vector<16x16xf32>
    %cst_59 = arith.constant dense<0.000000e+00> : vector<16x32xf32>
    %83 = tpu.matmul %82, %14, %cst_59 {dimension_numbers = #tpu.dot_dimension_numbers<[1], [0], [0], [1], [0, 0, 1, 1], [], []>} : vector<16x16xf32>, vector<16x32xf32>, vector<16x32xf32> -> vector<16x32xf32>
    %84 = arith.addf %81, %83 : vector<16x32xf32>
    %85 = vector.extract_strided_slice %12 {offsets = [0, 64], sizes = [16, 16], strides = [1, 1]} : vector<16x256xf32> to vector<16x16xf32>
    %cst_60 = arith.constant dense<0.000000e+00> : vector<16x32xf32>
    %86 = tpu.matmul %85, %15, %cst_60 {dimension_numbers = #tpu.dot_dimension_numbers<[1], [0], [0], [1], [0, 0, 1, 1], [], []>} : vector<16x16xf32>, vector<16x32xf32>, vector<16x32xf32> -> vector<16x32xf32>
    %87 = arith.addf %84, %86 : vector<16x32xf32>
    %88 = vector.extract_strided_slice %87 {offsets = [0, 0], sizes = [8, 32], strides = [1, 1]} : vector<16x32xf32> to vector<8x32xf32>
    %c0_61 = arith.constant 0 : index
    %c0_62 = arith.constant 0 : index
    %c4 = arith.constant 4 : index
    %c0_63 = arith.constant 0 : index
    %89 = vector.load %arg10[%c0_61, %c0_62, %c4, %c0_63] : memref<1x8x16x64xf32, #tpu.memory_space<vmem>>, vector<1x8x1x32xf32>
    %90 = vector.shape_cast %89 : vector<1x8x1x32xf32> to vector<8x32xf32>
    %91 = vector.shape_cast %88 : vector<8x32xf32> to vector<1x8x1x32xf32>
    tpu.vector_store %arg10[%c0_61, %c0_62, %c4, %c0_63], %91 {strides = array<i32>} : memref<1x8x16x64xf32, #tpu.memory_space<vmem>>, vector<1x8x1x32xf32>,
    %92 = vector.extract_strided_slice %87 {offsets = [8, 0], sizes = [8, 32], strides = [1, 1]} : vector<16x32xf32> to vector<8x32xf32>
    %c0_64 = arith.constant 0 : index
    %c0_65 = arith.constant 0 : index
    %c4_66 = arith.constant 4 : index
    %c32_67 = arith.constant 32 : index
    %93 = vector.load %arg10[%c0_64, %c0_65, %c4_66, %c32_67] : memref<1x8x16x64xf32, #tpu.memory_space<vmem>>, vector<1x8x1x32xf32>
    %94 = vector.shape_cast %93 : vector<1x8x1x32xf32> to vector<8x32xf32>
    %95 = vector.shape_cast %92 : vector<8x32xf32> to vector<1x8x1x32xf32>
    tpu.vector_store %arg10[%c0_64, %c0_65, %c4_66, %c32_67], %95 {strides = array<i32>} : memref<1x8x16x64xf32, #tpu.memory_space<vmem>>, vector<1x8x1x32xf32>,
    %96 = vector.extract_strided_slice %6 {offsets = [0, 80], sizes = [16, 16], strides = [1, 1]} : vector<16x256xf32> to vector<16x16xf32>
    %cst_68 = arith.constant dense<0.000000e+00> : vector<16x32xf32>
    %97 = tpu.matmul %96, %13, %cst_68 {dimension_numbers = #tpu.dot_dimension_numbers<[1], [0], [0], [1], [0, 0, 1, 1], [], []>} : vector<16x16xf32>, vector<16x32xf32>, vector<16x32xf32> -> vector<16x32xf32>
    %98 = vector.extract_strided_slice %10 {offsets = [0, 80], sizes = [16, 16], strides = [1, 1]} : vector<16x256xf32> to vector<16x16xf32>
    %cst_69 = arith.constant dense<0.000000e+00> : vector<16x32xf32>
    %99 = tpu.matmul %98, %14, %cst_69 {dimension_numbers = #tpu.dot_dimension_numbers<[1], [0], [0], [1], [0, 0, 1, 1], [], []>} : vector<16x16xf32>, vector<16x32xf32>, vector<16x32xf32> -> vector<16x32xf32>
    %100 = arith.addf %97, %99 : vector<16x32xf32>
    %101 = vector.extract_strided_slice %12 {offsets = [0, 80], sizes = [16, 16], strides = [1, 1]} : vector<16x256xf32> to vector<16x16xf32>
    %cst_70 = arith.constant dense<0.000000e+00> : vector<16x32xf32>
    %102 = tpu.matmul %101, %15, %cst_70 {dimension_numbers = #tpu.dot_dimension_numbers<[1], [0], [0], [1], [0, 0, 1, 1], [], []>} : vector<16x16xf32>, vector<16x32xf32>, vector<16x32xf32> -> vector<16x32xf32>
    %103 = arith.addf %100, %102 : vector<16x32xf32>
    %104 = vector.extract_strided_slice %103 {offsets = [0, 0], sizes = [8, 32], strides = [1, 1]} : vector<16x32xf32> to vector<8x32xf32>
    %c0_71 = arith.constant 0 : index
    %c0_72 = arith.constant 0 : index
    %c5 = arith.constant 5 : index
    %c0_73 = arith.constant 0 : index
    %105 = vector.load %arg10[%c0_71, %c0_72, %c5, %c0_73] : memref<1x8x16x64xf32, #tpu.memory_space<vmem>>, vector<1x8x1x32xf32>
    %106 = vector.shape_cast %105 : vector<1x8x1x32xf32> to vector<8x32xf32>
    %107 = vector.shape_cast %104 : vector<8x32xf32> to vector<1x8x1x32xf32>
    tpu.vector_store %arg10[%c0_71, %c0_72, %c5, %c0_73], %107 {strides = array<i32>} : memref<1x8x16x64xf32, #tpu.memory_space<vmem>>, vector<1x8x1x32xf32>,
    %108 = vector.extract_strided_slice %103 {offsets = [8, 0], sizes = [8, 32], strides = [1, 1]} : vector<16x32xf32> to vector<8x32xf32>
    %c0_74 = arith.constant 0 : index
    %c0_75 = arith.constant 0 : index
    %c5_76 = arith.constant 5 : index
    %c32_77 = arith.constant 32 : index
    %109 = vector.load %arg10[%c0_74, %c0_75, %c5_76, %c32_77] : memref<1x8x16x64xf32, #tpu.memory_space<vmem>>, vector<1x8x1x32xf32>
    %110 = vector.shape_cast %109 : vector<1x8x1x32xf32> to vector<8x32xf32>
    %111 = vector.shape_cast %108 : vector<8x32xf32> to vector<1x8x1x32xf32>
    tpu.vector_store %arg10[%c0_74, %c0_75, %c5_76, %c32_77], %111 {strides = array<i32>} : memref<1x8x16x64xf32, #tpu.memory_space<vmem>>, vector<1x8x1x32xf32>,
    %112 = vector.extract_strided_slice %6 {offsets = [0, 96], sizes = [16, 16], strides = [1, 1]} : vector<16x256xf32> to vector<16x16xf32>
    %cst_78 = arith.constant dense<0.000000e+00> : vector<16x32xf32>
    %113 = tpu.matmul %112, %13, %cst_78 {dimension_numbers = #tpu.dot_dimension_numbers<[1], [0], [0], [1], [0, 0, 1, 1], [], []>} : vector<16x16xf32>, vector<16x32xf32>, vector<16x32xf32> -> vector<16x32xf32>
    %114 = vector.extract_strided_slice %10 {offsets = [0, 96], sizes = [16, 16], strides = [1, 1]} : vector<16x256xf32> to vector<16x16xf32>
    %cst_79 = arith.constant dense<0.000000e+00> : vector<16x32xf32>
    %115 = tpu.matmul %114, %14, %cst_79 {dimension_numbers = #tpu.dot_dimension_numbers<[1], [0], [0], [1], [0, 0, 1, 1], [], []>} : vector<16x16xf32>, vector<16x32xf32>, vector<16x32xf32> -> vector<16x32xf32>
    %116 = arith.addf %113, %115 : vector<16x32xf32>
    %117 = vector.extract_strided_slice %12 {offsets = [0, 96], sizes = [16, 16], strides = [1, 1]} : vector<16x256xf32> to vector<16x16xf32>
    %cst_80 = arith.constant dense<0.000000e+00> : vector<16x32xf32>
    %118 = tpu.matmul %117, %15, %cst_80 {dimension_numbers = #tpu.dot_dimension_numbers<[1], [0], [0], [1], [0, 0, 1, 1], [], []>} : vector<16x16xf32>, vector<16x32xf32>, vector<16x32xf32> -> vector<16x32xf32>
    %119 = arith.addf %116, %118 : vector<16x32xf32>
    %120 = vector.extract_strided_slice %119 {offsets = [0, 0], sizes = [8, 32], strides = [1, 1]} : vector<16x32xf32> to vector<8x32xf32>
    %c0_81 = arith.constant 0 : index
    %c0_82 = arith.constant 0 : index
    %c6 = arith.constant 6 : index
    %c0_83 = arith.constant 0 : index
    %121 = vector.load %arg10[%c0_81, %c0_82, %c6, %c0_83] : memref<1x8x16x64xf32, #tpu.memory_space<vmem>>, vector<1x8x1x32xf32>
    %122 = vector.shape_cast %121 : vector<1x8x1x32xf32> to vector<8x32xf32>
    %123 = vector.shape_cast %120 : vector<8x32xf32> to vector<1x8x1x32xf32>
    tpu.vector_store %arg10[%c0_81, %c0_82, %c6, %c0_83], %123 {strides = array<i32>} : memref<1x8x16x64xf32, #tpu.memory_space<vmem>>, vector<1x8x1x32xf32>,
    %124 = vector.extract_strided_slice %119 {offsets = [8, 0], sizes = [8, 32], strides = [1, 1]} : vector<16x32xf32> to vector<8x32xf32>
    %c0_84 = arith.constant 0 : index
    %c0_85 = arith.constant 0 : index
    %c6_86 = arith.constant 6 : index
    %c32_87 = arith.constant 32 : index
    %125 = vector.load %arg10[%c0_84, %c0_85, %c6_86, %c32_87] : memref<1x8x16x64xf32, #tpu.memory_space<vmem>>, vector<1x8x1x32xf32>
    %126 = vector.shape_cast %125 : vector<1x8x1x32xf32> to vector<8x32xf32>
    %127 = vector.shape_cast %124 : vector<8x32xf32> to vector<1x8x1x32xf32>
    tpu.vector_store %arg10[%c0_84, %c0_85, %c6_86, %c32_87], %127 {strides = array<i32>} : memref<1x8x16x64xf32, #tpu.memory_space<vmem>>, vector<1x8x1x32xf32>,
    %128 = vector.extract_strided_slice %6 {offsets = [0, 112], sizes = [16, 16], strides = [1, 1]} : vector<16x256xf32> to vector<16x16xf32>
    %cst_88 = arith.constant dense<0.000000e+00> : vector<16x32xf32>
    %129 = tpu.matmul %128, %13, %cst_88 {dimension_numbers = #tpu.dot_dimension_numbers<[1], [0], [0], [1], [0, 0, 1, 1], [], []>} : vector<16x16xf32>, vector<16x32xf32>, vector<16x32xf32> -> vector<16x32xf32>
    %130 = vector.extract_strided_slice %10 {offsets = [0, 112], sizes = [16, 16], strides = [1, 1]} : vector<16x256xf32> to vector<16x16xf32>
    %cst_89 = arith.constant dense<0.000000e+00> : vector<16x32xf32>
    %131 = tpu.matmul %130, %14, %cst_89 {dimension_numbers = #tpu.dot_dimension_numbers<[1], [0], [0], [1], [0, 0, 1, 1], [], []>} : vector<16x16xf32>, vector<16x32xf32>, vector<16x32xf32> -> vector<16x32xf32>
    %132 = arith.addf %129, %131 : vector<16x32xf32>
    %133 = vector.extract_strided_slice %12 {offsets = [0, 112], sizes = [16, 16], strides = [1, 1]} : vector<16x256xf32> to vector<16x16xf32>
    %cst_90 = arith.constant dense<0.000000e+00> : vector<16x32xf32>
    %134 = tpu.matmul %133, %15, %cst_90 {dimension_numbers = #tpu.dot_dimension_numbers<[1], [0], [0], [1], [0, 0, 1, 1], [], []>} : vector<16x16xf32>, vector<16x32xf32>, vector<16x32xf32> -> vector<16x32xf32>
    %135 = arith.addf %132, %134 : vector<16x32xf32>
    %136 = vector.extract_strided_slice %135 {offsets = [0, 0], sizes = [8, 32], strides = [1, 1]} : vector<16x32xf32> to vector<8x32xf32>
    %c0_91 = arith.constant 0 : index
    %c0_92 = arith.constant 0 : index
    %c7 = arith.constant 7 : index
    %c0_93 = arith.constant 0 : index
    %137 = vector.load %arg10[%c0_91, %c0_92, %c7, %c0_93] : memref<1x8x16x64xf32, #tpu.memory_space<vmem>>, vector<1x8x1x32xf32>
    %138 = vector.shape_cast %137 : vector<1x8x1x32xf32> to vector<8x32xf32>
    %139 = vector.shape_cast %136 : vector<8x32xf32> to vector<1x8x1x32xf32>
    tpu.vector_store %arg10[%c0_91, %c0_92, %c7, %c0_93], %139 {strides = array<i32>} : memref<1x8x16x64xf32, #tpu.memory_space<vmem>>, vector<1x8x1x32xf32>,
    %140 = vector.extract_strided_slice %135 {offsets = [8, 0], sizes = [8, 32], strides = [1, 1]} : vector<16x32xf32> to vector<8x32xf32>
    %c0_94 = arith.constant 0 : index
    %c0_95 = arith.constant 0 : index
    %c7_96 = arith.constant 7 : index
    %c32_97 = arith.constant 32 : index
    %141 = vector.load %arg10[%c0_94, %c0_95, %c7_96, %c32_97] : memref<1x8x16x64xf32, #tpu.memory_space<vmem>>, vector<1x8x1x32xf32>
    %142 = vector.shape_cast %141 : vector<1x8x1x32xf32> to vector<8x32xf32>
    %143 = vector.shape_cast %140 : vector<8x32xf32> to vector<1x8x1x32xf32>
    tpu.vector_store %arg10[%c0_94, %c0_95, %c7_96, %c32_97], %143 {strides = array<i32>} : memref<1x8x16x64xf32, #tpu.memory_space<vmem>>, vector<1x8x1x32xf32>,
    %144 = vector.extract_strided_slice %6 {offsets = [0, 128], sizes = [16, 16], strides = [1, 1]} : vector<16x256xf32> to vector<16x16xf32>
    %cst_98 = arith.constant dense<0.000000e+00> : vector<16x32xf32>
    %145 = tpu.matmul %144, %13, %cst_98 {dimension_numbers = #tpu.dot_dimension_numbers<[1], [0], [0], [1], [0, 0, 1, 1], [], []>} : vector<16x16xf32>, vector<16x32xf32>, vector<16x32xf32> -> vector<16x32xf32>
    %146 = vector.extract_strided_slice %10 {offsets = [0, 128], sizes = [16, 16], strides = [1, 1]} : vector<16x256xf32> to vector<16x16xf32>
    %cst_99 = arith.constant dense<0.000000e+00> : vector<16x32xf32>
    %147 = tpu.matmul %146, %14, %cst_99 {dimension_numbers = #tpu.dot_dimension_numbers<[1], [0], [0], [1], [0, 0, 1, 1], [], []>} : vector<16x16xf32>, vector<16x32xf32>, vector<16x32xf32> -> vector<16x32xf32>
    %148 = arith.addf %145, %147 : vector<16x32xf32>
    %149 = vector.extract_strided_slice %12 {offsets = [0, 128], sizes = [16, 16], strides = [1, 1]} : vector<16x256xf32> to vector<16x16xf32>
    %cst_100 = arith.constant dense<0.000000e+00> : vector<16x32xf32>
    %150 = tpu.matmul %149, %15, %cst_100 {dimension_numbers = #tpu.dot_dimension_numbers<[1], [0], [0], [1], [0, 0, 1, 1], [], []>} : vector<16x16xf32>, vector<16x32xf32>, vector<16x32xf32> -> vector<16x32xf32>
    %151 = arith.addf %148, %150 : vector<16x32xf32>
    %152 = vector.extract_strided_slice %151 {offsets = [0, 0], sizes = [8, 32], strides = [1, 1]} : vector<16x32xf32> to vector<8x32xf32>
    %c0_101 = arith.constant 0 : index
    %c0_102 = arith.constant 0 : index
    %c8 = arith.constant 8 : index
    %c0_103 = arith.constant 0 : index
    %153 = vector.load %arg10[%c0_101, %c0_102, %c8, %c0_103] : memref<1x8x16x64xf32, #tpu.memory_space<vmem>>, vector<1x8x1x32xf32>
    %154 = vector.shape_cast %153 : vector<1x8x1x32xf32> to vector<8x32xf32>
    %155 = vector.shape_cast %152 : vector<8x32xf32> to vector<1x8x1x32xf32>
    tpu.vector_store %arg10[%c0_101, %c0_102, %c8, %c0_103], %155 {strides = array<i32>} : memref<1x8x16x64xf32, #tpu.memory_space<vmem>>, vector<1x8x1x32xf32>,
    %156 = vector.extract_strided_slice %151 {offsets = [8, 0], sizes = [8, 32], strides = [1, 1]} : vector<16x32xf32> to vector<8x32xf32>
    %c0_104 = arith.constant 0 : index
    %c0_105 = arith.constant 0 : index
    %c8_106 = arith.constant 8 : index
    %c32_107 = arith.constant 32 : index
    %157 = vector.load %arg10[%c0_104, %c0_105, %c8_106, %c32_107] : memref<1x8x16x64xf32, #tpu.memory_space<vmem>>, vector<1x8x1x32xf32>
    %158 = vector.shape_cast %157 : vector<1x8x1x32xf32> to vector<8x32xf32>
    %159 = vector.shape_cast %156 : vector<8x32xf32> to vector<1x8x1x32xf32>
    tpu.vector_store %arg10[%c0_104, %c0_105, %c8_106, %c32_107], %159 {strides = array<i32>} : memref<1x8x16x64xf32, #tpu.memory_space<vmem>>, vector<1x8x1x32xf32>,
    %160 = vector.extract_strided_slice %6 {offsets = [0, 144], sizes = [16, 16], strides = [1, 1]} : vector<16x256xf32> to vector<16x16xf32>
    %cst_108 = arith.constant dense<0.000000e+00> : vector<16x32xf32>
    %161 = tpu.matmul %160, %13, %cst_108 {dimension_numbers = #tpu.dot_dimension_numbers<[1], [0], [0], [1], [0, 0, 1, 1], [], []>} : vector<16x16xf32>, vector<16x32xf32>, vector<16x32xf32> -> vector<16x32xf32>
    %162 = vector.extract_strided_slice %10 {offsets = [0, 144], sizes = [16, 16], strides = [1, 1]} : vector<16x256xf32> to vector<16x16xf32>
    %cst_109 = arith.constant dense<0.000000e+00> : vector<16x32xf32>
    %163 = tpu.matmul %162, %14, %cst_109 {dimension_numbers = #tpu.dot_dimension_numbers<[1], [0], [0], [1], [0, 0, 1, 1], [], []>} : vector<16x16xf32>, vector<16x32xf32>, vector<16x32xf32> -> vector<16x32xf32>
    %164 = arith.addf %161, %163 : vector<16x32xf32>
    %165 = vector.extract_strided_slice %12 {offsets = [0, 144], sizes = [16, 16], strides = [1, 1]} : vector<16x256xf32> to vector<16x16xf32>
    %cst_110 = arith.constant dense<0.000000e+00> : vector<16x32xf32>
    %166 = tpu.matmul %165, %15, %cst_110 {dimension_numbers = #tpu.dot_dimension_numbers<[1], [0], [0], [1], [0, 0, 1, 1], [], []>} : vector<16x16xf32>, vector<16x32xf32>, vector<16x32xf32> -> vector<16x32xf32>
    %167 = arith.addf %164, %166 : vector<16x32xf32>
    %168 = vector.extract_strided_slice %167 {offsets = [0, 0], sizes = [8, 32], strides = [1, 1]} : vector<16x32xf32> to vector<8x32xf32>
    %c0_111 = arith.constant 0 : index
    %c0_112 = arith.constant 0 : index
    %c9 = arith.constant 9 : index
    %c0_113 = arith.constant 0 : index
    %169 = vector.load %arg10[%c0_111, %c0_112, %c9, %c0_113] : memref<1x8x16x64xf32, #tpu.memory_space<vmem>>, vector<1x8x1x32xf32>
    %170 = vector.shape_cast %169 : vector<1x8x1x32xf32> to vector<8x32xf32>
    %171 = vector.shape_cast %168 : vector<8x32xf32> to vector<1x8x1x32xf32>
    tpu.vector_store %arg10[%c0_111, %c0_112, %c9, %c0_113], %171 {strides = array<i32>} : memref<1x8x16x64xf32, #tpu.memory_space<vmem>>, vector<1x8x1x32xf32>,
    %172 = vector.extract_strided_slice %167 {offsets = [8, 0], sizes = [8, 32], strides = [1, 1]} : vector<16x32xf32> to vector<8x32xf32>
    %c0_114 = arith.constant 0 : index
    %c0_115 = arith.constant 0 : index
    %c9_116 = arith.constant 9 : index
    %c32_117 = arith.constant 32 : index
    %173 = vector.load %arg10[%c0_114, %c0_115, %c9_116, %c32_117] : memref<1x8x16x64xf32, #tpu.memory_space<vmem>>, vector<1x8x1x32xf32>
    %174 = vector.shape_cast %173 : vector<1x8x1x32xf32> to vector<8x32xf32>
    %175 = vector.shape_cast %172 : vector<8x32xf32> to vector<1x8x1x32xf32>
    tpu.vector_store %arg10[%c0_114, %c0_115, %c9_116, %c32_117], %175 {strides = array<i32>} : memref<1x8x16x64xf32, #tpu.memory_space<vmem>>, vector<1x8x1x32xf32>,
    %176 = vector.extract_strided_slice %6 {offsets = [0, 160], sizes = [16, 16], strides = [1, 1]} : vector<16x256xf32> to vector<16x16xf32>
    %cst_118 = arith.constant dense<0.000000e+00> : vector<16x32xf32>
    %177 = tpu.matmul %176, %13, %cst_118 {dimension_numbers = #tpu.dot_dimension_numbers<[1], [0], [0], [1], [0, 0, 1, 1], [], []>} : vector<16x16xf32>, vector<16x32xf32>, vector<16x32xf32> -> vector<16x32xf32>
    %178 = vector.extract_strided_slice %10 {offsets = [0, 160], sizes = [16, 16], strides = [1, 1]} : vector<16x256xf32> to vector<16x16xf32>
    %cst_119 = arith.constant dense<0.000000e+00> : vector<16x32xf32>
    %179 = tpu.matmul %178, %14, %cst_119 {dimension_numbers = #tpu.dot_dimension_numbers<[1], [0], [0], [1], [0, 0, 1, 1], [], []>} : vector<16x16xf32>, vector<16x32xf32>, vector<16x32xf32> -> vector<16x32xf32>
    %180 = arith.addf %177, %179 : vector<16x32xf32>
    %181 = vector.extract_strided_slice %12 {offsets = [0, 160], sizes = [16, 16], strides = [1, 1]} : vector<16x256xf32> to vector<16x16xf32>
    %cst_120 = arith.constant dense<0.000000e+00> : vector<16x32xf32>
    %182 = tpu.matmul %181, %15, %cst_120 {dimension_numbers = #tpu.dot_dimension_numbers<[1], [0], [0], [1], [0, 0, 1, 1], [], []>} : vector<16x16xf32>, vector<16x32xf32>, vector<16x32xf32> -> vector<16x32xf32>
    %183 = arith.addf %180, %182 : vector<16x32xf32>
    %184 = vector.extract_strided_slice %183 {offsets = [0, 0], sizes = [8, 32], strides = [1, 1]} : vector<16x32xf32> to vector<8x32xf32>
    %c0_121 = arith.constant 0 : index
    %c0_122 = arith.constant 0 : index
    %c10 = arith.constant 10 : index
    %c0_123 = arith.constant 0 : index
    %185 = vector.load %arg10[%c0_121, %c0_122, %c10, %c0_123] : memref<1x8x16x64xf32, #tpu.memory_space<vmem>>, vector<1x8x1x32xf32>
    %186 = vector.shape_cast %185 : vector<1x8x1x32xf32> to vector<8x32xf32>
    %187 = vector.shape_cast %184 : vector<8x32xf32> to vector<1x8x1x32xf32>
    tpu.vector_store %arg10[%c0_121, %c0_122, %c10, %c0_123], %187 {strides = array<i32>} : memref<1x8x16x64xf32, #tpu.memory_space<vmem>>, vector<1x8x1x32xf32>,
    %188 = vector.extract_strided_slice %183 {offsets = [8, 0], sizes = [8, 32], strides = [1, 1]} : vector<16x32xf32> to vector<8x32xf32>
    %c0_124 = arith.constant 0 : index
    %c0_125 = arith.constant 0 : index
    %c10_126 = arith.constant 10 : index
    %c32_127 = arith.constant 32 : index
    %189 = vector.load %arg10[%c0_124, %c0_125, %c10_126, %c32_127] : memref<1x8x16x64xf32, #tpu.memory_space<vmem>>, vector<1x8x1x32xf32>
    %190 = vector.shape_cast %189 : vector<1x8x1x32xf32> to vector<8x32xf32>
    %191 = vector.shape_cast %188 : vector<8x32xf32> to vector<1x8x1x32xf32>
    tpu.vector_store %arg10[%c0_124, %c0_125, %c10_126, %c32_127], %191 {strides = array<i32>} : memref<1x8x16x64xf32, #tpu.memory_space<vmem>>, vector<1x8x1x32xf32>,
    %192 = vector.extract_strided_slice %6 {offsets = [0, 176], sizes = [16, 16], strides = [1, 1]} : vector<16x256xf32> to vector<16x16xf32>
    %cst_128 = arith.constant dense<0.000000e+00> : vector<16x32xf32>
    %193 = tpu.matmul %192, %13, %cst_128 {dimension_numbers = #tpu.dot_dimension_numbers<[1], [0], [0], [1], [0, 0, 1, 1], [], []>} : vector<16x16xf32>, vector<16x32xf32>, vector<16x32xf32> -> vector<16x32xf32>
    %194 = vector.extract_strided_slice %10 {offsets = [0, 176], sizes = [16, 16], strides = [1, 1]} : vector<16x256xf32> to vector<16x16xf32>
    %cst_129 = arith.constant dense<0.000000e+00> : vector<16x32xf32>
    %195 = tpu.matmul %194, %14, %cst_129 {dimension_numbers = #tpu.dot_dimension_numbers<[1], [0], [0], [1], [0, 0, 1, 1], [], []>} : vector<16x16xf32>, vector<16x32xf32>, vector<16x32xf32> -> vector<16x32xf32>
    %196 = arith.addf %193, %195 : vector<16x32xf32>
    %197 = vector.extract_strided_slice %12 {offsets = [0, 176], sizes = [16, 16], strides = [1, 1]} : vector<16x256xf32> to vector<16x16xf32>
    %cst_130 = arith.constant dense<0.000000e+00> : vector<16x32xf32>
    %198 = tpu.matmul %197, %15, %cst_130 {dimension_numbers = #tpu.dot_dimension_numbers<[1], [0], [0], [1], [0, 0, 1, 1], [], []>} : vector<16x16xf32>, vector<16x32xf32>, vector<16x32xf32> -> vector<16x32xf32>
    %199 = arith.addf %196, %198 : vector<16x32xf32>
    %200 = vector.extract_strided_slice %199 {offsets = [0, 0], sizes = [8, 32], strides = [1, 1]} : vector<16x32xf32> to vector<8x32xf32>
    %c0_131 = arith.constant 0 : index
    %c0_132 = arith.constant 0 : index
    %c11 = arith.constant 11 : index
    %c0_133 = arith.constant 0 : index
    %201 = vector.load %arg10[%c0_131, %c0_132, %c11, %c0_133] : memref<1x8x16x64xf32, #tpu.memory_space<vmem>>, vector<1x8x1x32xf32>
    %202 = vector.shape_cast %201 : vector<1x8x1x32xf32> to vector<8x32xf32>
    %203 = vector.shape_cast %200 : vector<8x32xf32> to vector<1x8x1x32xf32>
    tpu.vector_store %arg10[%c0_131, %c0_132, %c11, %c0_133], %203 {strides = array<i32>} : memref<1x8x16x64xf32, #tpu.memory_space<vmem>>, vector<1x8x1x32xf32>,
    %204 = vector.extract_strided_slice %199 {offsets = [8, 0], sizes = [8, 32], strides = [1, 1]} : vector<16x32xf32> to vector<8x32xf32>
    %c0_134 = arith.constant 0 : index
    %c0_135 = arith.constant 0 : index
    %c11_136 = arith.constant 11 : index
    %c32_137 = arith.constant 32 : index
    %205 = vector.load %arg10[%c0_134, %c0_135, %c11_136, %c32_137] : memref<1x8x16x64xf32, #tpu.memory_space<vmem>>, vector<1x8x1x32xf32>
    %206 = vector.shape_cast %205 : vector<1x8x1x32xf32> to vector<8x32xf32>
    %207 = vector.shape_cast %204 : vector<8x32xf32> to vector<1x8x1x32xf32>
    tpu.vector_store %arg10[%c0_134, %c0_135, %c11_136, %c32_137], %207 {strides = array<i32>} : memref<1x8x16x64xf32, #tpu.memory_space<vmem>>, vector<1x8x1x32xf32>,
    %208 = vector.extract_strided_slice %6 {offsets = [0, 192], sizes = [16, 16], strides = [1, 1]} : vector<16x256xf32> to vector<16x16xf32>
    %cst_138 = arith.constant dense<0.000000e+00> : vector<16x32xf32>
    %209 = tpu.matmul %208, %13, %cst_138 {dimension_numbers = #tpu.dot_dimension_numbers<[1], [0], [0], [1], [0, 0, 1, 1], [], []>} : vector<16x16xf32>, vector<16x32xf32>, vector<16x32xf32> -> vector<16x32xf32>
    %210 = vector.extract_strided_slice %10 {offsets = [0, 192], sizes = [16, 16], strides = [1, 1]} : vector<16x256xf32> to vector<16x16xf32>
    %cst_139 = arith.constant dense<0.000000e+00> : vector<16x32xf32>
    %211 = tpu.matmul %210, %14, %cst_139 {dimension_numbers = #tpu.dot_dimension_numbers<[1], [0], [0], [1], [0, 0, 1, 1], [], []>} : vector<16x16xf32>, vector<16x32xf32>, vector<16x32xf32> -> vector<16x32xf32>
    %212 = arith.addf %209, %211 : vector<16x32xf32>
    %213 = vector.extract_strided_slice %12 {offsets = [0, 192], sizes = [16, 16], strides = [1, 1]} : vector<16x256xf32> to vector<16x16xf32>
    %cst_140 = arith.constant dense<0.000000e+00> : vector<16x32xf32>
    %214 = tpu.matmul %213, %15, %cst_140 {dimension_numbers = #tpu.dot_dimension_numbers<[1], [0], [0], [1], [0, 0, 1, 1], [], []>} : vector<16x16xf32>, vector<16x32xf32>, vector<16x32xf32> -> vector<16x32xf32>
    %215 = arith.addf %212, %214 : vector<16x32xf32>
    %216 = vector.extract_strided_slice %215 {offsets = [0, 0], sizes = [8, 32], strides = [1, 1]} : vector<16x32xf32> to vector<8x32xf32>
    %c0_141 = arith.constant 0 : index
    %c0_142 = arith.constant 0 : index
    %c12 = arith.constant 12 : index
    %c0_143 = arith.constant 0 : index
    %217 = vector.load %arg10[%c0_141, %c0_142, %c12, %c0_143] : memref<1x8x16x64xf32, #tpu.memory_space<vmem>>, vector<1x8x1x32xf32>
    %218 = vector.shape_cast %217 : vector<1x8x1x32xf32> to vector<8x32xf32>
    %219 = vector.shape_cast %216 : vector<8x32xf32> to vector<1x8x1x32xf32>
    tpu.vector_store %arg10[%c0_141, %c0_142, %c12, %c0_143], %219 {strides = array<i32>} : memref<1x8x16x64xf32, #tpu.memory_space<vmem>>, vector<1x8x1x32xf32>,
    %220 = vector.extract_strided_slice %215 {offsets = [8, 0], sizes = [8, 32], strides = [1, 1]} : vector<16x32xf32> to vector<8x32xf32>
    %c0_144 = arith.constant 0 : index
    %c0_145 = arith.constant 0 : index
    %c12_146 = arith.constant 12 : index
    %c32_147 = arith.constant 32 : index
    %221 = vector.load %arg10[%c0_144, %c0_145, %c12_146, %c32_147] : memref<1x8x16x64xf32, #tpu.memory_space<vmem>>, vector<1x8x1x32xf32>
    %222 = vector.shape_cast %221 : vector<1x8x1x32xf32> to vector<8x32xf32>
    %223 = vector.shape_cast %220 : vector<8x32xf32> to vector<1x8x1x32xf32>
    tpu.vector_store %arg10[%c0_144, %c0_145, %c12_146, %c32_147], %223 {strides = array<i32>} : memref<1x8x16x64xf32, #tpu.memory_space<vmem>>, vector<1x8x1x32xf32>,
    %224 = vector.extract_strided_slice %6 {offsets = [0, 208], sizes = [16, 16], strides = [1, 1]} : vector<16x256xf32> to vector<16x16xf32>
    %cst_148 = arith.constant dense<0.000000e+00> : vector<16x32xf32>
    %225 = tpu.matmul %224, %13, %cst_148 {dimension_numbers = #tpu.dot_dimension_numbers<[1], [0], [0], [1], [0, 0, 1, 1], [], []>} : vector<16x16xf32>, vector<16x32xf32>, vector<16x32xf32> -> vector<16x32xf32>
    %226 = vector.extract_strided_slice %10 {offsets = [0, 208], sizes = [16, 16], strides = [1, 1]} : vector<16x256xf32> to vector<16x16xf32>
    %cst_149 = arith.constant dense<0.000000e+00> : vector<16x32xf32>
    %227 = tpu.matmul %226, %14, %cst_149 {dimension_numbers = #tpu.dot_dimension_numbers<[1], [0], [0], [1], [0, 0, 1, 1], [], []>} : vector<16x16xf32>, vector<16x32xf32>, vector<16x32xf32> -> vector<16x32xf32>
    %228 = arith.addf %225, %227 : vector<16x32xf32>
    %229 = vector.extract_strided_slice %12 {offsets = [0, 208], sizes = [16, 16], strides = [1, 1]} : vector<16x256xf32> to vector<16x16xf32>
    %cst_150 = arith.constant dense<0.000000e+00> : vector<16x32xf32>
    %230 = tpu.matmul %229, %15, %cst_150 {dimension_numbers = #tpu.dot_dimension_numbers<[1], [0], [0], [1], [0, 0, 1, 1], [], []>} : vector<16x16xf32>, vector<16x32xf32>, vector<16x32xf32> -> vector<16x32xf32>
    %231 = arith.addf %228, %230 : vector<16x32xf32>
    %232 = vector.extract_strided_slice %231 {offsets = [0, 0], sizes = [8, 32], strides = [1, 1]} : vector<16x32xf32> to vector<8x32xf32>
    %c0_151 = arith.constant 0 : index
    %c0_152 = arith.constant 0 : index
    %c13 = arith.constant 13 : index
    %c0_153 = arith.constant 0 : index
    %233 = vector.load %arg10[%c0_151, %c0_152, %c13, %c0_153] : memref<1x8x16x64xf32, #tpu.memory_space<vmem>>, vector<1x8x1x32xf32>
    %234 = vector.shape_cast %233 : vector<1x8x1x32xf32> to vector<8x32xf32>
    %235 = vector.shape_cast %232 : vector<8x32xf32> to vector<1x8x1x32xf32>
    tpu.vector_store %arg10[%c0_151, %c0_152, %c13, %c0_153], %235 {strides = array<i32>} : memref<1x8x16x64xf32, #tpu.memory_space<vmem>>, vector<1x8x1x32xf32>,
    %236 = vector.extract_strided_slice %231 {offsets = [8, 0], sizes = [8, 32], strides = [1, 1]} : vector<16x32xf32> to vector<8x32xf32>
    %c0_154 = arith.constant 0 : index
    %c0_155 = arith.constant 0 : index
    %c13_156 = arith.constant 13 : index
    %c32_157 = arith.constant 32 : index
    %237 = vector.load %arg10[%c0_154, %c0_155, %c13_156, %c32_157] : memref<1x8x16x64xf32, #tpu.memory_space<vmem>>, vector<1x8x1x32xf32>
    %238 = vector.shape_cast %237 : vector<1x8x1x32xf32> to vector<8x32xf32>
    %239 = vector.shape_cast %236 : vector<8x32xf32> to vector<1x8x1x32xf32>
    tpu.vector_store %arg10[%c0_154, %c0_155, %c13_156, %c32_157], %239 {strides = array<i32>} : memref<1x8x16x64xf32, #tpu.memory_space<vmem>>, vector<1x8x1x32xf32>,
    %240 = vector.extract_strided_slice %6 {offsets = [0, 224], sizes = [16, 16], strides = [1, 1]} : vector<16x256xf32> to vector<16x16xf32>
    %cst_158 = arith.constant dense<0.000000e+00> : vector<16x32xf32>
    %241 = tpu.matmul %240, %13, %cst_158 {dimension_numbers = #tpu.dot_dimension_numbers<[1], [0], [0], [1], [0, 0, 1, 1], [], []>} : vector<16x16xf32>, vector<16x32xf32>, vector<16x32xf32> -> vector<16x32xf32>
    %242 = vector.extract_strided_slice %10 {offsets = [0, 224], sizes = [16, 16], strides = [1, 1]} : vector<16x256xf32> to vector<16x16xf32>
    %cst_159 = arith.constant dense<0.000000e+00> : vector<16x32xf32>
    %243 = tpu.matmul %242, %14, %cst_159 {dimension_numbers = #tpu.dot_dimension_numbers<[1], [0], [0], [1], [0, 0, 1, 1], [], []>} : vector<16x16xf32>, vector<16x32xf32>, vector<16x32xf32> -> vector<16x32xf32>
    %244 = arith.addf %241, %243 : vector<16x32xf32>
    %245 = vector.extract_strided_slice %12 {offsets = [0, 224], sizes = [16, 16], strides = [1, 1]} : vector<16x256xf32> to vector<16x16xf32>
    %cst_160 = arith.constant dense<0.000000e+00> : vector<16x32xf32>
    %246 = tpu.matmul %245, %15, %cst_160 {dimension_numbers = #tpu.dot_dimension_numbers<[1], [0], [0], [1], [0, 0, 1, 1], [], []>} : vector<16x16xf32>, vector<16x32xf32>, vector<16x32xf32> -> vector<16x32xf32>
    %247 = arith.addf %244, %246 : vector<16x32xf32>
    %248 = vector.extract_strided_slice %247 {offsets = [0, 0], sizes = [8, 32], strides = [1, 1]} : vector<16x32xf32> to vector<8x32xf32>
    %c0_161 = arith.constant 0 : index
    %c0_162 = arith.constant 0 : index
    %c14 = arith.constant 14 : index
    %c0_163 = arith.constant 0 : index
    %249 = vector.load %arg10[%c0_161, %c0_162, %c14, %c0_163] : memref<1x8x16x64xf32, #tpu.memory_space<vmem>>, vector<1x8x1x32xf32>
    %250 = vector.shape_cast %249 : vector<1x8x1x32xf32> to vector<8x32xf32>
    %251 = vector.shape_cast %248 : vector<8x32xf32> to vector<1x8x1x32xf32>
    tpu.vector_store %arg10[%c0_161, %c0_162, %c14, %c0_163], %251 {strides = array<i32>} : memref<1x8x16x64xf32, #tpu.memory_space<vmem>>, vector<1x8x1x32xf32>,
    %252 = vector.extract_strided_slice %247 {offsets = [8, 0], sizes = [8, 32], strides = [1, 1]} : vector<16x32xf32> to vector<8x32xf32>
    %c0_164 = arith.constant 0 : index
    %c0_165 = arith.constant 0 : index
    %c14_166 = arith.constant 14 : index
    %c32_167 = arith.constant 32 : index
    %253 = vector.load %arg10[%c0_164, %c0_165, %c14_166, %c32_167] : memref<1x8x16x64xf32, #tpu.memory_space<vmem>>, vector<1x8x1x32xf32>
    %254 = vector.shape_cast %253 : vector<1x8x1x32xf32> to vector<8x32xf32>
    %255 = vector.shape_cast %252 : vector<8x32xf32> to vector<1x8x1x32xf32>
    tpu.vector_store %arg10[%c0_164, %c0_165, %c14_166, %c32_167], %255 {strides = array<i32>} : memref<1x8x16x64xf32, #tpu.memory_space<vmem>>, vector<1x8x1x32xf32>,
    %256 = vector.extract_strided_slice %6 {offsets = [0, 240], sizes = [16, 16], strides = [1, 1]} : vector<16x256xf32> to vector<16x16xf32>
    %cst_168 = arith.constant dense<0.000000e+00> : vector<16x32xf32>
    %257 = tpu.matmul %256, %13, %cst_168 {dimension_numbers = #tpu.dot_dimension_numbers<[1], [0], [0], [1], [0, 0, 1, 1], [], []>} : vector<16x16xf32>, vector<16x32xf32>, vector<16x32xf32> -> vector<16x32xf32>
    %258 = vector.extract_strided_slice %10 {offsets = [0, 240], sizes = [16, 16], strides = [1, 1]} : vector<16x256xf32> to vector<16x16xf32>
    %cst_169 = arith.constant dense<0.000000e+00> : vector<16x32xf32>
    %259 = tpu.matmul %258, %14, %cst_169 {dimension_numbers = #tpu.dot_dimension_numbers<[1], [0], [0], [1], [0, 0, 1, 1], [], []>} : vector<16x16xf32>, vector<16x32xf32>, vector<16x32xf32> -> vector<16x32xf32>
    %260 = arith.addf %257, %259 : vector<16x32xf32>
    %261 = vector.extract_strided_slice %12 {offsets = [0, 240], sizes = [16, 16], strides = [1, 1]} : vector<16x256xf32> to vector<16x16xf32>
    %cst_170 = arith.constant dense<0.000000e+00> : vector<16x32xf32>
    %262 = tpu.matmul %261, %15, %cst_170 {dimension_numbers = #tpu.dot_dimension_numbers<[1], [0], [0], [1], [0, 0, 1, 1], [], []>} : vector<16x16xf32>, vector<16x32xf32>, vector<16x32xf32> -> vector<16x32xf32>
    %263 = arith.addf %260, %262 : vector<16x32xf32>
    %264 = vector.extract_strided_slice %263 {offsets = [0, 0], sizes = [8, 32], strides = [1, 1]} : vector<16x32xf32> to vector<8x32xf32>
    %c0_171 = arith.constant 0 : index
    %c0_172 = arith.constant 0 : index
    %c15 = arith.constant 15 : index
    %c0_173 = arith.constant 0 : index
    %265 = vector.load %arg10[%c0_171, %c0_172, %c15, %c0_173] : memref<1x8x16x64xf32, #tpu.memory_space<vmem>>, vector<1x8x1x32xf32>
    %266 = vector.shape_cast %265 : vector<1x8x1x32xf32> to vector<8x32xf32>
    %267 = vector.shape_cast %264 : vector<8x32xf32> to vector<1x8x1x32xf32>
    tpu.vector_store %arg10[%c0_171, %c0_172, %c15, %c0_173], %267 {strides = array<i32>} : memref<1x8x16x64xf32, #tpu.memory_space<vmem>>, vector<1x8x1x32xf32>,
    %268 = vector.extract_strided_slice %263 {offsets = [8, 0], sizes = [8, 32], strides = [1, 1]} : vector<16x32xf32> to vector<8x32xf32>
    %c0_174 = arith.constant 0 : index
    %c0_175 = arith.constant 0 : index
    %c15_176 = arith.constant 15 : index
    %c32_177 = arith.constant 32 : index
    %269 = vector.load %arg10[%c0_174, %c0_175, %c15_176, %c32_177] : memref<1x8x16x64xf32, #tpu.memory_space<vmem>>, vector<1x8x1x32xf32>
    %270 = vector.shape_cast %269 : vector<1x8x1x32xf32> to vector<8x32xf32>
    %271 = vector.shape_cast %268 : vector<8x32xf32> to vector<1x8x1x32xf32>
    tpu.vector_store %arg10[%c0_174, %c0_175, %c15_176, %c32_177], %271 {strides = array<i32>} : memref<1x8x16x64xf32, #tpu.memory_space<vmem>>, vector<1x8x1x32xf32>,
    return
  }
  func.func @transform_0(%arg0: i32, %arg1: i32) -> (i32, i32, i32) {
    %c0_i32 = arith.constant 0 : i32
    %c0_i32_0 = arith.constant 0 : i32
    return %arg0, %c0_i32, %arg1 : i32, i32, i32
  }
  func.func @transform_1(%arg0: i32, %arg1: i32) -> (i32, i32) {
    %c0_i32 = arith.constant 0 : i32
    %c0_i32_0 = arith.constant 0 : i32
    %c0_i32_1 = arith.constant 0 : i32
    return %c0_i32, %c0_i32_0 : i32, i32
  }
  func.func @transform_2(%arg0: i32, %arg1: i32) -> (i32, i32) {
    %c0_i32 = arith.constant 0 : i32
    %c0_i32_0 = arith.constant 0 : i32
    %c0_i32_1 = arith.constant 0 : i32
    return %c0_i32, %c0_i32_0 : i32, i32
  }
  func.func @transform_3(%arg0: i32, %arg1: i32) -> (i32, i32) {
    %c0_i32 = arith.constant 0 : i32
    %c0_i32_0 = arith.constant 0 : i32
    %c0_i32_1 = arith.constant 0 : i32
    return %c0_i32, %c0_i32_0 : i32, i32
  }
  func.func @transform_4(%arg0: i32, %arg1: i32) -> (i32, i32) {
    %c0_i32 = arith.constant 0 : i32
    %c0_i32_0 = arith.constant 0 : i32
    %c0_i32_1 = arith.constant 0 : i32
    return %c0_i32, %c0_i32_0 : i32, i32
  }
  func.func @transform_5(%arg0: i32, %arg1: i32) -> (i32, i32) {
    %c0_i32 = arith.constant 0 : i32
    %c0_i32_0 = arith.constant 0 : i32
    %c0_i32_1 = arith.constant 0 : i32
    return %c0_i32, %c0_i32_0 : i32, i32
  }
  func.func @transform_6(%arg0: i32, %arg1: i32) -> (i32, i32) {
    %c0_i32 = arith.constant 0 : i32
    %c0_i32_0 = arith.constant 0 : i32
    %c0_i32_1 = arith.constant 0 : i32
    return %c0_i32, %c0_i32_0 : i32, i32
  }
  func.func @transform_7(%arg0: i32, %arg1: i32) -> (i32, i32) {
    %c0_i32 = arith.constant 0 : i32
    %c0_i32_0 = arith.constant 0 : i32
    %c0_i32_1 = arith.constant 0 : i32
    return %c0_i32, %c0_i32_0 : i32, i32
  }
  func.func @transform_8(%arg0: i32, %arg1: i32) -> (i32, i32, i32, i32) {
    %c0_i32 = arith.constant 0 : i32
    %c0_i32_0 = arith.constant 0 : i32
    %c0_i32_1 = arith.constant 0 : i32
    return %arg0, %c0_i32, %arg1, %c0_i32_0 : i32, i32, i32, i32
  }
}

</mosaic_0001>

<bundles_post_ra>
// kernel: tpu_custom_call.1
= control target key start
LH: loop header
LB: loop body
LE: loop exit
PB: predicated region body
PF: predicated region fallthrough
CT: control target
= control target key end

     0   :  { %13 = vsyncpa [#allocation3], 0  ;;  %s10359_s0 = inlined_call_operand.vmem [shape: f32[2,4,256], index: 0, kind: input, shape index: {}]   ;;  %s10360_s1 = inlined_call_operand.vmem [shape: f32[16,4], index: 1, kind: input, shape index: {}]   ;;  %s10361_s2 = inlined_call_operand.vmem [shape: f32[16,4], index: 2, kind: input, shape index: {}]   ;;  %s10362_s3 = inlined_call_operand.vmem [shape: f32[16,4], index: 3, kind: input, shape index: {}]   ;;  %s10363_s4 = inlined_call_operand.vmem [shape: f32[16,1], index: 4, kind: input, shape index: {}]   ;;  %s10364_s5 = inlined_call_operand.vmem [shape: f32[16,32], index: 5, kind: input, shape index: {}]   ;;  %s10365_s6 = inlined_call_operand.vmem [shape: f32[16,32], index: 6, kind: input, shape index: {}]   ;;  %s10366_s7 = inlined_call_operand.vmem [shape: f32[16,32], index: 7, kind: input, shape index: {}]   ;;  %s10367_s8 = inlined_call_operand.hbm [shape: f32[2,8,16,64], index: 8, kind: output, shape index: {}]  }
   0x1   :  { %15 = vsyncpa [#allocation3 + $0x1], 0  ;;  %s8461_s27 = smov 0   ;;  %s8463_s28 = smov 0  }
   0x2   :  { %s8465_s29 = smov 0   ;;  %s8467_s30 = smov 0  }
   0x3   :  { %s8469_s9 = smov 0   ;;  %s8471_s10 = smov 0  }
   0x4 LB: > { %s7599_s11 = sadd.s32 4294967295, %s8401_s10   ;;  %s7600_s12 = sadd.s32 4294967294, %s8401_s10   ;;  %s8401_s10 = sphi %s8471_s10, %s21_s10   ;;  %s8397_s9 = sphi %s8469_s9, %s10374_s9   ;;  %s8393_s30 = sphi %s8467_s30, %s10373_s30   ;;  %s8389_s29 = sphi %s8465_s29, %s10372_s29   ;;  %s8385_s28 = sphi %s8463_s28, %s10371_s28   ;;  %s8381_s27 = sphi %s8461_s27, %s10370_s27  }
   0x5   : > { %s33_s13 = sadd.s32 1, %s8397_s9  ;;  %s217_s14 = sadd.s32 1, %s8389_s29 }
   0x6   : > { %p35_p0 = scmp.ge.s32.totalorder %s33_s13, 2  ;;  %p227_p1 = scmp.ne.s32.totalorder %s8389_s29, %s8385_s28 }
   0x7   : > { %p228_p2 = scmp.eq.s32.totalorder %s7599_s11, 1  ;;  %p233_p3 = scmp.ne.s32.totalorder %s8385_s28, %s8381_s27 }
   0x8   : > { %s10376_s13 = smov (%p35_p0, %s33_s13), 0  ;;  %p234_p5 = scmp.eq.s32.totalorder %s7600_s12, 1 }
   0x9   : > { %p8501_p4 = por %p228_p2, %p227_p1  ;;  %s212_s16 = ssub.s32 %s8397_s9, %s10376_s13 }
   0xa   : > { %p7603_p6 = scmp.ge.s32.totalorder %s8401_s10, 1  ;;  %p215_p7 = scmp.eq.s32.totalorder %s212_s16, 0 }
   0xb   : > { %p8508_p8 = por %p234_p5, %p233_p3  ;;  %p286_p9 = scmp.lt.s32.totalorder %s8401_s10, 3 }
   0xc   : > { %s8514_s18 = scalar_select %p215_p7, %s8389_s29, %s217_s14  }
   0xd   : > { %p287_p10 = pnand %p7603_p6, %p286_p9 }
   0xe   : > { %p325_p11 = scmp.lt.s32.totalorder (!%p287_p10), %s8393_s30, 1  ;;  %s8405_s26 = smov (!%p287_p10), 112  }
   0xf   : > { %290 = sbr.rel (%p287_p10) target bundleno = 1001 (0x3e9), region = 52  ;;  %s8406_s14 = smov (!%p287_p10), 96  }
  0x10   : > { %s8407_s16 = smov (!%p287_p10), 80   ;;  %s8408_s20 = smov (!%p287_p10), 64  }
  0x11   : > { %s8410_s21 = smov (!%p287_p10), 32   ;;  %s321_s23 = sand.u32 (!%p287_p10), 1, %s8385_s28  }
  0x12   : > { %s7604_s24 = sshll.u32 (!%p287_p10), %s321_s23, 7 }
  0x13   : > { %s8937_s25 = scalar_lea.vmem (!%p287_p10), [#allocation2], %s7604_s24  ;;  %s8413_s24 = smov (!%p287_p10), [#allocation2]  }
  0x14   : > { %v8403_v0 = vmov 0.0   ;;  %s326_s19 = scalar_select %p325_p11, %s8393_s30, 1  ;;  %v8404_v1 = vmov 0   ;;  %v336_v2 = vld [vmem:[%s10363_s4] sm:$0xff]  ;;  %v337_v3 = vld [vmem:[%s10363_s4 + $0x8] sm:$0xff]  ;;  %vm359_vm0 = vcmask 1043456  }
  0x15   : > { %428 = vmatprep.mubr.f32.mxu0 %v8403_v0  ;;  %513 = vmatprep.mubr.f32.mxu1 %v8403_v0  ;;  %v338_v6 = vld [vmem:[%s10360_s1] sm:$0xff]  ;;  %vm352_vm1 = vcmask 31744   ;;  %v339_v8 = vld [vmem:[%s10360_s1 + $0x8] sm:$0xff]  ;;  %vm617_vm2 = vcmask 130048   ;;  %vm921_vm3 = vcmask 253952   ;;  %vm1036_vm4 = vcmask 516352  }
  0x16   : > { %8317 = vset.pattern.permute.xlu0 %v8404_v1  ;;  %s7720_s22 = sshll.u32 %s326_s19, 3  ;;  %v441_v7 = vld [vmem:[%s10361_s2] sm:$0xff]  ;;  %v442_v9 = vld [vmem:[%s10361_s2 + $0x8] sm:$0xff]  ;;  %s8409_s19 = smov 48  }
  0x17   : > { %342 = vperm.xlu0 %8317, %v336_v2   ;;  %s332_s11 = scalar_lea.vmem %s10359_s0, %s7720_s22  ;;  %v526_v10 = vld [vmem:[%s10362_s3] sm:$0xff]  ;;  %v527_v11 = vld [vmem:[%s10362_s3 + $0x8] sm:$0xff]  ;;  %s8411_s22 = smov 16  }
  0x18   : > { %v335_v4 = vld [vmem:[%s332_s11] sm:$0xff]  ;;  %v8560_v12 = vld [vmem:[%s10365_s6 + $0x8] sm:$0xff] }
  0x19   : > { %v351_v5 = vcombine.high %v335_v4, %v335_v4  ;;  %v8567_v13 = vld [vmem:[%s10365_s6] sm:$0xff]  ;;  %v8574_v14 = vld [vmem:[%s10364_s5 + $0x8] sm:$0xff] }
  0x1a   : > { %v8580_v15 = vld [vmem:[%s10366_s7 + $0x8] sm:$0xff]  ;;  %v8586_v16 = vld [vmem:[%s10366_s7] sm:$0xff] }
  0x1b   : > { %347 = vperm.xlu0 %8317, %v337_v3   ;;  %7607 = vmatprep.subr.msk.mxu0 %vm359_vm0, %v351_v5  ;;  %v8610_v29 = vld [vmem:[%s10364_s5] sm:$0xff] }
  0x1c   : > { %7611 = vmatprep.subr.msk.mxu1 %vm359_vm0, %v351_v5  ;;  %7608 = vmatpush1.msk.msra.mxu0 %vm359_vm0, %v335_v4 }
  0x1d   : > { %7612 = vmatpush1.msk.msra.mxu1 %vm359_vm0, %v335_v4  ;;  %7609 = vmatmul.mubr.msk.f32.vlgmr.msra.gmra.mxu0 %vm352_vm1, %v338_v6 }
  0x1e   : > { %7613 = vmatmul.mubr.msk.f32.vlgmr.msra.gmra.mxu1 %vm352_vm1, %v441_v7  ;;  %434 = vmatprep.mubr.f32.mxu0 %v8403_v0 }
  0x1f   : > { %519 = vmatprep.mubr.f32.mxu1 %v8403_v0  ;;  %7615 = vmatprep.subr.msk.mxu0 %vm359_vm0, %v351_v5 }
  0x20   : > { %7616 = vmatpush1.msk.msra.mxu0 %vm359_vm0, %v335_v4  ;;  %7914 = vmatprep.subr.mxu1 %v8560_v12 }
  0x21   : > { %7610 = vmatmul.mubr.msk.f32.gmra.mxu0 %vm352_vm1, %v339_v8  ;;  %7915 = vmatpush3.msra.mxu1 %v8560_v12 }
  0x22   : > { %7614 = vmatmul.mubr.msk.f32.gmra.mxu1 %vm352_vm1, %v442_v9  ;;  %598 = vmatprep.mubr.f32.mxu0 %v8403_v0 }
  0x23   : > { %7916 = vmatprep.subr.mxu1 %v8567_v13  ;;  %7928 = vmatprep.subr.mxu0 %v8580_v15 }
  0x24   : > { %7917 = vmatpush3.msra.mxu1 %v8567_v13 }
  0x25   : > { %7617 = vmatmul.mubr.msk.f32.vlgmr.msra.gmra.mxu0 %vm352_vm1, %v526_v10  ;;  %7921 = vmatprep.subr.mxu1 %v8574_v14 }
  0x26   : > { %604 = vmatprep.mubr.f32.mxu0 %v8403_v0  ;;  %7929 = vmatpush3.msra.mxu0 %v8580_v15 }
  0x27   : > { %7930 = vmatprep.subr.mxu0 %v8586_v16 }
  0x28   : > { %7931 = vmatpush3.msra.mxu0 %v8586_v16 }
  0x29   : > { %7618 = vmatmul.mubr.msk.f32.gmra.mxu0 %vm352_vm1, %v527_v11  ;;  %7942 = vmatprep.subr.mxu0 %v8574_v14 }
  0x92   : > { %v8592_v17 = vpop.permute.xlu0 %342 }
  0x96   : > { %v8599_v23 = vpop.permute.xlu0 %347 }
  0xdd   : > { %v430_v18 = vpop.f32.mrf.mxu0 }
  0xde   : > { %v515_v19 = vpop.f32.mrf.mxu1  ;;  %v431_v27 = vadd.f32 %v430_v18, %v8592_v17 }
  0xdf   : > { %v516_v20 = vadd.f32 %v515_v19, %v8592_v17  ;;  %v8595_v21 = vpop.f32.mrf.mxu0 }
  0xe0   : > { %v8597_v22 = vpop.f32.mrf.mxu1  ;;  %v8676_v37 = vadd.f32 %v8595_v21, %v8592_v17 }
  0xe1   : > { %1045 = vrot.lane.b32.xlu0 %v516_v20, %s8405_s26  ;;  %7918 = vmatprep.mubr.msk.f32.mxu1 %vm617_vm2, %v516_v20  ;;  %v436_v24 = vpop.f32.mrf.mxu0  ;;  %v8666_v34 = vadd.f32 %v8597_v22, %v8592_v17  ;;  %v868_v22 = vlaneseq }
  0xe2   : > { %v521_v25 = vpop.f32.mrf.mxu1  ;;  %v437_v31 = vadd.f32 %v436_v24, %v8599_v23 }
  0xe3   : > { %v522_v26 = vadd.f32 %v521_v25, %v8599_v23  ;;  %v8605_v28 = vpop.f32.mrf.mxu0 }
  0xe4   : > { %v523_v35 = vpop.f32.mrf.mxu1  ;;  %v8684_v38 = vadd.f32 %v8605_v28, %v8599_v23 }
  0xe5   : > { %1047 = vrot.lane.b32.xlu1 %v522_v26, %s8405_s26  ;;  %7919 = vmatmul.mubr.msk.f32.vlgmr.msra.gmra.mxu1 %vm617_vm2, %v522_v26  ;;  %v8615_v30 = vpop.f32.mrf.mxu0  ;;  %v8672_v36 = vadd.f32 %v523_v35, %v8599_v23 }
  0xe6   : > { %1128 = vrot.lane.b32.xlu0 %v431_v27, %s8405_s26  ;;  %7922 = vmatpush3.msra.mxu1 %v8574_v14 }
  0xe7   : > { %7925 = vmatprep.mubr.msk.f32.mxu1 %vm617_vm2, %v431_v27  ;;  %7923 = vmatprep.subr.mxu1 %v8610_v29  ;;  %v8621_v32 = vpop.f32.mrf.mxu0 }
  0xe8   : > { %7924 = vmatpush3.msra.mxu1 %v8610_v29  ;;  %7932 = vmatprep.mubr.msk.f32.mxu0 %vm617_vm2, %v8615_v30 }
  0xe9   : > { %1130 = vrot.lane.b32.xlu1 %v437_v31, %s8405_s26  ;;  %7926 = vmatmul.mubr.msk.f32.vlgmr.msra.gmra.mxu1 %vm617_vm2, %v437_v31  ;;  %v8629_v33 = vpop.f32.mrf.mxu0 }
  0xea   : > { %1476 = vrot.lane.b32.xlu0 %v516_v20, %s8406_s14  ;;  %7935 = vmatprep.subr.mxu1 %v8560_v12 }
  0xeb   : > { %7933 = vmatmul.mubr.msk.f32.vlgmr.msra.gmra.mxu0 %vm617_vm2, %v8629_v33  ;;  %7936 = vmatpush3.msra.mxu1 %v8560_v12  ;;  %v8773_v47 = vpop.f32.mrf.mxu0 }
  0xec   : > { %7937 = vmatprep.subr.mxu1 %v8567_v13  ;;  %7943 = vmatpush3.msra.mxu0 %v8574_v14 }
  0xed   : > { %1478 = vrot.lane.b32.xlu1 %v522_v26, %s8406_s14  ;;  %7938 = vmatpush3.msra.mxu1 %v8567_v13 }
  0xee   : > { %1559 = vrot.lane.b32.xlu0 %v431_v27, %s8406_s14  ;;  %7944 = vmatprep.subr.mxu0 %v8610_v29 }
  0xef   : > { %7945 = vmatpush3.msra.mxu0 %v8610_v29  ;;  %7949 = vmatprep.subr.mxu1 %v8580_v15 }
  0xf0   : > { %7956 = vmatprep.subr.mxu0 %v8560_v12 }
  0xf1   : > { %1561 = vrot.lane.b32.xlu1 %v437_v31, %s8406_s14 }
  0xf2   : > { %1907 = vrot.lane.b32.xlu0 %v516_v20, %s8407_s16 }
  0xf5   : > { %1909 = vrot.lane.b32.xlu1 %v522_v26, %s8407_s16 }
  0xf6   : > { %1990 = vrot.lane.b32.xlu0 %v431_v27, %s8407_s16 }
  0xf9   : > { %1992 = vrot.lane.b32.xlu1 %v437_v31, %s8407_s16 }
  0xfa   : > { %2338 = vrot.lane.b32.xlu0 %v516_v20, %s8408_s20 }
  0xfd   : > { %2340 = vrot.lane.b32.xlu1 %v522_v26, %s8408_s20 }
  0xfe   : > { %2421 = vrot.lane.b32.xlu0 %v431_v27, %s8408_s20 }
 0x101   : > { %2423 = vrot.lane.b32.xlu1 %v437_v31, %s8408_s20 }
 0x102   : > { %2769 = vrot.lane.b32.xlu0 %v516_v20, %s8409_s19 }
 0x105   : > { %2771 = vrot.lane.b32.xlu1 %v522_v26, %s8409_s19 }
 0x106   : > { %2852 = vrot.lane.b32.xlu0 %v431_v27, %s8409_s19 }
 0x109   : > { %2854 = vrot.lane.b32.xlu1 %v437_v31, %s8409_s19 }
 0x10a   : > { %3200 = vrot.lane.b32.xlu0 %v516_v20, %s8410_s21 }
 0x10d   : > { %3202 = vrot.lane.b32.xlu1 %v522_v26, %s8410_s21 }
 0x10e   : > { %3283 = vrot.lane.b32.xlu0 %v431_v27, %s8410_s21 }
 0x111   : > { %3285 = vrot.lane.b32.xlu1 %v437_v31, %s8410_s21 }
 0x112   : > { %3631 = vrot.lane.b32.xlu0 %v516_v20, %s8411_s22  ;;  %v8412_v20 = vmov 1966171168  }
 0x113   : > { %v866_v21 = vunpack.c.l.s4 %v8412_v20 }
 0x115   : > { %3633 = vrot.lane.b32.xlu1 %v522_v26, %s8411_s22  ;;  %v867_v26 = vunpack.c.0.s8 %v866_v21 }
 0x116   : > { %3714 = vrot.lane.b32.xlu0 %v431_v27, %s8411_s22  ;;  %v869_v27 = vshrl.u32 %v868_v22, 7 }
 0x119   : > { %3716 = vrot.lane.b32.xlu1 %v437_v31, %s8411_s22 }
 0x11a   : > { %4487 = vrot.lane.b32.xlu0 %v8666_v34, %s8405_s26 }
 0x11d   : > { %4489 = vrot.lane.b32.xlu1 %v8672_v36, %s8405_s26 }
 0x11e   : > { %4570 = vrot.lane.b32.xlu0 %v8676_v37, %s8405_s26 }
 0x121   : > { %4572 = vrot.lane.b32.xlu1 %v8684_v38, %s8405_s26 }
 0x122   : > { %4918 = vrot.lane.b32.xlu0 %v8666_v34, %s8406_s14 }
 0x125   : > { %4920 = vrot.lane.b32.xlu1 %v8672_v36, %s8406_s14 }
 0x126   : > { %5001 = vrot.lane.b32.xlu0 %v8676_v37, %s8406_s14 }
 0x129   : > { %5003 = vrot.lane.b32.xlu1 %v8684_v38, %s8406_s14 }
 0x12a   : > { %5349 = vrot.lane.b32.xlu0 %v8666_v34, %s8407_s16 }
 0x12d   : > { %5351 = vrot.lane.b32.xlu1 %v8672_v36, %s8407_s16 }
 0x12e   : > { %5432 = vrot.lane.b32.xlu0 %v8676_v37, %s8407_s16 }
 0x131   : > { %5434 = vrot.lane.b32.xlu1 %v8684_v38, %s8407_s16 }
 0x132   : > { %1211 = vrot.lane.b32.xlu0 %v8615_v30, %s8405_s26 }
 0x135   : > { %1213 = vrot.lane.b32.xlu1 %v8629_v33, %s8405_s26 }
 0x136   : > { %1642 = vrot.lane.b32.xlu0 %v8615_v30, %s8406_s14 }
 0x139   : > { %1644 = vrot.lane.b32.xlu1 %v8629_v33, %s8406_s14 }
 0x13a   : > { %5780 = vrot.lane.b32.xlu0 %v8666_v34, %s8408_s20 }
 0x13d   : > { %5782 = vrot.lane.b32.xlu1 %v8672_v36, %s8408_s20 }
 0x13e   : > { %2073 = vrot.lane.b32.xlu0 %v8615_v30, %s8407_s16 }
 0x141   : > { %2075 = vrot.lane.b32.xlu1 %v8629_v33, %s8407_s16 }
 0x142   : > { %2504 = vrot.lane.b32.xlu0 %v8615_v30, %s8408_s20 }
 0x145   : > { %2506 = vrot.lane.b32.xlu1 %v8629_v33, %s8408_s20 }
 0x146   : > { %2935 = vrot.lane.b32.xlu0 %v8615_v30, %s8409_s19 }
 0x149   : > { %5865 = vrot.lane.b32.xlu1 %v8684_v38, %s8408_s20 }
 0x14a   : > { %3366 = vrot.lane.b32.xlu0 %v8615_v30, %s8410_s21 }
 0x14d   : > { %2937 = vrot.lane.b32.xlu1 %v8629_v33, %s8409_s19 }
 0x14e   : > { %3797 = vrot.lane.b32.xlu0 %v8615_v30, %s8411_s22 }
 0x151   : > { %3368 = vrot.lane.b32.xlu1 %v8629_v33, %s8410_s21 }
 0x152   : > { %4653 = vrot.lane.b32.xlu0 %v8621_v32, %s8405_s26 }
 0x153   : > { %v1046_v39 = vpop.permute.xlu0 %1045 }
 0x154   : > { %7939 = vmatprep.mubr.msk.f32.mxu1 %vm617_vm2, %v1046_v39  ;;  %v8887_v39 = vsub.s32 %v867_v26, %v869_v27 }
 0x155   : > { %6213 = vrot.lane.b32.xlu1 %v8672_v36, %s8409_s19 }
 0x156   : > { %5084 = vrot.lane.b32.xlu0 %v8621_v32, %s8406_s14 }
 0x157   : > { %v1048_v40 = vpop.permute.xlu1 %1047 }
 0x158   : > { %v1129_v41 = vpop.permute.xlu0 %1128  ;;  %7940 = vmatmul.mubr.msk.f32.vlgmr.msra.gmra.mxu1 %vm617_vm2, %v1048_v40 }
 0x159   : > { %7946 = vmatprep.mubr.msk.f32.mxu0 %vm617_vm2, %v1129_v41  ;;  %3799 = vrot.lane.b32.xlu1 %v8629_v33, %s8411_s22 }
 0x15a   : > { %5515 = vrot.lane.b32.xlu0 %v8621_v32, %s8407_s16  ;;  %7950 = vmatpush3.msra.mxu1 %v8580_v15 }
 0x15b   : > { %v1131_v42 = vpop.permute.xlu1 %1130  ;;  %7951 = vmatprep.subr.mxu1 %v8586_v16 }
 0x15c   : > { %v1477_v43 = vpop.permute.xlu0 %1476  ;;  %7947 = vmatmul.mubr.msk.f32.vlgmr.msra.gmra.mxu0 %vm617_vm2, %v1131_v42  ;;  %7952 = vmatpush3.msra.mxu1 %v8586_v16 }
 0x15d   : > { %6296 = vrot.lane.b32.xlu1 %v8684_v38, %s8409_s19  ;;  %7957 = vmatpush3.msra.mxu0 %v8560_v12 }
 0x15e   : > { %5863 = vrot.lane.b32.xlu0 %v8676_v37, %s8408_s20  ;;  %7960 = vmatprep.mubr.msk.f32.mxu0 %vm617_vm2, %v1477_v43 }
 0x15f   : > { %7958 = vmatprep.subr.mxu0 %v8567_v13  ;;  %v1479_v44 = vpop.permute.xlu1 %1478  ;;  %7963 = vmatprep.subr.mxu1 %v8574_v14 }
 0x160   : > { %7959 = vmatpush3.msra.mxu0 %v8567_v13  ;;  %v8762_v45 = vpop.permute.xlu0 %1559 }
 0x161   : > { %7961 = vmatmul.mubr.msk.f32.vlgmr.msra.gmra.mxu0 %vm617_vm2, %v1479_v44  ;;  %6644 = vrot.lane.b32.xlu1 %v8672_v36, %s8410_s21 }
 0x162   : > { %5946 = vrot.lane.b32.xlu0 %v8621_v32, %s8408_s20  ;;  %7970 = vmatprep.subr.mxu0 %v8580_v15 }
 0x163   : > { %v8770_v46 = vpop.permute.xlu1 %1561  ;;  %7971 = vmatpush3.msra.mxu0 %v8580_v15 }
 0x164   : > { %v8775_v48 = vpop.permute.xlu0 %1907  ;;  %7972 = vmatprep.subr.mxu0 %v8586_v16 }
 0x165   : > { %4655 = vrot.lane.b32.xlu1 %v8773_v47, %s8405_s26  ;;  %7973 = vmatpush3.msra.mxu0 %v8586_v16  ;;  %s8329_s26 = sshll.u32 %s8413_s24, 4  ;;  %s8330_s26 = int_to_ptr.vmem [resolvable:$false] %s8329_s26 }
 0x166   : > { %6211 = vrot.lane.b32.xlu0 %v8666_v34, %s8409_s19  ;;  %7984 = vmatprep.subr.mxu0 %v8574_v14  ;;  %s8331_s11 = scalar_lea.vmem %s8330_s26, 4096 }
 0x167   : > { %v8784_v49 = vpop.permute.xlu1 %1909 }
 0x168   : > { %v8786_v50 = vpop.permute.xlu0 %1990 }
 0x169   : > { %5086 = vrot.lane.b32.xlu1 %v8773_v47, %s8406_s14  ;;  %s7520_s14 = sshll.u32 %s8937_s25, 4  ;;  %s10306_s14 = int_to_ptr.vmem [resolvable:$true] %s7520_s14 }
 0x16a   : > { %6294 = vrot.lane.b32.xlu0 %v8676_v37, %s8409_s19  ;;  %p8332_p1 = scmp.lt.s32.totalorder %s10306_s14, %s8330_s26 }
 0x16b   : > { %v8792_v51 = vpop.permute.xlu1 %1992 }
 0x16c   : > { %v8794_v52 = vpop.permute.xlu0 %2338 }
 0x16d   : > { %6727 = vrot.lane.b32.xlu1 %v8684_v38, %s8410_s21 }
 0x16e   : > { %6377 = vrot.lane.b32.xlu0 %v8621_v32, %s8409_s19 }
 0x16f   : > { %v8800_v53 = vpop.permute.xlu1 %2340 }
 0x170   : > { %v8802_v54 = vpop.permute.xlu0 %2421 }
 0x171   : > { %5517 = vrot.lane.b32.xlu1 %v8773_v47, %s8407_s16 }
 0x172   : > { %6642 = vrot.lane.b32.xlu0 %v8666_v34, %s8410_s21 }
 0x173   : > { %v8808_v55 = vpop.permute.xlu1 %2423 }
 0x174   : > { %v8810_v56 = vpop.permute.xlu0 %2769 }
 0x175   : > { %5948 = vrot.lane.b32.xlu1 %v8773_v47, %s8408_s20 }
 0x176   : > { %6725 = vrot.lane.b32.xlu0 %v8676_v37, %s8410_s21 }
 0x177   : > { %v8816_v57 = vpop.permute.xlu1 %2771 }
 0x178   : > { %v8818_v58 = vpop.permute.xlu0 %2852 }
 0x179   : > { %7075 = vrot.lane.b32.xlu1 %v8672_v36, %s8411_s22 }
 0x17a   : > { %6808 = vrot.lane.b32.xlu0 %v8621_v32, %s8410_s21 }
 0x17b   : > { %v8824_v59 = vpop.permute.xlu1 %2854 }
 0x17c   : > { %v8826_v60 = vpop.permute.xlu0 %3200 }
 0x17d   : > { %6379 = vrot.lane.b32.xlu1 %v8773_v47, %s8409_s19 }
 0x17e   : > { %7073 = vrot.lane.b32.xlu0 %v8666_v34, %s8411_s22 }
 0x17f   : > { %v8832_v61 = vpop.permute.xlu1 %3202 }
 0x180   : > { %v8834_v62 = vpop.permute.xlu0 %3283 }
 0x181   : > { %6810 = vrot.lane.b32.xlu1 %v8773_v47, %s8410_s21 }
 0x182   : > { %7156 = vrot.lane.b32.xlu0 %v8676_v37, %s8411_s22 }
 0x183   : > { %v8840_v63 = vpop.permute.xlu1 %3285 }
 0x184   : > { %v8842_v0 = vpop.permute.xlu0 %3631 }
 0x185   : > { %7158 = vrot.lane.b32.xlu1 %v8684_v38, %s8411_s22 }
 0x186   : > { %7239 = vrot.lane.b32.xlu0 %v8621_v32, %s8411_s22 }
 0x187   : > { %v8848_v1 = vpop.permute.xlu1 %3633 }
 0x188   : > { %v8850_v2 = vpop.permute.xlu0 %3714 }
 0x189   : > { %7241 = vrot.lane.b32.xlu1 %v8773_v47, %s8411_s22  ;;  %s8325_s22 = scalar_lea.vmem %s10306_s14, 2048 }
 0x18a   : > { %p8326_p12 = scmp.ne.s32.totalorder %s10306_s14, %s8325_s22  ;;  %p8333_p2 = scmp.lt.s32.totalorder %s8331_s11, %s8325_s22 }
 0x18b   : > { %v8854_v3 = vpop.permute.xlu1 %3716 }
 0x18c   : > { %v8856_v4 = vpop.permute.xlu0 %4487  ;;  %p8327_p13 = pnand %p8326_p12, %p8501_p4  ;;  %p8334_p3 = por %p8333_p2, %p8332_p1 }
 0x18e   : > { %p8328_p0 = pneg %p8327_p13 }
 0x18f   : > { %v8858_v5 = vpop.permute.xlu1 %4489 }
 0x190   : > { %v8860_v6 = vpop.permute.xlu0 %4570  ;;  %p8335_p5 = pnand %p8334_p3, %p8328_p0 }
 0x193   : > { %v8862_v7 = vpop.permute.xlu1 %4572 }
 0x194   : > { %v8864_v8 = vpop.permute.xlu0 %4918 }
 0x197   : > { %v8866_v9 = vpop.permute.xlu1 %4920 }
 0x198   : > { %v8868_v10 = vpop.permute.xlu0 %5001 }
 0x19b   : > { %v8870_v11 = vpop.permute.xlu1 %5003 }
 0x19c   : > { %v8872_v17 = vpop.permute.xlu0 %5349 }
 0x19f   : > { %v8874_v18 = vpop.permute.xlu1 %5351 }
 0x1a0   : > { %v8876_v19 = vpop.permute.xlu0 %5432 }
 0x1a3   : > { %v8878_v23 = vpop.permute.xlu1 %5434 }
 0x1a4   : > { %v1212_v24 = vpop.permute.xlu0 %1211 }
 0x1a5   : > { %7953 = vmatprep.mubr.msk.f32.mxu1 %vm617_vm2, %v1212_v24  ;;  %v7920_v25 = vpop.f32.mrf.mxu1 }
 0x1a7   : > { %v690_v28 = vpop.f32.mrf.mxu1  ;;  %v1214_v30 = vpop.permute.xlu1 %1213 }
 0x1a8   : > { %v1643_v31 = vpop.permute.xlu0 %1642  ;;  %7954 = vmatmul.mubr.msk.f32.vlgmr.msra.gmra.mxu1 %vm617_vm2, %v1214_v30 }
 0x1a9   : > { %7974 = vmatprep.mubr.msk.f32.mxu0 %vm617_vm2, %v1643_v31  ;;  %v7927_v33 = vpop.f32.mrf.mxu1  ;;  %7964 = vmatpush3.msra.mxu1 %v8574_v14 }
 0x1aa   : > { %v777_v35 = vadd.f32 %v7927_v33, %v7920_v25  ;;  %7967 = vmatprep.mubr.msk.f32.mxu1 %vm617_vm2, %v8762_v45  ;;  %7965 = vmatprep.subr.mxu1 %v8610_v29 }
 0x1ab   : > { %v7934_v40 = vpop.f32.mrf.mxu0  ;;  %v1645_v41 = vpop.permute.xlu1 %1644  ;;  %7966 = vmatpush3.msra.mxu1 %v8610_v29 }
 0x1ac   : > { %v8890_v42 = vadd.f32 %v7934_v40, %v777_v35  ;;  %v8892_v43 = vpop.permute.xlu0 %5780  ;;  %v771_v44 = vpop.f32.mrf.mxu1  ;;  %7968 = vmatmul.mubr.msk.f32.vlgmr.msra.gmra.mxu1 %vm617_vm2, %v8770_v46  ;;  %7975 = vmatmul.mubr.msk.f32.vlgmr.msra.gmra.mxu0 %vm617_vm2, %v1645_v41 }
 0x1ad   : > { %v772_v45 = vadd.f32 %v771_v44, %v690_v28  ;;  %7977 = vmatprep.subr.mxu1 %v8560_v12  ;;  %v852_v20 = vpop.f32.mrf.mxu0  ;;  %7981 = vmatprep.mubr.msk.f32.mxu1 %vm617_vm2, %v8775_v48 }
 0x1ae   : > { %v8903_v21 = vrot.slane %v8890_v42, %v8887_v39  ;;  %7978 = vmatpush3.msra.mxu1 %v8560_v12  ;;  %7985 = vmatpush3.msra.mxu0 %v8574_v14  ;;  %v931_v41 = vcombine.high %v8890_v42, %v8890_v42 }
 0x1af   : > { %v861_v22 = vadd.f32 %v852_v20, %v772_v45  ;;  %7988 = vmatprep.mubr.msk.f32.mxu0 %vm617_vm2, %v8786_v50  ;;  %7979 = vmatprep.subr.mxu1 %v8567_v13  ;;  %v8910_v46 = vpop.permute.xlu1 %5782  ;;  %v8925_v50 = vsub.s32 0, %v869_v27 }
 0x1b0   : > { %v954_v48 = vrot.slane %v8903_v21, %v8887_v39  ;;  %7986 = vmatprep.subr.mxu0 %v8610_v29  ;;  %7980 = vmatpush3.msra.mxu1 %v8567_v13  ;;  %v2074_v26 = vpop.permute.xlu0 %2073  ;;  %v946_v44 = vcombine.high %v8903_v21, %v8903_v21 }
 0x1b1   : > { %v864_v24 = vcombine.high %v861_v22, %v861_v22  ;;  %v871_v25 = vrot.slane %v861_v22, %v8887_v39  ;;  %7987 = vmatpush3.msra.mxu0 %v8610_v29  ;;  %7982 = vmatmul.mubr.msk.f32.vlgmr.msra.gmra.mxu1 %vm617_vm2, %v8784_v49 }
 0x1b2   : > { %7989 = vmatmul.mubr.msk.f32.vlgmr.msra.gmra.mxu0 %vm617_vm2, %v8792_v51  ;;  %7991 = vmatprep.subr.mxu1 %v8580_v15  ;;  %v976_v49 = vcombine.high %v954_v48, %v954_v48 }
 0x1b3   : > { %v878_v28 = vrot.slane %v864_v24, %v8887_v39  ;;  %v879_v30 = vcombine.high %v871_v25, %v871_v25  ;;  %v887_v31 = vrot.slane %v871_v25, %v8887_v39  ;;  %7998 = vmatprep.subr.mxu0 %v8560_v12  ;;  %7992 = vmatpush3.msra.mxu1 %v8580_v15  ;;  %v2076_v40 = vpop.permute.xlu1 %2075 }
 0x1b4   : > { %7995 = vmatprep.mubr.msk.f32.mxu1 %vm617_vm2, %v2074_v26  ;;  %7999 = vmatpush3.msra.mxu0 %v8560_v12  ;;  %v2505_v21 = vpop.permute.xlu0 %2504  ;;  %v945_v24 = vrot.slane %v931_v41, %v8887_v39 }
 0x1b5   : > { %v880_v51 = vcombine.high %v878_v28, %v878_v28  ;;  %v894_v33 = vrot.slane %v878_v28, %v8887_v39  ;;  %v901_v27 = vrot.slane %v879_v30, %v8887_v39  ;;  %v909_v35 = vcombine.high %v887_v31, %v887_v31  ;;  %8002 = vmatprep.mubr.msk.f32.mxu0 %vm617_vm2, %v8794_v52 }
 0x1b6   : > { %922 = vst.msk [vmem:[%s8937_s25] sm:$0x1] %vm921_vm3, %v887_v31  ;;  %7993 = vmatprep.subr.mxu1 %v8586_v16  ;;  %8000 = vmatprep.subr.mxu0 %v8567_v13  ;;  %v983_v52 = vrot.slane %v954_v48, %v8925_v50  ;;  %v991_v48 = vrot.slane %v976_v49, %v8925_v50 }
 0x1b7   : > { %v908_v45 = vrot.slane %v880_v51, %v8887_v39  ;;  %v910_v20 = vcombine.high %v894_v33, %v894_v33  ;;  %v911_v22 = vcombine.high %v901_v27, %v901_v27  ;;  %8001 = vmatpush3.msra.mxu0 %v8567_v13  ;;  %7994 = vmatpush3.msra.mxu1 %v8586_v16  ;;  %v2507_v25 = vpop.permute.xlu1 %2506 }
 0x1b8   : > { %923 = vst.msk [vmem:[%s8937_s25 + $0x10] sm:$0x1] %vm921_vm3, %v901_v27  ;;  %924 = vst.msk [vmem:[%s8937_s25 + $0x20] sm:$0x1] %vm921_vm3, %v909_v35  ;;  %7996 = vmatmul.mubr.msk.f32.vlgmr.msra.gmra.mxu1 %vm617_vm2, %v2076_v40  ;;  %8003 = vmatmul.mubr.msk.f32.vlgmr.msra.gmra.mxu0 %vm617_vm2, %v8800_v53  ;;  %v968_v53 = vrot.slane %v946_v44, %v8887_v39  ;;  %v2936_v28 = vpop.permute.xlu0 %2935  ;;  %v947_v49 = vcombine.high %v945_v24, %v945_v24 }
 0x1b9   : > { %926 = vst.msk [vmem:[%s8937_s25 + $0x40] sm:$0x1] %vm921_vm3, %v894_v33  ;;  %v912_v42 = vcombine.high %v908_v45, %v908_v45  ;;  %8005 = vmatprep.subr.mxu1 %v8574_v14  ;;  %8012 = vmatprep.subr.mxu0 %v8580_v15  ;;  %925 = vst.msk [vmem:[%s8937_s25 + $0x30] sm:$0x1] %vm921_vm3, %v911_v22 }
 0x1ba   : > { %927 = vst.msk [vmem:[%s8937_s25 + $0x50] sm:$0x1] %vm921_vm3, %v908_v45  ;;  %928 = vst.msk [vmem:[%s8937_s25 + $0x60] sm:$0x1] %vm921_vm3, %v910_v20  ;;  %1012 = vrot.lane.b32.xlu1 %v983_v52, %s8410_s21  ;;  %8006 = vmatpush3.msra.mxu1 %v8574_v14  ;;  %v987_v26 = vrot.slane %v968_v53, %v8925_v50  ;;  %v978_v30 = vcombine.high %v968_v53, %v968_v53 }
 0x1bb   : > { %8009 = vmatprep.mubr.msk.f32.mxu1 %vm617_vm2, %v8802_v54  ;;  %8013 = vmatpush3.msra.mxu0 %v8580_v15  ;;  %929 = vst.msk [vmem:[%s8937_s25 + $0x70] sm:$0x1] %vm921_vm3, %v912_v42  ;;  %v961_v54 = vrot.slane %v945_v24, %v8887_v39  ;;  %v9002_v31 = vpop.permute.xlu1 %5865 }
 0x1bc   : > { %8016 = vmatprep.mubr.msk.f32.mxu0 %vm617_vm2, %v2505_v21  ;;  %8007 = vmatprep.subr.mxu1 %v8610_v29  ;;  %v3367_v51 = vpop.permute.xlu0 %3366 }
 0x1bd   : > { %8014 = vmatprep.subr.mxu0 %v8586_v16  ;;  %1016 = vrot.lane.b32.xlu0 %v991_v48, %s8410_s21 }
 0x1be   : > { %8015 = vmatpush3.msra.mxu0 %v8586_v16  ;;  %8008 = vmatpush3.msra.mxu1 %v8610_v29 }
 0x1bf   : > { %8010 = vmatmul.mubr.msk.f32.vlgmr.msra.gmra.mxu1 %vm617_vm2, %v8808_v55  ;;  %8017 = vmatmul.mubr.msk.f32.vlgmr.msra.gmra.mxu0 %vm617_vm2, %v2507_v25  ;;  %v999_v55 = vrot.slane %v961_v54, %v8925_v50 }
 0x1c0   : > { %8019 = vmatprep.subr.mxu1 %v8560_v12  ;;  %8026 = vmatprep.subr.mxu0 %v8574_v14  ;;  %v3798_v27 = vpop.permute.xlu0 %3797 }
 0x1c1   : > { %1014 = vrot.lane.b32.xlu1 %v987_v26, %s8410_s21  ;;  %8020 = vmatpush3.msra.mxu1 %v8560_v12 }
 0x1c2   : > { %8023 = vmatprep.mubr.msk.f32.mxu1 %vm617_vm2, %v8810_v56  ;;  %8027 = vmatpush3.msra.mxu0 %v8574_v14  ;;  %v977_v56 = vcombine.high %v961_v54, %v961_v54 }
 0x1c3   : > { %8030 = vmatprep.mubr.msk.f32.mxu0 %vm617_vm2, %v8818_v58  ;;  %8021 = vmatprep.subr.mxu1 %v8567_v13  ;;  %v995_v58 = vrot.slane %v978_v30, %v8925_v50 }
 0x1c4   : > { %8028 = vmatprep.subr.mxu0 %v8610_v29  ;;  %1020 = vrot.lane.b32.xlu0 %v999_v55, %s8410_s21  ;;  %v1007_v33 = vrot.slane %v977_v56, %v8925_v50 }
 0x1c5   : > { %8029 = vmatpush3.msra.mxu0 %v8610_v29  ;;  %8022 = vmatpush3.msra.mxu1 %v8567_v13 }
 0x1c6   : > { %8024 = vmatmul.mubr.msk.f32.vlgmr.msra.gmra.mxu1 %vm617_vm2, %v8816_v57  ;;  %8031 = vmatmul.mubr.msk.f32.vlgmr.msra.gmra.mxu0 %vm617_vm2, %v8824_v59  ;;  %v975_v57 = vrot.slane %v947_v49, %v8887_v39  ;;  %v2938_v59 = vpop.permute.xlu1 %2937 }
 0x1c7   : > { %8033 = vmatprep.subr.mxu1 %v8580_v15  ;;  %8040 = vmatprep.subr.mxu0 %v8560_v12 }
 0x1c8   : > { %1018 = vrot.lane.b32.xlu1 %v995_v58, %s8410_s21  ;;  %8034 = vmatpush3.msra.mxu1 %v8580_v15  ;;  %v1003_v35 = vrot.slane %v975_v57, %v8925_v50 }
 0x1c9   : > { %8037 = vmatprep.mubr.msk.f32.mxu1 %vm617_vm2, %v2936_v28  ;;  %8041 = vmatpush3.msra.mxu0 %v8560_v12 }
 0x1ca   : > { %8044 = vmatprep.mubr.msk.f32.mxu0 %vm617_vm2, %v8826_v60  ;;  %8035 = vmatprep.subr.mxu1 %v8586_v16  ;;  %v979_v60 = vcombine.high %v975_v57, %v975_v57  ;;  %v3369_v40 = vpop.permute.xlu1 %3368 }
 0x1cb   : > { %8042 = vmatprep.subr.mxu0 %v8567_v13  ;;  %1024 = vrot.lane.b32.xlu0 %v1007_v33, %s8410_s21 }
 0x1cc   : > { %8043 = vmatpush3.msra.mxu0 %v8567_v13  ;;  %8036 = vmatpush3.msra.mxu1 %v8586_v16 }
 0x1cd   : > { %8038 = vmatmul.mubr.msk.f32.vlgmr.msra.gmra.mxu1 %vm617_vm2, %v2938_v59  ;;  %8045 = vmatmul.mubr.msk.f32.vlgmr.msra.gmra.mxu0 %vm617_vm2, %v8832_v61  ;;  %v9040_v61 = vpop.permute.xlu0 %4653 }
 0x1ce   : > { %8047 = vmatprep.subr.mxu1 %v8574_v14  ;;  %8054 = vmatprep.subr.mxu0 %v8580_v15  ;;  %v9054_v41 = vpop.permute.xlu1 %6213 }
 0x1cf   : > { %1022 = vrot.lane.b32.xlu1 %v1003_v35, %s8410_s21  ;;  %8048 = vmatpush3.msra.mxu1 %v8574_v14 }
 0x1d0   : > { %8051 = vmatprep.mubr.msk.f32.mxu1 %vm617_vm2, %v8834_v62  ;;  %8055 = vmatpush3.msra.mxu0 %v8580_v15  ;;  %v1011_v62 = vrot.slane %v979_v60, %v8925_v50 }
 0x1d1   : > { %8058 = vmatprep.mubr.msk.f32.mxu0 %vm617_vm2, %v3367_v51  ;;  %8049 = vmatprep.subr.mxu1 %v8610_v29 }
 0x1d2   : > { %8056 = vmatprep.subr.mxu0 %v8586_v16  ;;  %8050 = vmatpush3.msra.mxu1 %v8610_v29 }
 0x1d3   : > { %8057 = vmatpush3.msra.mxu0 %v8586_v16  ;;  %8052 = vmatmul.mubr.msk.f32.vlgmr.msra.gmra.mxu1 %vm617_vm2, %v8840_v63  ;;  %v9061_v63 = vpop.permute.xlu0 %5084 }
 0x1d4   : > { %8059 = vmatmul.mubr.msk.f32.vlgmr.msra.gmra.mxu0 %vm617_vm2, %v3369_v40  ;;  %8061 = vmatprep.subr.mxu1 %v8560_v12 }
 0x1d5   : > { %8068 = vmatprep.subr.mxu0 %v8574_v14  ;;  %1026 = vrot.lane.b32.xlu1 %v1011_v62, %s8410_s21 }
 0x1d6   : > { %8062 = vmatpush3.msra.mxu1 %v8560_v12  ;;  %8065 = vmatprep.mubr.msk.f32.mxu1 %vm617_vm2, %v8842_v0  ;;  %v3800_v0 = vpop.permute.xlu1 %3799 }
 0x1d7   : > { %8069 = vmatpush3.msra.mxu0 %v8574_v14  ;;  %8072 = vmatprep.mubr.msk.f32.mxu0 %vm617_vm2, %v8850_v2 }
 0x1d8   : > { %8063 = vmatprep.subr.mxu1 %v8567_v13  ;;  %8070 = vmatprep.subr.mxu0 %v8610_v29 }
 0x1d9   : > { %8071 = vmatpush3.msra.mxu0 %v8610_v29  ;;  %8064 = vmatpush3.msra.mxu1 %v8567_v13 }
 0x1da   : > { %8066 = vmatmul.mubr.msk.f32.vlgmr.msra.gmra.mxu1 %vm617_vm2, %v8848_v1  ;;  %8073 = vmatmul.mubr.msk.f32.vlgmr.msra.gmra.mxu0 %vm617_vm2, %v8854_v3  ;;  %v9078_v1 = vpop.permute.xlu0 %5515 }
 0x1db   : > { %8075 = vmatprep.subr.mxu1 %v8580_v15  ;;  %8082 = vmatprep.subr.mxu0 %v8560_v12 }
 0x1dc   : > { %8076 = vmatpush3.msra.mxu1 %v8580_v15  ;;  %8079 = vmatprep.mubr.msk.f32.mxu1 %vm617_vm2, %v3798_v27 }
 0x1dd   : > { %8083 = vmatpush3.msra.mxu0 %v8560_v12  ;;  %8086 = vmatprep.mubr.msk.f32.mxu0 %vm617_vm2, %v8666_v34  ;;  %v9090_v34 = vpop.permute.xlu1 %6296 }
 0x1de   : > { %8077 = vmatprep.subr.mxu1 %v8586_v16  ;;  %8084 = vmatprep.subr.mxu0 %v8567_v13 }
 0x1df   : > { %8085 = vmatpush3.msra.mxu0 %v8567_v13  ;;  %8078 = vmatpush3.msra.mxu1 %v8586_v16 }
 0x1e0   : > { %8080 = vmatmul.mubr.msk.f32.vlgmr.msra.gmra.mxu1 %vm617_vm2, %v3800_v0  ;;  %8087 = vmatmul.mubr.msk.f32.vlgmr.msra.gmra.mxu0 %vm617_vm2, %v8672_v36  ;;  %v9097_v36 = vpop.permute.xlu0 %5863 }
 0x1e1   : > { %8089 = vmatprep.subr.mxu1 %v8574_v14  ;;  %8096 = vmatprep.subr.mxu0 %v8580_v15 }
 0x1e2   : > { %8090 = vmatpush3.msra.mxu1 %v8574_v14  ;;  %8093 = vmatprep.mubr.msk.f32.mxu1 %vm617_vm2, %v8676_v37 }
 0x1e3   : > { %8097 = vmatpush3.msra.mxu0 %v8580_v15  ;;  %8100 = vmatprep.mubr.msk.f32.mxu0 %vm617_vm2, %v8621_v32  ;;  %v9110_v32 = vpop.permute.xlu1 %6644 }
 0x1e4   : > { %8091 = vmatprep.subr.mxu1 %v8610_v29  ;;  %8098 = vmatprep.subr.mxu0 %v8586_v16  ;;  %v9117_v37 = vpop.permute.xlu0 %5946 }
 0x1e5   : > { %8099 = vmatpush3.msra.mxu0 %v8586_v16  ;;  %8092 = vmatpush3.msra.mxu1 %v8610_v29 }
 0x1e6   : > { %8094 = vmatmul.mubr.msk.f32.vlgmr.msra.gmra.mxu1 %vm617_vm2, %v8684_v38  ;;  %8101 = vmatmul.mubr.msk.f32.vlgmr.msra.gmra.mxu0 %vm617_vm2, %v8773_v47 }
 0x1e7   : > { %8103 = vmatprep.subr.mxu1 %v8560_v12  ;;  %8110 = vmatprep.subr.mxu0 %v8574_v14  ;;  %v4656_v38 = vpop.permute.xlu1 %4655 }
 0x1e8   : > { %8104 = vmatpush3.msra.mxu1 %v8560_v12  ;;  %8107 = vmatprep.mubr.msk.f32.mxu1 %vm617_vm2, %v8856_v4  ;;  %v9135_v47 = vpop.permute.xlu0 %6211 }
 0x1e9   : > { %8111 = vmatpush3.msra.mxu0 %v8574_v14  ;;  %8114 = vmatprep.mubr.msk.f32.mxu0 %vm617_vm2, %v8860_v6 }
 0x1ea   : > { %8105 = vmatprep.subr.mxu1 %v8567_v13  ;;  %8112 = vmatprep.subr.mxu0 %v8610_v29 }
 0x1eb   : > { %8113 = vmatpush3.msra.mxu0 %v8610_v29  ;;  %8106 = vmatpush3.msra.mxu1 %v8567_v13  ;;  %v5087_v2 = vpop.permute.xlu1 %5086 }
 0x1ec   : > { %8108 = vmatmul.mubr.msk.f32.vlgmr.msra.gmra.mxu1 %vm617_vm2, %v8858_v5  ;;  %8115 = vmatmul.mubr.msk.f32.vlgmr.msra.gmra.mxu0 %vm617_vm2, %v8862_v7  ;;  %v6295_v3 = vpop.permute.xlu0 %6294 }
 0x1ed   : > { %8117 = vmatprep.subr.mxu1 %v8580_v15  ;;  %8124 = vmatprep.subr.mxu0 %v8560_v12 }
 0x1ee   : > { %8118 = vmatpush3.msra.mxu1 %v8580_v15  ;;  %8121 = vmatprep.mubr.msk.f32.mxu1 %vm617_vm2, %v9040_v61 }
 0x1ef   : > { %8125 = vmatpush3.msra.mxu0 %v8560_v12  ;;  %8128 = vmatprep.mubr.msk.f32.mxu0 %vm617_vm2, %v8864_v8  ;;  %v9162_v4 = vpop.permute.xlu1 %6727 }
 0x1f0   : > { %8119 = vmatprep.subr.mxu1 %v8586_v16  ;;  %8126 = vmatprep.subr.mxu0 %v8567_v13  ;;  %v6378_v5 = vpop.permute.xlu0 %6377 }
 0x1f1   : > { %8127 = vmatpush3.msra.mxu0 %v8567_v13  ;;  %8120 = vmatpush3.msra.mxu1 %v8586_v16 }
 0x1f2   : > { %8122 = vmatmul.mubr.msk.f32.vlgmr.msra.gmra.mxu1 %vm617_vm2, %v4656_v38  ;;  %8129 = vmatmul.mubr.msk.f32.vlgmr.msra.gmra.mxu0 %vm617_vm2, %v8866_v9 }
 0x1f3   : > { %8131 = vmatprep.subr.mxu1 %v8574_v14  ;;  %8138 = vmatprep.subr.mxu0 %v8580_v15  ;;  %v5518_v6 = vpop.permute.xlu1 %5517 }
 0x1f4   : > { %8132 = vmatpush3.msra.mxu1 %v8574_v14  ;;  %8135 = vmatprep.mubr.msk.f32.mxu1 %vm617_vm2, %v8868_v10  ;;  %v6643_v7 = vpop.permute.xlu0 %6642 }
 0x1f5   : > { %8139 = vmatpush3.msra.mxu0 %v8580_v15  ;;  %8142 = vmatprep.mubr.msk.f32.mxu0 %vm617_vm2, %v9061_v63 }
 0x1f6   : > { %8133 = vmatprep.subr.mxu1 %v8610_v29  ;;  %8140 = vmatprep.subr.mxu0 %v8586_v16 }
 0x1f7   : > { %8141 = vmatpush3.msra.mxu0 %v8586_v16  ;;  %8134 = vmatpush3.msra.mxu1 %v8610_v29  ;;  %v5949_v8 = vpop.permute.xlu1 %5948 }
 0x1f8   : > { %8136 = vmatmul.mubr.msk.f32.vlgmr.msra.gmra.mxu1 %vm617_vm2, %v8870_v11  ;;  %8143 = vmatmul.mubr.msk.f32.vlgmr.msra.gmra.mxu0 %vm617_vm2, %v5087_v2  ;;  %v6726_v9 = vpop.permute.xlu0 %6725 }
 0x1f9   : > { %8145 = vmatprep.subr.mxu1 %v8560_v12  ;;  %8152 = vmatprep.subr.mxu0 %v8574_v14 }
 0x1fa   : > { %8146 = vmatpush3.msra.mxu1 %v8560_v12  ;;  %8149 = vmatprep.mubr.msk.f32.mxu1 %vm617_vm2, %v8872_v17 }
 0x1fb   : > { %8153 = vmatpush3.msra.mxu0 %v8574_v14  ;;  %8156 = vmatprep.mubr.msk.f32.mxu0 %vm617_vm2, %v8876_v19  ;;  %v7076_v10 = vpop.permute.xlu1 %7075 }
 0x1fc   : > { %8147 = vmatprep.subr.mxu1 %v8567_v13  ;;  %8154 = vmatprep.subr.mxu0 %v8610_v29  ;;  %v6809_v11 = vpop.permute.xlu0 %6808 }
 0x1fd   : > { %8155 = vmatpush3.msra.mxu0 %v8610_v29  ;;  %8148 = vmatpush3.msra.mxu1 %v8567_v13 }
 0x1fe   : > { %8150 = vmatmul.mubr.msk.f32.vlgmr.msra.gmra.mxu1 %vm617_vm2, %v8874_v18  ;;  %8157 = vmatmul.mubr.msk.f32.vlgmr.msra.gmra.mxu0 %vm617_vm2, %v8878_v23  ;;  %v8321_v18 = vld [vmem:[%s10366_s7] sm:$0xff] }
 0x1ff   : > { %8159 = vmatprep.subr.mxu1 %v8580_v15  ;;  %8166 = vmatprep.subr.mxu0 %v8560_v12 }
 0x200   : > { %8160 = vmatpush3.msra.mxu1 %v8580_v15  ;;  %8163 = vmatprep.mubr.msk.f32.mxu1 %vm617_vm2, %v9078_v1  ;;  %v7074_v17 = vpop.permute.xlu0 %7073 }
 0x201   : > { %8167 = vmatpush3.msra.mxu0 %v8560_v12  ;;  %8170 = vmatprep.mubr.msk.f32.mxu0 %vm617_vm2, %v8892_v43 }
 0x202   : > { %8161 = vmatprep.subr.mxu1 %v8586_v16  ;;  %8168 = vmatprep.subr.mxu0 %v8567_v13 }
 0x203   : > { %8169 = vmatpush3.msra.mxu0 %v8567_v13  ;;  %8162 = vmatpush3.msra.mxu1 %v8586_v16 }
 0x204   : > { %8164 = vmatmul.mubr.msk.f32.vlgmr.msra.gmra.mxu1 %vm617_vm2, %v5518_v6  ;;  %8171 = vmatmul.mubr.msk.f32.vlgmr.msra.gmra.mxu0 %vm617_vm2, %v8910_v46  ;;  %v7157_v23 = vpop.permute.xlu0 %7156  ;;  %v8324_v46 = vld [vmem:[%s10364_s5] sm:$0xff] }
 0x205   : > { %8173 = vmatprep.subr.mxu1 %v8574_v14  ;;  %8180 = vmatprep.subr.mxu0 %v8580_v15 }
 0x206   : > { %8174 = vmatpush3.msra.mxu1 %v8574_v14  ;;  %8177 = vmatprep.mubr.msk.f32.mxu1 %vm617_vm2, %v9097_v36 }
 0x207   : > { %8181 = vmatpush3.msra.mxu0 %v8580_v15  ;;  %8184 = vmatprep.mubr.msk.f32.mxu0 %vm617_vm2, %v9117_v37 }
 0x208   : > { %8175 = vmatprep.subr.mxu1 %v8610_v29  ;;  %8182 = vmatprep.subr.mxu0 %v8586_v16 }
 0x209   : > { %8183 = vmatpush3.msra.mxu0 %v8586_v16  ;;  %8176 = vmatpush3.msra.mxu1 %v8610_v29 }
 0x20a   : > { %8178 = vmatmul.mubr.msk.f32.vlgmr.msra.gmra.mxu1 %vm617_vm2, %v9002_v31  ;;  %8185 = vmatmul.mubr.msk.f32.vlgmr.msra.gmra.mxu0 %vm617_vm2, %v5949_v8 }
 0x20b   : > { %8187 = vmatprep.subr.mxu1 %v8560_v12  ;;  %8194 = vmatprep.subr.mxu0 %v8574_v14 }
 0x20c   : > { %8188 = vmatpush3.msra.mxu1 %v8560_v12  ;;  %8191 = vmatprep.mubr.msk.f32.mxu1 %vm617_vm2, %v9135_v47  ;;  %v8319_v12 = vld [vmem:[%s10365_s6 + $0x8] sm:$0xff] }
 0x20d   : > { %8195 = vmatpush3.msra.mxu0 %v8574_v14  ;;  %8198 = vmatprep.mubr.msk.f32.mxu0 %vm617_vm2, %v6295_v3  ;;  %v6380_v14 = vpop.permute.xlu1 %6379 }
 0x20e   : > { %8189 = vmatprep.subr.mxu1 %v8567_v13  ;;  %8196 = vmatprep.subr.mxu0 %v8610_v29 }
 0x20f   : > { %8197 = vmatpush3.msra.mxu0 %v8610_v29  ;;  %8190 = vmatpush3.msra.mxu1 %v8567_v13  ;;  %v8320_v13 = vld [vmem:[%s10365_s6] sm:$0xff] }
 0x210   : > { %8192 = vmatmul.mubr.msk.f32.vlgmr.msra.gmra.mxu1 %vm617_vm2, %v9054_v41  ;;  %8199 = vmatmul.mubr.msk.f32.vlgmr.msra.gmra.mxu0 %vm617_vm2, %v9090_v34 }
 0x211   : > { %8201 = vmatprep.subr.mxu1 %v8580_v15  ;;  %8208 = vmatprep.subr.mxu0 %v8319_v12  ;;  %v6811_v19 = vpop.permute.xlu1 %6810 }
 0x212   : > { %8202 = vmatpush3.msra.mxu1 %v8580_v15  ;;  %8205 = vmatprep.mubr.msk.f32.mxu1 %vm617_vm2, %v6378_v5  ;;  %v8322_v15 = vld [vmem:[%s10364_s5 + $0x8] sm:$0xff] }
 0x213   : > { %8209 = vmatpush3.msra.mxu0 %v8319_v12  ;;  %8212 = vmatprep.mubr.msk.f32.mxu0 %vm617_vm2, %v6643_v7 }
 0x214   : > { %8203 = vmatprep.subr.mxu1 %v8586_v16  ;;  %8210 = vmatprep.subr.mxu0 %v8320_v13  ;;  %v8323_v16 = vld [vmem:[%s10366_s7 + $0x8] sm:$0xff] }
 0x215   : > { %8211 = vmatpush3.msra.mxu0 %v8320_v13  ;;  %8204 = vmatpush3.msra.mxu1 %v8321_v18  ;;  %v7159_v43 = vpop.permute.xlu1 %7158 }
 0x216   : > { %8206 = vmatmul.mubr.msk.f32.vlgmr.msra.gmra.mxu1 %vm617_vm2, %v6380_v14  ;;  %8213 = vmatmul.mubr.msk.f32.vlgmr.msra.gmra.mxu0 %vm617_vm2, %v9110_v32 }
 0x217   : > { %8215 = vmatprep.subr.mxu1 %v8322_v15  ;;  %8222 = vmatprep.subr.mxu0 %v8323_v16 }
 0x218   : > { %8216 = vmatpush3.msra.mxu1 %v8322_v15  ;;  %8219 = vmatprep.mubr.msk.f32.mxu1 %vm617_vm2, %v6726_v9  ;;  %v7941_v25 = vpop.f32.mrf.mxu1 }
 0x219   : > { %8223 = vmatpush3.msra.mxu0 %v8323_v16  ;;  %8226 = vmatprep.mubr.msk.f32.mxu0 %vm617_vm2, %v6809_v11  ;;  %v7242_v44 = vpop.permute.xlu1 %7241 }
 0x21a   : > { %8217 = vmatprep.subr.mxu1 %v8610_v29  ;;  %8224 = vmatprep.subr.mxu0 %v8321_v18  ;;  %v1119_v26 = vpop.f32.mrf.mxu1 }
 0x21b   : > { %8225 = vmatpush3.msra.mxu0 %v8321_v18  ;;  %8218 = vmatpush3.msra.mxu1 %v8610_v29  ;;  %v7240_v29 = vpop.permute.xlu0 %7239 }
 0x21c   : > { %8220 = vmatmul.mubr.msk.f32.vlgmr.msra.gmra.mxu1 %vm617_vm2, %v9162_v4  ;;  %8227 = vmatmul.mubr.msk.f32.vlgmr.msra.gmra.mxu0 %vm617_vm2, %v6811_v19  ;;  %v7948_v53 = vpop.f32.mrf.mxu0 }
 0x21d   : > { %8229 = vmatprep.subr.mxu1 %v8319_v12  ;;  %8236 = vmatprep.subr.mxu0 %v8322_v15  ;;  %v1208_v55 = vadd.f32 %v7948_v53, %v7941_v25 }
 0x21e   : > { %8230 = vmatpush3.msra.mxu1 %v8319_v12  ;;  %8233 = vmatprep.mubr.msk.f32.mxu1 %vm617_vm2, %v7074_v17  ;;  %v1202_v54 = vpop.f32.mrf.mxu0 }
 0x21f   : > { %8237 = vmatpush3.msra.mxu0 %v8322_v15  ;;  %8240 = vmatprep.mubr.msk.f32.mxu0 %vm617_vm2, %v7157_v23  ;;  %v1203_v31 = vadd.f32 %v1202_v54, %v1119_v26 }
 0x220   : > { %8231 = vmatprep.subr.mxu1 %v8320_v13  ;;  %8238 = vmatprep.subr.mxu0 %v8324_v46 }
 0x221   : > { %8239 = vmatpush3.msra.mxu0 %v8324_v46  ;;  %8232 = vmatpush3.msra.mxu1 %v8320_v13  ;;  %v7962_v28 = vpop.f32.mrf.mxu0 }
 0x222   : > { %8234 = vmatmul.mubr.msk.f32.vlgmr.msra.gmra.mxu1 %vm617_vm2, %v7076_v10  ;;  %8241 = vmatmul.mubr.msk.f32.vlgmr.msra.gmra.mxu0 %vm617_vm2, %v7159_v43 }
 0x223   : > { %8243 = vmatprep.subr.mxu1 %v8323_v16  ;;  %8247 = vmatprep.mubr.msk.f32.mxu1 %vm617_vm2, %v7240_v29  ;;  %v1550_v56 = vpop.f32.mrf.mxu0 }
 0x224   : > { %8244 = vmatpush3.msra.mxu1 %v8323_v16 }
 0x225   : > { %8245 = vmatprep.subr.mxu1 %v8321_v18 }
 0x226   : > { %8246 = vmatpush3.msra.mxu1 %v8321_v18 }
 0x227   : > { %8248 = vmatmul.mubr.msk.f32.vlgmr.msra.gmra.mxu1 %vm617_vm2, %v7242_v44 }
 0x22c   : > { %v1013_v52 = vpop.permute.xlu1 %1012 }
 0x22d   : > { %1037 = vst.msk [vmem:[%s8937_s25] sm:$0x1] %vm1036_vm4, %v1013_v52 }
 0x22f   : > { %v1017_v45 = vpop.permute.xlu0 %1016 }
 0x230   : > { %1039 = vst.msk [vmem:[%s8937_s25 + $0x20] sm:$0x1] %vm1036_vm4, %v1017_v45 }
 0x233   : > { %v1015_v20 = vpop.permute.xlu1 %1014 }
 0x234   : > { %1038 = vst.msk [vmem:[%s8937_s25 + $0x10] sm:$0x1] %vm1036_vm4, %v1015_v20 }
 0x236   : > { %v1021_v22 = vpop.permute.xlu0 %1020 }
 0x237   : > { %1041 = vst.msk [vmem:[%s8937_s25 + $0x40] sm:$0x1] %vm1036_vm4, %v1021_v22 }
 0x23a   : > { %v1019_v42 = vpop.permute.xlu1 %1018 }
 0x23b   : > { %1040 = vst.msk [vmem:[%s8937_s25 + $0x30] sm:$0x1] %vm1036_vm4, %v1019_v42 }
 0x23d   : > { %v1025_v21 = vpop.permute.xlu0 %1024 }
 0x23e   : > { %1043 = vst.msk [vmem:[%s8937_s25 + $0x60] sm:$0x1] %vm1036_vm4, %v1025_v21 }
 0x241   : > { %v1023_v48 = vpop.permute.xlu1 %1022 }
 0x242   : > { %1042 = vst.msk [vmem:[%s8937_s25 + $0x50] sm:$0x1] %vm1036_vm4, %v1023_v48 }
 0x247   : > { %v1027_v24 = vpop.permute.xlu1 %1026 }
 0x248   : > { %1044 = vst.msk [vmem:[%s8937_s25 + $0x70] sm:$0x1] %vm1036_vm4, %v1027_v24 }
 0x268   : > { %v7955_v30 = vpop.f32.mrf.mxu1 }
 0x269   : > { %v1295_v49 = vadd.f32 %v7955_v30, %v1208_v55 }
 0x26a   : > { %v1285_v51 = vpop.f32.mrf.mxu1 }
 0x26b   : > { %v1370_v58 = vrot.slane %v1295_v49, %v8887_v39  ;;  %v1294_v33 = vadd.f32 %v1285_v51, %v1203_v31  ;;  %v1363_v37 = vcombine.high %v1295_v49, %v1295_v49 }
 0x26c   : > { %v7969_v57 = vpop.f32.mrf.mxu1  ;;  %v7976_v59 = vpop.f32.mrf.mxu0 }
 0x26d   : > { %v9277_v27 = vrot.slane %v1370_v58, %v8887_v39  ;;  %v1297_v35 = vcombine.high %v1294_v33, %v1294_v33  ;;  %v1304_v60 = vrot.slane %v1294_v33, %v8887_v39  ;;  %v1378_v6 = vcombine.high %v1370_v58, %v1370_v58 }
 0x26e   : > { %v1633_v40 = vpop.f32.mrf.mxu1  ;;  %v1716_v61 = vpop.f32.mrf.mxu0  ;;  %v1639_v8 = vadd.f32 %v7969_v57, %v7962_v28  ;;  %v1377_v13 = vrot.slane %v1363_v37, %v8887_v39 }
 0x26f   : > { %v1311_v62 = vrot.slane %v1297_v35, %v8887_v39  ;;  %v1634_v41 = vadd.f32 %v1633_v40, %v1550_v56  ;;  %v1312_v63 = vcombine.high %v1304_v60, %v1304_v60  ;;  %v1320_v0 = vrot.slane %v1304_v60, %v8887_v39 }
 0x270   : > { %v1415_v1 = vrot.slane %v9277_v27, %v8925_v50  ;;  %v9312_v16 = vadd.f32 %v7976_v59, %v1639_v8  ;;  %v1400_v23 = vrot.slane %v1378_v6, %v8887_v39  ;;  %v1379_v20 = vcombine.high %v1377_v13, %v1377_v13 }
 0x271   : > { %v1313_v34 = vcombine.high %v1311_v62, %v1311_v62  ;;  %v1327_v36 = vrot.slane %v1311_v62, %v8887_v39  ;;  %v9285_v32 = vpop.f32.mrf.mxu1  ;;  %v1334_v38 = vrot.slane %v1312_v63, %v8887_v39  ;;  %v1342_v47 = vcombine.high %v1320_v0, %v1320_v0  ;;  %1354 = vst.msk [vmem:[%s8937_s25 + $0x1] sm:$0x1] %vm921_vm3, %v1320_v0 }
 0x272   : > { %v9290_v2 = vpop.f32.mrf.mxu0  ;;  %1444 = vrot.lane.b32.xlu0 %v1415_v1, %s8410_s21  ;;  %v1725_v5 = vadd.f32 %v1716_v61, %v1634_v41  ;;  %v1419_v22 = vrot.slane %v1400_v23, %v8925_v50  ;;  %v1408_v42 = vcombine.high %v9277_v27, %v9277_v27  ;;  %v1410_v48 = vcombine.high %v1400_v23, %v1400_v23 }
 0x273   : > { %v1341_v3 = vrot.slane %v1313_v34, %v8887_v39  ;;  %v1343_v4 = vcombine.high %v1327_v36, %v1327_v36  ;;  %1358 = vst.msk [vmem:[%s8937_s25 + $0x41] sm:$0x1] %vm921_vm3, %v1327_v36  ;;  %v1344_v7 = vcombine.high %v1334_v38, %v1334_v38  ;;  %1355 = vst.msk [vmem:[%s8937_s25 + $0x11] sm:$0x1] %vm921_vm3, %v1334_v38  ;;  %v1981_v9 = vpop.f32.mrf.mxu1 }
 0x274   : > { %1356 = vst.msk [vmem:[%s8937_s25 + $0x21] sm:$0x1] %vm921_vm3, %v1342_v47  ;;  %v2064_v10 = vpop.f32.mrf.mxu0  ;;  %v1728_v12 = vcombine.high %v1725_v5, %v1725_v5  ;;  %v1735_v14 = vrot.slane %v1725_v5, %v8887_v39  ;;  %v1393_v28 = vrot.slane %v1377_v13, %v8887_v39  ;;  %1446 = vrot.lane.b32.xlu1 %v1419_v22, %s8410_s21 }
 0x275   : > { %v1345_v11 = vcombine.high %v1341_v3, %v1341_v3  ;;  %1359 = vst.msk [vmem:[%s8937_s25 + $0x51] sm:$0x1] %vm921_vm3, %v1341_v3  ;;  %1360 = vst.msk [vmem:[%s8937_s25 + $0x61] sm:$0x1] %vm921_vm3, %v1343_v4  ;;  %v2065_v19 = vadd.f32 %v2064_v10, %v1981_v9  ;;  %v1423_v55 = vrot.slane %v1408_v42, %v8925_v50 }
 0x276   : > { %1357 = vst.msk [vmem:[%s8937_s25 + $0x31] sm:$0x1] %vm921_vm3, %v1344_v7  ;;  %v1742_v17 = vrot.slane %v1728_v12, %v8887_v39  ;;  %v1743_v18 = vcombine.high %v1735_v14, %v1735_v14  ;;  %v1751_v15 = vrot.slane %v1735_v14, %v8887_v39  ;;  %v1801_v30 = vrot.slane %v9312_v16, %v8887_v39 }
 0x277   : > { %1361 = vst.msk [vmem:[%s8937_s25 + $0x71] sm:$0x1] %vm921_vm3, %v1345_v11  ;;  %v1407_v51 = vrot.slane %v1379_v20, %v8887_v39  ;;  %1448 = vrot.lane.b32.xlu0 %v1423_v55, %s8410_s21  ;;  %v1427_v58 = vrot.slane %v1410_v48, %v8925_v50  ;;  %v1409_v60 = vcombine.high %v1393_v28, %v1393_v28 }
 0x278   : > { %v9315_v43 = vpop.f32.mrf.mxu1  ;;  %v9317_v46 = vpop.f32.mrf.mxu0  ;;  %v1744_v29 = vcombine.high %v1742_v17, %v1742_v17  ;;  %v1758_v44 = vrot.slane %v1742_v17, %v8887_v39  ;;  %v1765_v52 = vrot.slane %v1743_v18, %v8887_v39  ;;  %v1773_v45 = vcombine.high %v1751_v15, %v1751_v15  ;;  %1785 = vst.msk [vmem:[%s8937_s25 + $0x2] sm:$0x1] %vm921_vm3, %v1751_v15 }
 0x279   : > { %v1794_v40 = vcombine.high %v9312_v16, %v9312_v16  ;;  %1450 = vrot.lane.b32.xlu1 %v1427_v58, %s8410_s21  ;;  %v1431_v61 = vrot.slane %v1393_v28, %v8925_v50  ;;  %v1809_v62 = vcombine.high %v1801_v30, %v1801_v30  ;;  %v1435_v37 = vrot.slane %v1407_v51, %v8925_v50 }
 0x27a   : > { %v2147_v21 = vpop.f32.mrf.mxu1  ;;  %v1772_v24 = vrot.slane %v1744_v29, %v8887_v39  ;;  %v1774_v53 = vcombine.high %v1758_v44, %v1758_v44  ;;  %v1775_v25 = vcombine.high %v1765_v52, %v1765_v52  ;;  %1786 = vst.msk [vmem:[%s8937_s25 + $0x12] sm:$0x1] %vm921_vm3, %v1765_v52  ;;  %1787 = vst.msk [vmem:[%s8937_s25 + $0x22] sm:$0x1] %vm921_vm3, %v1773_v45  ;;  %v2412_v26 = vpop.f32.mrf.mxu0 }
 0x27b   : > { %1789 = vst.msk [vmem:[%s8937_s25 + $0x42] sm:$0x1] %vm921_vm3, %v1758_v44  ;;  %v2156_v54 = vadd.f32 %v2147_v21, %v2065_v19  ;;  %1452 = vrot.lane.b32.xlu0 %v1431_v61, %s8410_s21  ;;  %v1817_v4 = vrot.slane %v1801_v30, %v8887_v39  ;;  %v1439_v6 = vrot.slane %v1409_v60, %v8925_v50 }
 0x27c   : > { %v1776_v31 = vcombine.high %v1772_v24, %v1772_v24  ;;  %1788 = vst.msk [vmem:[%s8937_s25 + $0x32] sm:$0x1] %vm921_vm3, %v1775_v25  ;;  %1790 = vst.msk [vmem:[%s8937_s25 + $0x52] sm:$0x1] %vm921_vm3, %v1772_v24  ;;  %v1411_v7 = vcombine.high %v1407_v51, %v1407_v51  ;;  %v1808_v8 = vrot.slane %v1794_v40, %v8887_v39 }
 0x27d   : > { %1791 = vst.msk [vmem:[%s8937_s25 + $0x62] sm:$0x1] %vm921_vm3, %v1774_v53  ;;  %v2159_v49 = vcombine.high %v2156_v54, %v2156_v54  ;;  %v2166_v56 = vrot.slane %v2156_v54, %v8887_v39  ;;  %1454 = vrot.lane.b32.xlu1 %v1435_v37, %s8410_s21  ;;  %v1831_v9 = vrot.slane %v1809_v62, %v8887_v39 }
 0x27e   : > { %1792 = vst.msk [vmem:[%s8937_s25 + $0x72] sm:$0x1] %vm921_vm3, %v1776_v31  ;;  %v1443_v13 = vrot.slane %v1411_v7, %v8925_v50  ;;  %v2070_v17 = vadd.f32 %v9290_v2, %v9285_v32  ;;  %v1839_v18 = vcombine.high %v1817_v4, %v1817_v4  ;;  %v1846_v15 = vrot.slane %v1817_v4, %v8925_v50 }
 0x27f   : > { %v2173_v33 = vrot.slane %v2159_v49, %v8887_v39  ;;  %v2174_v57 = vcombine.high %v2166_v56, %v2166_v56  ;;  %v2182_v59 = vrot.slane %v2166_v56, %v8887_v39  ;;  %v9352_v27 = vpop.f32.mrf.mxu1  ;;  %v9354_v35 = vpop.f32.mrf.mxu0  ;;  %1456 = vrot.lane.b32.xlu0 %v1439_v6, %s8410_s21  ;;  %v1810_v23 = vcombine.high %v1808_v8, %v1808_v8 }
 0x280   : > { %v1841_v29 = vcombine.high %v1831_v9, %v1831_v9  ;;  %v2157_v44 = vadd.f32 %v9315_v43, %v2070_v17  ;;  %v1850_v22 = vrot.slane %v1831_v9, %v8925_v50  ;;  %v1824_v42 = vrot.slane %v1808_v8, %v8887_v39 }
 0x281   : > { %v2175_v41 = vcombine.high %v2173_v33, %v2173_v33  ;;  %v2189_v63 = vrot.slane %v2173_v33, %v8887_v39  ;;  %v2196_v0 = vrot.slane %v2174_v57, %v8887_v39  ;;  %2216 = vst.msk [vmem:[%s8937_s25 + $0x3] sm:$0x1] %vm921_vm3, %v2182_v59  ;;  %v2495_v1 = vpop.f32.mrf.mxu1  ;;  %v2204_v34 = vcombine.high %v2182_v59, %v2182_v59  ;;  %v2578_v36 = vpop.f32.mrf.mxu0 }
 0x282   : > { %v2496_v5 = vadd.f32 %v2495_v1, %v2412_v26  ;;  %1458 = vrot.lane.b32.xlu1 %v1443_v13, %s8410_s21  ;;  %v1854_v24 = vrot.slane %v1839_v18, %v8925_v50  ;;  %v1838_v53 = vrot.slane %v1810_v23, %v8887_v39  ;;  %v2232_v25 = vrot.slane %v2157_v44, %v8887_v39 }
 0x283   : > { %v2203_v38 = vrot.slane %v2175_v41, %v8887_v39  ;;  %v2205_v47 = vcombine.high %v2189_v63, %v2189_v63  ;;  %v2206_v3 = vcombine.high %v2196_v0, %v2196_v0  ;;  %2217 = vst.msk [vmem:[%s8937_s25 + $0x13] sm:$0x1] %vm921_vm3, %v2196_v0  ;;  %2220 = vst.msk [vmem:[%s8937_s25 + $0x43] sm:$0x1] %vm921_vm3, %v2189_v63  ;;  %1875 = vrot.lane.b32.xlu0 %v1846_v15, %s8410_s21 }
 0x284   : > { %2218 = vst.msk [vmem:[%s8937_s25 + $0x23] sm:$0x1] %vm921_vm3, %v2204_v34  ;;  %v2587_v11 = vadd.f32 %v2578_v36, %v2496_v5  ;;  %v1858_v55 = vrot.slane %v1841_v29, %v8925_v50  ;;  %v1840_v58 = vcombine.high %v1824_v42, %v1824_v42  ;;  %v1862_v60 = vrot.slane %v1824_v42, %v8925_v50 }
 0x285   : > { %v2207_v10 = vcombine.high %v2203_v38, %v2203_v38  ;;  %2219 = vst.msk [vmem:[%s8937_s25 + $0x33] sm:$0x1] %vm921_vm3, %v2206_v3  ;;  %2221 = vst.msk [vmem:[%s8937_s25 + $0x53] sm:$0x1] %vm921_vm3, %v2203_v38  ;;  %v2225_v40 = vcombine.high %v2157_v44, %v2157_v44  ;;  %v2240_v61 = vcombine.high %v2232_v25, %v2232_v25 }
 0x286   : > { %2222 = vst.msk [vmem:[%s8937_s25 + $0x63] sm:$0x1] %vm921_vm3, %v2205_v47  ;;  %v9384_v12 = vpop.f32.mrf.mxu1  ;;  %v9386_v14 = vpop.f32.mrf.mxu0  ;;  %v2590_v16 = vcombine.high %v2587_v11, %v2587_v11  ;;  %v2597_v19 = vrot.slane %v2587_v11, %v8887_v39  ;;  %1877 = vrot.lane.b32.xlu1 %v1850_v22, %s8410_s21  ;;  %v1866_v41 = vrot.slane %v1838_v53, %v8925_v50 }
 0x287   : > { %2223 = vst.msk [vmem:[%s8937_s25 + $0x73] sm:$0x1] %vm921_vm3, %v2207_v10  ;;  %1879 = vrot.lane.b32.xlu0 %v1854_v24, %s8410_s21  ;;  %v1842_v63 = vcombine.high %v1838_v53, %v1838_v53  ;;  %v2248_v34 = vrot.slane %v2232_v25, %v8887_v39  ;;  %v1870_v37 = vrot.slane %v1840_v58, %v8925_v50 }
 0x288   : > { %v2843_v52 = vpop.f32.mrf.mxu1  ;;  %v2926_v45 = vpop.f32.mrf.mxu0  ;;  %v2604_v20 = vrot.slane %v2590_v16, %v8887_v39  ;;  %v2605_v32 = vcombine.high %v2597_v19, %v2597_v19  ;;  %v2613_v2 = vrot.slane %v2597_v19, %v8887_v39  ;;  %v2239_v38 = vrot.slane %v2225_v40, %v8887_v39 }
 0x289   : > { %v2927_v56 = vadd.f32 %v2926_v45, %v2843_v52  ;;  %v2262_v6 = vrot.slane %v2240_v61, %v8887_v39  ;;  %v2501_v7 = vadd.f32 %v9352_v27, %v9317_v46  ;;  %v1874_v9 = vrot.slane %v1842_v63, %v8925_v50 }
 0x28a   : > { %v2606_v21 = vcombine.high %v2604_v20, %v2604_v20  ;;  %v2620_v48 = vrot.slane %v2604_v20, %v8887_v39  ;;  %v2627_v43 = vrot.slane %v2605_v32, %v8887_v39  ;;  %2647 = vst.msk [vmem:[%s8937_s25 + $0x4] sm:$0x1] %vm921_vm3, %v2613_v2  ;;  %v2635_v54 = vcombine.high %v2613_v2, %v2613_v2 }
 0x28b   : > { %1881 = vrot.lane.b32.xlu1 %v1858_v55, %s8410_s21  ;;  %1883 = vrot.lane.b32.xlu0 %v1862_v60, %s8410_s21  ;;  %v2270_v18 = vcombine.high %v2248_v34, %v2248_v34  ;;  %v2277_v15 = vrot.slane %v2248_v34, %v8925_v50  ;;  %v2241_v27 = vcombine.high %v2239_v38, %v2239_v38 }
 0x28c   : > { %v2634_v30 = vrot.slane %v2606_v21, %v8887_v39  ;;  %v2636_v31 = vcombine.high %v2620_v48, %v2620_v48  ;;  %v2637_v49 = vcombine.high %v2627_v43, %v2627_v43  ;;  %2648 = vst.msk [vmem:[%s8937_s25 + $0x14] sm:$0x1] %vm921_vm3, %v2627_v43  ;;  %2651 = vst.msk [vmem:[%s8937_s25 + $0x44] sm:$0x1] %vm921_vm3, %v2620_v48 }
 0x28d   : > { %v9411_v26 = vpop.f32.mrf.mxu1  ;;  %v9413_v28 = vpop.f32.mrf.mxu0  ;;  %2649 = vst.msk [vmem:[%s8937_s25 + $0x24] sm:$0x1] %vm921_vm3, %v2635_v54  ;;  %v2272_v29 = vcombine.high %v2262_v6, %v2262_v6  ;;  %v2588_v44 = vadd.f32 %v9354_v35, %v2501_v7  ;;  %v2281_v32 = vrot.slane %v2262_v6, %v8925_v50  ;;  %v2255_v22 = vrot.slane %v2239_v38, %v8887_v39 }
 0x28e   : > { %v2638_v33 = vcombine.high %v2634_v30, %v2634_v30  ;;  %2650 = vst.msk [vmem:[%s8937_s25 + $0x34] sm:$0x1] %vm921_vm3, %v2637_v49  ;;  %2652 = vst.msk [vmem:[%s8937_s25 + $0x54] sm:$0x1] %vm921_vm3, %v2634_v30  ;;  %v2285_v48 = vrot.slane %v2270_v18, %v8925_v50  ;;  %v2269_v24 = vrot.slane %v2241_v27, %v8887_v39 }
 0x28f   : > { %v3009_v51 = vpop.f32.mrf.mxu1  ;;  %2653 = vst.msk [vmem:[%s8937_s25 + $0x64] sm:$0x1] %vm921_vm3, %v2636_v31  ;;  %v3274_v59 = vpop.f32.mrf.mxu0  ;;  %1885 = vrot.lane.b32.xlu1 %v1866_v41, %s8410_s21  ;;  %1887 = vrot.lane.b32.xlu0 %v1870_v37, %s8410_s21  ;;  %v2663_v53 = vrot.slane %v2588_v44, %v8887_v39  ;;  %v2289_v25 = vrot.slane %v2272_v29, %v8925_v50 }
 0x290   : > { %v3018_v57 = vadd.f32 %v3009_v51, %v2927_v56  ;;  %2654 = vst.msk [vmem:[%s8937_s25 + $0x74] sm:$0x1] %vm921_vm3, %v2638_v33  ;;  %v2271_v31 = vcombine.high %v2255_v22, %v2255_v22  ;;  %v2656_v49 = vcombine.high %v2588_v44, %v2588_v44  ;;  %v2293_v33 = vrot.slane %v2255_v22, %v8925_v50 }
 0x291   : > { %v2671_v61 = vcombine.high %v2663_v53, %v2663_v53  ;;  %v2297_v63 = vrot.slane %v2269_v24, %v8925_v50 }
 0x292   : > { %v3021_v62 = vcombine.high %v3018_v57, %v3018_v57  ;;  %v3028_v0 = vrot.slane %v3018_v57, %v8887_v39 }
 0x293   : > { %v9437_v1 = vpop.f32.mrf.mxu1  ;;  %1889 = vrot.lane.b32.xlu1 %v1874_v9, %s8410_s21  ;;  %2306 = vrot.lane.b32.xlu0 %v2277_v15, %s8410_s21  ;;  %v2693_v9 = vrot.slane %v2671_v61, %v8887_v39 }
 0x294   : > { %v9440_v36 = vpop.f32.mrf.mxu0  ;;  %v3035_v47 = vrot.slane %v3021_v62, %v8887_v39  ;;  %v3036_v3 = vcombine.high %v3028_v0, %v3028_v0  ;;  %v3044_v4 = vrot.slane %v3028_v0, %v8887_v39  ;;  %v2273_v0 = vcombine.high %v2269_v24, %v2269_v24 }
 0x295   : > { %v3357_v5 = vpop.f32.mrf.mxu1  ;;  %v2712_v22 = vrot.slane %v2693_v9, %v8925_v50 }
 0x296   : > { %v3440_v8 = vpop.f32.mrf.mxu0  ;;  %v3037_v10 = vcombine.high %v3035_v47, %v3035_v47  ;;  %v3051_v11 = vrot.slane %v3035_v47, %v8887_v39  ;;  %v3058_v13 = vrot.slane %v3036_v3, %v8887_v39  ;;  %v3066_v17 = vcombine.high %v3044_v4, %v3044_v4  ;;  %3078 = vst.msk [vmem:[%s8937_s25 + $0x5] sm:$0x1] %vm921_vm3, %v3044_v4 }
 0x297   : > { %v3358_v46 = vadd.f32 %v3357_v5, %v3274_v59  ;;  %2308 = vrot.lane.b32.xlu1 %v2281_v32, %s8410_s21  ;;  %2310 = vrot.lane.b32.xlu0 %v2285_v48, %s8410_s21  ;;  %v2670_v3 = vrot.slane %v2656_v49, %v8887_v39  ;;  %v2679_v4 = vrot.slane %v2663_v53, %v8887_v39 }
 0x298   : > { %v3065_v16 = vrot.slane %v3037_v10, %v8887_v39  ;;  %v3067_v19 = vcombine.high %v3051_v11, %v3051_v11  ;;  %v3068_v23 = vcombine.high %v3058_v13, %v3058_v13  ;;  %3079 = vst.msk [vmem:[%s8937_s25 + $0x15] sm:$0x1] %vm921_vm3, %v3058_v13  ;;  %3080 = vst.msk [vmem:[%s8937_s25 + $0x25] sm:$0x1] %vm921_vm3, %v3066_v17 }
 0x299   : > { %3082 = vst.msk [vmem:[%s8937_s25 + $0x45] sm:$0x1] %vm921_vm3, %v3051_v11  ;;  %v3449_v52 = vadd.f32 %v3440_v8, %v3358_v46  ;;  %v2301_v5 = vrot.slane %v2271_v31, %v8925_v50  ;;  %v2305_v13 = vrot.slane %v2273_v0, %v8925_v50  ;;  %v2932_v17 = vadd.f32 %v9386_v14, %v9384_v12 }
 0x29a   : > { %v9466_v45 = vpop.f32.mrf.mxu1  ;;  %v9468_v20 = vpop.f32.mrf.mxu0  ;;  %v3069_v2 = vcombine.high %v3065_v16, %v3065_v16  ;;  %3081 = vst.msk [vmem:[%s8937_s25 + $0x35] sm:$0x1] %vm921_vm3, %v3068_v23  ;;  %3083 = vst.msk [vmem:[%s8937_s25 + $0x55] sm:$0x1] %vm921_vm3, %v3065_v16  ;;  %v2672_v27 = vcombine.high %v2670_v3, %v2670_v3  ;;  %v2701_v16 = vcombine.high %v2679_v4, %v2679_v4 }
 0x29b   : > { %3084 = vst.msk [vmem:[%s8937_s25 + $0x65] sm:$0x1] %vm921_vm3, %v3067_v19  ;;  %v3452_v35 = vcombine.high %v3449_v52, %v3449_v52  ;;  %v3459_v43 = vrot.slane %v3449_v52, %v8887_v39  ;;  %2312 = vrot.lane.b32.xlu1 %v2289_v25, %s8410_s21  ;;  %2314 = vrot.lane.b32.xlu0 %v2293_v33, %s8410_s21 }
 0x29c   : > { %v3705_v42 = vpop.f32.mrf.mxu1  ;;  %v3788_v21 = vpop.f32.mrf.mxu0  ;;  %3085 = vst.msk [vmem:[%s8937_s25 + $0x75] sm:$0x1] %vm921_vm3, %v3069_v2  ;;  %v2708_v19 = vrot.slane %v2679_v4, %v8925_v50  ;;  %v3019_v12 = vadd.f32 %v9411_v26, %v2932_v17  ;;  %v2703_v32 = vcombine.high %v2693_v9, %v2693_v9  ;;  %v2716_v53 = vrot.slane %v2701_v16, %v8925_v50 }
 0x29d   : > { %v3466_v54 = vrot.slane %v3452_v35, %v8887_v39  ;;  %v3467_v55 = vcombine.high %v3459_v43, %v3459_v43  ;;  %v3475_v30 = vrot.slane %v3459_v43, %v8887_v39  ;;  %v3789_v56 = vadd.f32 %v3788_v21, %v3705_v42 }
 0x29e   : > { %v2686_v35 = vrot.slane %v2670_v3, %v8887_v39  ;;  %v2700_v25 = vrot.slane %v2672_v27, %v8887_v39 }
 0x29f   : > { %v3468_v57 = vcombine.high %v3466_v54, %v3466_v54  ;;  %v3482_v59 = vrot.slane %v3466_v54, %v8887_v39  ;;  %v3489_v60 = vrot.slane %v3467_v55, %v8887_v39  ;;  %v3497_v40 = vcombine.high %v3475_v30, %v3475_v30  ;;  %3509 = vst.msk [vmem:[%s8937_s25 + $0x6] sm:$0x1] %vm921_vm3, %v3475_v30 }
 0x2a0   : > { %v9490_v51 = vpop.f32.mrf.mxu1  ;;  %v9492_v58 = vpop.f32.mrf.mxu0  ;;  %2316 = vrot.lane.b32.xlu1 %v2297_v63, %s8410_s21  ;;  %2318 = vrot.lane.b32.xlu0 %v2301_v5, %s8410_s21  ;;  %v3094_v54 = vrot.slane %v3019_v12, %v8887_v39  ;;  %v2702_v33 = vcombine.high %v2686_v35, %v2686_v35 }
 0x2a1   : > { %v3496_v34 = vrot.slane %v3468_v57, %v8887_v39  ;;  %v3498_v37 = vcombine.high %v3482_v59, %v3482_v59  ;;  %v3499_v38 = vcombine.high %v3489_v60, %v3489_v60  ;;  %3510 = vst.msk [vmem:[%s8937_s25 + $0x16] sm:$0x1] %vm921_vm3, %v3489_v60  ;;  %3511 = vst.msk [vmem:[%s8937_s25 + $0x26] sm:$0x1] %vm921_vm3, %v3497_v40 }
 0x2a2   : > { %v3871_v62 = vpop.f32.mrf.mxu1  ;;  %v4134_v41 = vpop.f32.mrf.mxu0  ;;  %3513 = vst.msk [vmem:[%s8937_s25 + $0x46] sm:$0x1] %vm921_vm3, %v3482_v59  ;;  %v2724_v60 = vrot.slane %v2686_v35, %v8925_v50  ;;  %v3087_v40 = vcombine.high %v3019_v12, %v3019_v12  ;;  %v3102_v61 = vcombine.high %v3094_v54, %v3094_v54  ;;  %v2732_v4 = vrot.slane %v2702_v33, %v8925_v50 }
 0x2a3   : > { %v3880_v47 = vadd.f32 %v3871_v62, %v3789_v56  ;;  %v3500_v6 = vcombine.high %v3496_v34, %v3496_v34  ;;  %3512 = vst.msk [vmem:[%s8937_s25 + $0x36] sm:$0x1] %vm921_vm3, %v3499_v38  ;;  %3514 = vst.msk [vmem:[%s8937_s25 + $0x56] sm:$0x1] %vm921_vm3, %v3496_v34  ;;  %v2720_v56 = vrot.slane %v2703_v32, %v8925_v50 }
 0x2a4   : > { %3515 = vst.msk [vmem:[%s8937_s25 + $0x66] sm:$0x1] %vm921_vm3, %v3498_v37  ;;  %2320 = vrot.lane.b32.xlu1 %v2305_v13, %s8410_s21  ;;  %2737 = vrot.lane.b32.xlu0 %v2708_v19, %s8410_s21  ;;  %v2728_v62 = vrot.slane %v2700_v25, %v8925_v50  ;;  %v2704_v38 = vcombine.high %v2700_v25, %v2700_v25 }
 0x2a5   : > { %v3883_v7 = vcombine.high %v3880_v47, %v3880_v47  ;;  %v3890_v8 = vrot.slane %v3880_v47, %v8887_v39  ;;  %3516 = vst.msk [vmem:[%s8937_s25 + $0x76] sm:$0x1] %vm921_vm3, %v3500_v6  ;;  %v3110_v47 = vrot.slane %v3094_v54, %v8887_v39  ;;  %v3101_v17 = vrot.slane %v3087_v40, %v8887_v39 }
 0x2a6   : > { %v9521_v10 = vpop.f32.mrf.mxu1  ;;  %v9523_v11 = vpop.f32.mrf.mxu0 }
 0x2a7   : > { %v3897_v18 = vrot.slane %v3883_v7, %v8887_v39  ;;  %v3898_v15 = vcombine.high %v3890_v8, %v3890_v8  ;;  %v3906_v46 = vrot.slane %v3890_v8, %v8887_v39  ;;  %v3103_v32 = vcombine.high %v3101_v17, %v3101_v17 }
 0x2a8   : > { %v4215_v23 = vpop.f32.mrf.mxu1  ;;  %v4296_v29 = vpop.f32.mrf.mxu0  ;;  %2739 = vrot.lane.b32.xlu1 %v2712_v22, %s8410_s21  ;;  %2741 = vrot.lane.b32.xlu0 %v2716_v53, %s8410_s21  ;;  %v3117_v25 = vrot.slane %v3101_v17, %v8887_v39 }
 0x2a9   : > { %v3899_v14 = vcombine.high %v3897_v18, %v3897_v18  ;;  %v3913_v44 = vrot.slane %v3897_v18, %v8887_v39  ;;  %v3920_v52 = vrot.slane %v3898_v15, %v8887_v39  ;;  %3940 = vst.msk [vmem:[%s8937_s25 + $0x7] sm:$0x1] %vm921_vm3, %v3906_v46  ;;  %v3928_v2 = vcombine.high %v3906_v46, %v3906_v46 }
 0x2aa   : > { %v4216_v48 = vadd.f32 %v4215_v23, %v4134_v41  ;;  %v3124_v18 = vrot.slane %v3102_v61, %v8887_v39  ;;  %v3363_v15 = vadd.f32 %v9437_v1, %v9413_v28  ;;  %v2736_v23 = vrot.slane %v2704_v38, %v8925_v50 }
 0x2ab   : > { %v3927_v42 = vrot.slane %v3899_v14, %v8887_v39  ;;  %v3929_v26 = vcombine.high %v3913_v44, %v3913_v44  ;;  %v3930_v21 = vcombine.high %v3920_v52, %v3920_v52  ;;  %3941 = vst.msk [vmem:[%s8937_s25 + $0x17] sm:$0x1] %vm921_vm3, %v3920_v52  ;;  %3944 = vst.msk [vmem:[%s8937_s25 + $0x47] sm:$0x1] %vm921_vm3, %v3913_v44 }
 0x2ac   : > { %3942 = vst.msk [vmem:[%s8937_s25 + $0x27] sm:$0x1] %vm921_vm3, %v3928_v2  ;;  %v9550_v43 = vpop.f32.mrf.mxu1  ;;  %v9552_v24 = vpop.f32.mrf.mxu0  ;;  %v4305_v30 = vadd.f32 %v4296_v29, %v4216_v48  ;;  %2743 = vrot.lane.b32.xlu1 %v2720_v56, %s8410_s21  ;;  %2745 = vrot.lane.b32.xlu0 %v2724_v60, %s8410_s21  ;;  %v3132_v29 = vcombine.high %v3110_v47, %v3110_v47 }
 0x2ad   : > { %v3931_v55 = vcombine.high %v3927_v42, %v3927_v42  ;;  %3943 = vst.msk [vmem:[%s8937_s25 + $0x37] sm:$0x1] %vm921_vm3, %v3930_v21  ;;  %3945 = vst.msk [vmem:[%s8937_s25 + $0x57] sm:$0x1] %vm921_vm3, %v3927_v42  ;;  %v3139_v28 = vrot.slane %v3110_v47, %v8925_v50  ;;  %v3134_v2 = vcombine.high %v3124_v18, %v3124_v18 }
 0x2ae   : > { %3946 = vst.msk [vmem:[%s8937_s25 + $0x67] sm:$0x1] %vm921_vm3, %v3929_v26  ;;  %v4561_v31 = vpop.f32.mrf.mxu1  ;;  %v4644_v49 = vpop.f32.mrf.mxu0  ;;  %v4308_v57 = vcombine.high %v4305_v30, %v4305_v30  ;;  %v4315_v59 = vrot.slane %v4305_v30, %v8887_v39  ;;  %v3450_v22 = vadd.f32 %v9440_v36, %v3363_v15  ;;  %v3143_v53 = vrot.slane %v3124_v18, %v8925_v50 }
 0x2af   : > { %3947 = vst.msk [vmem:[%s8937_s25 + $0x77] sm:$0x1] %vm921_vm3, %v3931_v55  ;;  %v4645_v3 = vadd.f32 %v4644_v49, %v4561_v31  ;;  %v3147_v36 = vrot.slane %v3132_v29, %v8925_v50  ;;  %v3131_v56 = vrot.slane %v3103_v32, %v8887_v39  ;;  %v3133_v47 = vcombine.high %v3117_v25, %v3117_v25 }
 0x2b0   : > { %v4322_v41 = vrot.slane %v4308_v57, %v8887_v39  ;;  %v4323_v63 = vcombine.high %v4315_v59, %v4315_v59  ;;  %v4331_v0 = vrot.slane %v4315_v59, %v8887_v39  ;;  %2747 = vrot.lane.b32.xlu1 %v2728_v62, %s8410_s21  ;;  %2749 = vrot.lane.b32.xlu0 %v2732_v4, %s8410_s21 }
 0x2b1   : > { %v3525_v33 = vrot.slane %v3450_v22, %v8887_v39  ;;  %v3159_v17 = vrot.slane %v3131_v56, %v8925_v50  ;;  %v3163_v29 = vrot.slane %v3133_v47, %v8925_v50 }
 0x2b2   : > { %v9574_v34 = vpop.f32.mrf.mxu1  ;;  %v8130_v37 = vpop.f32.mrf.mxu0  ;;  %v4324_v5 = vcombine.high %v4322_v41, %v4322_v41  ;;  %v4338_v6 = vrot.slane %v4322_v41, %v8887_v39  ;;  %v4345_v7 = vrot.slane %v4323_v63, %v8887_v39  ;;  %v4353_v8 = vcombine.high %v4331_v0, %v4331_v0  ;;  %4365 = vst.msk [vmem:[%s8937_s25 + $0x8] sm:$0x1] %vm921_vm3, %v4331_v0 }
 0x2b3   : > { %v3151_v63 = vrot.slane %v3134_v2, %v8925_v50  ;;  %v3518_v0 = vcombine.high %v3450_v22, %v3450_v22  ;;  %v3541_v15 = vrot.slane %v3525_v33, %v8887_v39 }
 0x2b4   : > { %v4727_v9 = vpop.f32.mrf.mxu1  ;;  %v4992_v13 = vpop.f32.mrf.mxu0  ;;  %v4352_v27 = vrot.slane %v4324_v5, %v8887_v39  ;;  %v4354_v16 = vcombine.high %v4338_v6, %v4338_v6  ;;  %v4355_v19 = vcombine.high %v4345_v7, %v4345_v7  ;;  %4366 = vst.msk [vmem:[%s8937_s25 + $0x18] sm:$0x1] %vm921_vm3, %v4345_v7  ;;  %4367 = vst.msk [vmem:[%s8937_s25 + $0x28] sm:$0x1] %vm921_vm3, %v4353_v8  ;;  %2751 = vrot.lane.b32.xlu1 %v2736_v23, %s8410_s21 }
 0x2b5   : > { %v4736_v46 = vadd.f32 %v4727_v9, %v4645_v3  ;;  %4369 = vst.msk [vmem:[%s8937_s25 + $0x48] sm:$0x1] %vm921_vm3, %v4338_v6  ;;  %3168 = vrot.lane.b32.xlu0 %v3139_v28, %s8410_s21  ;;  %v3155_v6 = vrot.slane %v3117_v25, %v8925_v50  ;;  %v3533_v7 = vcombine.high %v3525_v33, %v3525_v33 }
 0x2b6   : > { %v4356_v1 = vcombine.high %v4352_v27, %v4352_v27  ;;  %4368 = vst.msk [vmem:[%s8937_s25 + $0x38] sm:$0x1] %vm921_vm3, %v4355_v19  ;;  %4370 = vst.msk [vmem:[%s8937_s25 + $0x58] sm:$0x1] %vm921_vm3, %v4352_v27  ;;  %v3135_v9 = vcombine.high %v3131_v56, %v3131_v56  ;;  %v3532_v18 = vrot.slane %v3518_v0, %v8887_v39 }
 0x2b7   : > { %v4739_v12 = vcombine.high %v4736_v46, %v4736_v46  ;;  %4371 = vst.msk [vmem:[%s8937_s25 + $0x68] sm:$0x1] %vm921_vm3, %v4354_v16  ;;  %v4746_v14 = vrot.slane %v4736_v46, %v8887_v39 }
 0x2b8   : > { %v8137_v44 = vpop.f32.mrf.mxu1  ;;  %v8144_v52 = vpop.f32.mrf.mxu0  ;;  %4372 = vst.msk [vmem:[%s8937_s25 + $0x78] sm:$0x1] %vm921_vm3, %v4356_v1  ;;  %3170 = vrot.lane.b32.xlu1 %v3143_v53, %s8410_s21 }
 0x2b9   : > { %v4753_v35 = vrot.slane %v4739_v12, %v8887_v39  ;;  %v4754_v42 = vcombine.high %v4746_v14, %v4746_v14  ;;  %v4762_v26 = vrot.slane %v4746_v14, %v8887_v39  ;;  %v5081_v54 = vadd.f32 %v8137_v44, %v8130_v37  ;;  %3172 = vrot.lane.b32.xlu0 %v3147_v36, %s8410_s21 }
 0x2ba   : > { %v5075_v21 = vpop.f32.mrf.mxu1  ;;  %v5158_v48 = vpop.f32.mrf.mxu0  ;;  %v3555_v12 = vrot.slane %v3533_v7, %v8887_v39  ;;  %v3167_v14 = vrot.slane %v3135_v9, %v8925_v50  ;;  %v3534_v36 = vcombine.high %v3532_v18, %v3532_v18 }
 0x2bb   : > { %v4755_v55 = vcombine.high %v4753_v35, %v4753_v35  ;;  %v4769_v30 = vrot.slane %v4753_v35, %v8887_v39  ;;  %v4776_v31 = vrot.slane %v4754_v42, %v8887_v39  ;;  %v4784_v49 = vcombine.high %v4762_v26, %v4762_v26  ;;  %4796 = vst.msk [vmem:[%s8937_s25 + $0x9] sm:$0x1] %vm921_vm3, %v4762_v26 }
 0x2bc   : > { %v9622_v57 = vadd.f32 %v8144_v52, %v5081_v54  ;;  %v5076_v59 = vadd.f32 %v5075_v21, %v4992_v13  ;;  %3174 = vrot.lane.b32.xlu1 %v3151_v63, %s8410_s21  ;;  %v3563_v42 = vcombine.high %v3541_v15, %v3541_v15  ;;  %v3794_v26 = vadd.f32 %v9468_v20, %v9466_v45 }
 0x2bd   : > { %v4783_v60 = vrot.slane %v4755_v55, %v8887_v39  ;;  %v4785_v40 = vcombine.high %v4769_v30, %v4769_v30  ;;  %v4786_v61 = vcombine.high %v4776_v31, %v4776_v31  ;;  %4797 = vst.msk [vmem:[%s8937_s25 + $0x19] sm:$0x1] %vm921_vm3, %v4776_v31  ;;  %4798 = vst.msk [vmem:[%s8937_s25 + $0x29] sm:$0x1] %vm921_vm3, %v4784_v49  ;;  %3176 = vrot.lane.b32.xlu0 %v3155_v6, %s8410_s21 }
 0x2be   : > { %4800 = vst.msk [vmem:[%s8937_s25 + $0x49] sm:$0x1] %vm921_vm3, %v4769_v30  ;;  %v8151_v62 = vpop.f32.mrf.mxu1  ;;  %v8158_v41 = vpop.f32.mrf.mxu0  ;;  %v5167_v37 = vadd.f32 %v5158_v48, %v5076_v59  ;;  %v3570_v48 = vrot.slane %v3541_v15, %v8925_v50  ;;  %v3565_v45 = vcombine.high %v3555_v12, %v3555_v12  ;;  %v9673_v20 = vadd.f32 %v9490_v51, %v3794_v26 }
 0x2bf   : > { %v5512_v38 = vadd.f32 %v8158_v41, %v8151_v62  ;;  %v4787_v3 = vcombine.high %v4783_v60, %v4783_v60  ;;  %4799 = vst.msk [vmem:[%s8937_s25 + $0x39] sm:$0x1] %vm921_vm3, %v4786_v61  ;;  %4801 = vst.msk [vmem:[%s8937_s25 + $0x59] sm:$0x1] %vm921_vm3, %v4783_v60  ;;  %v3574_v33 = vrot.slane %v3555_v12, %v8925_v50 }
 0x2c0   : > { %4802 = vst.msk [vmem:[%s8937_s25 + $0x69] sm:$0x1] %vm921_vm3, %v4785_v40  ;;  %v5423_v4 = vpop.f32.mrf.mxu1  ;;  %v5506_v5 = vpop.f32.mrf.mxu0  ;;  %v5170_v8 = vcombine.high %v5167_v37, %v5167_v37  ;;  %v5177_v13 = vrot.slane %v5167_v37, %v8887_v39  ;;  %3178 = vrot.lane.b32.xlu1 %v3159_v17, %s8410_s21  ;;  %v3548_v59 = vrot.slane %v3532_v18, %v8887_v39 }
 0x2c1   : > { %4803 = vst.msk [vmem:[%s8937_s25 + $0x79] sm:$0x1] %vm921_vm3, %v4787_v3  ;;  %v5507_v28 = vadd.f32 %v5506_v5, %v5423_v4  ;;  %3180 = vrot.lane.b32.xlu0 %v3163_v29, %s8410_s21  ;;  %v3578_v41 = vrot.slane %v3563_v42, %v8925_v50  ;;  %v3562_v63 = vrot.slane %v3534_v36, %v8887_v39 }
 0x2c2   : > { %v5184_v46 = vrot.slane %v5170_v8, %v8887_v39  ;;  %v5185_v27 = vcombine.high %v5177_v13, %v5177_v13  ;;  %v5193_v16 = vrot.slane %v5177_v13, %v8887_v39  ;;  %v3956_v0 = vrot.slane %v9673_v20, %v8887_v39 }
 0x2c3   : > { %v3564_v6 = vcombine.high %v3548_v59, %v3548_v59  ;;  %v3949_v7 = vcombine.high %v9673_v20, %v9673_v20 }
 0x2c4   : > { %v8165_v19 = vpop.f32.mrf.mxu1  ;;  %v8172_v23 = vpop.f32.mrf.mxu0  ;;  %v5186_v44 = vcombine.high %v5184_v46, %v5184_v46  ;;  %v5200_v52 = vrot.slane %v5184_v46, %v8887_v39  ;;  %v5207_v32 = vrot.slane %v5185_v27, %v8887_v39  ;;  %v5215_v2 = vcombine.high %v5193_v16, %v5193_v16  ;;  %5227 = vst.msk [vmem:[%s8937_s25 + $0xa] sm:$0x1] %vm921_vm3, %v5193_v16 }
 0x2c5   : > { %v9653_v1 = vadd.f32 %v8165_v19, %v5512_v38  ;;  %3182 = vrot.lane.b32.xlu1 %v3167_v14, %s8410_s21  ;;  %3599 = vrot.lane.b32.xlu0 %v3570_v48, %s8410_s21  ;;  %v3582_v38 = vrot.slane %v3565_v45, %v8925_v50  ;;  %v3586_v27 = vrot.slane %v3548_v59, %v8925_v50 }
 0x2c6   : > { %v5589_v22 = vpop.f32.mrf.mxu1  ;;  %v5854_v35 = vpop.f32.mrf.mxu0  ;;  %v5214_v53 = vrot.slane %v5186_v44, %v8887_v39  ;;  %v5216_v25 = vcombine.high %v5200_v52, %v5200_v52  ;;  %v5217_v54 = vcombine.high %v5207_v32, %v5207_v32  ;;  %5228 = vst.msk [vmem:[%s8937_s25 + $0x1a] sm:$0x1] %vm921_vm3, %v5207_v32  ;;  %5229 = vst.msk [vmem:[%s8937_s25 + $0x2a] sm:$0x1] %vm921_vm3, %v5215_v2 }
 0x2c7   : > { %v5598_v21 = vadd.f32 %v5589_v22, %v5507_v28  ;;  %5231 = vst.msk [vmem:[%s8937_s25 + $0x4a] sm:$0x1] %vm921_vm3, %v5200_v52  ;;  %v3964_v16 = vcombine.high %v3956_v0, %v3956_v0  ;;  %v9714_v19 = vrot.slane %v3956_v0, %v8887_v39  ;;  %v3590_v44 = vrot.slane %v3562_v63, %v8925_v50 }
 0x2c8   : > { %v5218_v30 = vcombine.high %v5214_v53, %v5214_v53  ;;  %5230 = vst.msk [vmem:[%s8937_s25 + $0x3a] sm:$0x1] %vm921_vm3, %v5217_v54  ;;  %5232 = vst.msk [vmem:[%s8937_s25 + $0x5a] sm:$0x1] %vm921_vm3, %v5214_v53  ;;  %v3566_v52 = vcombine.high %v3562_v63, %v3562_v63  ;;  %v4221_v32 = vadd.f32 %v9521_v10, %v9492_v58 }
 0x2c9   : > { %v5601_v55 = vcombine.high %v5598_v21, %v5598_v21  ;;  %5233 = vst.msk [vmem:[%s8937_s25 + $0x6a] sm:$0x1] %vm921_vm3, %v5216_v25  ;;  %v5608_v31 = vrot.slane %v5598_v21, %v8887_v39  ;;  %3601 = vrot.lane.b32.xlu1 %v3574_v33, %s8410_s21  ;;  %3603 = vrot.lane.b32.xlu0 %v3578_v41, %s8410_s21 }
 0x2ca   : > { %v8179_v49 = vpop.f32.mrf.mxu1  ;;  %v8186_v56 = vpop.f32.mrf.mxu0  ;;  %5234 = vst.msk [vmem:[%s8937_s25 + $0x7a] sm:$0x1] %vm921_vm3, %v5218_v30  ;;  %v3963_v42 = vrot.slane %v3949_v7, %v8887_v39  ;;  %v3986_v26 = vrot.slane %v3964_v16, %v8887_v39  ;;  %v3994_v21 = vcombine.high %v9714_v19, %v9714_v19  ;;  %v3598_v54 = vrot.slane %v3566_v52, %v8925_v50 }
 0x2cb   : > { %v5615_v51 = vrot.slane %v5601_v55, %v8887_v39  ;;  %v5616_v60 = vcombine.high %v5608_v31, %v5608_v31  ;;  %v5624_v40 = vrot.slane %v5608_v31, %v8887_v39  ;;  %v5943_v37 = vadd.f32 %v8179_v49, %v8172_v23 }
 0x2cc   : > { %v5937_v61 = vpop.f32.mrf.mxu1  ;;  %v6020_v62 = vpop.f32.mrf.mxu0  ;;  %v4001_v36 = vrot.slane %v9714_v19, %v8925_v50  ;;  %v9742_v45 = vadd.f32 %v9523_v11, %v4221_v32  ;;  %v3965_v11 = vcombine.high %v3963_v42, %v3963_v42  ;;  %v4005_v63 = vrot.slane %v3986_v26, %v8925_v50 }
 0x2cd   : > { %v5617_v47 = vcombine.high %v5615_v51, %v5615_v51  ;;  %v5631_v3 = vrot.slane %v5615_v51, %v8887_v39  ;;  %v5638_v4 = vrot.slane %v5616_v60, %v8887_v39  ;;  %v5646_v5 = vcombine.high %v5624_v40, %v5624_v40  ;;  %5658 = vst.msk [vmem:[%s8937_s25 + $0xb] sm:$0x1] %vm921_vm3, %v5624_v40 }
 0x2ce   : > { %v9702_v8 = vadd.f32 %v8186_v56, %v5943_v37  ;;  %v5938_v9 = vadd.f32 %v5937_v61, %v5854_v35  ;;  %3605 = vrot.lane.b32.xlu1 %v3582_v38, %s8410_s21  ;;  %3607 = vrot.lane.b32.xlu0 %v3586_v27, %s8410_s21  ;;  %v3594_v35 = vrot.slane %v3564_v6, %v8925_v50 }
 0x2cf   : > { %v5645_v13 = vrot.slane %v5617_v47, %v8887_v39  ;;  %v5647_v17 = vcombine.high %v5631_v3, %v5631_v3  ;;  %v5648_v18 = vcombine.high %v5638_v4, %v5638_v4  ;;  %5659 = vst.msk [vmem:[%s8937_s25 + $0x1b] sm:$0x1] %vm921_vm3, %v5638_v4  ;;  %5660 = vst.msk [vmem:[%s8937_s25 + $0x2b] sm:$0x1] %vm921_vm3, %v5646_v5 }
 0x2d0   : > { %5662 = vst.msk [vmem:[%s8937_s25 + $0x4b] sm:$0x1] %vm921_vm3, %v5631_v3  ;;  %v8193_v15 = vpop.f32.mrf.mxu1  ;;  %v8200_v46 = vpop.f32.mrf.mxu0  ;;  %v6029_v23 = vadd.f32 %v6020_v62, %v5938_v9  ;;  %v9752_v51 = vrot.slane %v3963_v42, %v8887_v39  ;;  %v3996_v60 = vcombine.high %v3986_v26, %v3986_v26  ;;  %v4381_v0 = vrot.slane %v9742_v45, %v8887_v39 }
 0x2d1   : > { %v6374_v29 = vadd.f32 %v8200_v46, %v8193_v15  ;;  %v5649_v12 = vcombine.high %v5645_v13, %v5645_v13  ;;  %5661 = vst.msk [vmem:[%s8937_s25 + $0x3b] sm:$0x1] %vm921_vm3, %v5648_v18  ;;  %5663 = vst.msk [vmem:[%s8937_s25 + $0x5b] sm:$0x1] %vm921_vm3, %v5645_v13  ;;  %v4009_v5 = vrot.slane %v3994_v21, %v8925_v50 }
 0x2d2   : > { %5664 = vst.msk [vmem:[%s8937_s25 + $0x6b] sm:$0x1] %vm921_vm3, %v5647_v17  ;;  %v6285_v28 = vpop.f32.mrf.mxu1  ;;  %v6368_v14 = vpop.f32.mrf.mxu0  ;;  %v6032_v2 = vcombine.high %v6029_v23, %v6029_v23  ;;  %v6039_v22 = vrot.slane %v6029_v23, %v8887_v39  ;;  %3609 = vrot.lane.b32.xlu1 %v3590_v44, %s8410_s21  ;;  %3611 = vrot.lane.b32.xlu0 %v3594_v35, %s8410_s21 }
 0x2d3   : > { %5665 = vst.msk [vmem:[%s8937_s25 + $0x7b] sm:$0x1] %vm921_vm3, %v5649_v12  ;;  %v6369_v20 = vadd.f32 %v6368_v14, %v6285_v28  ;;  %v3993_v6 = vrot.slane %v3965_v11, %v8887_v39  ;;  %v3995_v7 = vcombine.high %v9752_v51, %v9752_v51  ;;  %v4013_v46 = vrot.slane %v3996_v60, %v8925_v50 }
 0x2d4   : > { %v6046_v48 = vrot.slane %v6032_v2, %v8887_v39  ;;  %v6047_v58 = vcombine.high %v6039_v22, %v6039_v22  ;;  %v6055_v10 = vrot.slane %v6039_v22, %v8887_v39  ;;  %v4374_v27 = vcombine.high %v9742_v45, %v9742_v45 }
 0x2d5   : > { %v4389_v16 = vcombine.high %v4381_v0, %v4381_v0  ;;  %v4017_v23 = vrot.slane %v9752_v51, %v8925_v50  ;;  %v4021_v32 = vrot.slane %v3993_v6, %v8925_v50  ;;  %v3997_v21 = vcombine.high %v3993_v6, %v3993_v6 }
 0x2d6   : > { %v8207_v53 = vpop.f32.mrf.mxu1  ;;  %v8214_v25 = vpop.f32.mrf.mxu0  ;;  %v6048_v30 = vcombine.high %v6046_v48, %v6046_v48  ;;  %v6062_v31 = vrot.slane %v6046_v48, %v8887_v39  ;;  %v6069_v49 = vrot.slane %v6047_v58, %v8887_v39  ;;  %v6077_v56 = vcombine.high %v6055_v10, %v6055_v10  ;;  %6089 = vst.msk [vmem:[%s8937_s25 + $0xc] sm:$0x1] %vm921_vm3, %v6055_v10 }
 0x2d7   : > { %v9744_v55 = vadd.f32 %v8207_v53, %v6374_v29  ;;  %3613 = vrot.lane.b32.xlu1 %v3598_v54, %s8410_s21  ;;  %4030 = vrot.lane.b32.xlu0 %v4001_v36, %s8410_s21  ;;  %v4388_v48 = vrot.slane %v4374_v27, %v8887_v39  ;;  %v4397_v58 = vrot.slane %v4381_v0, %v8887_v39 }
 0x2d8   : > { %v6451_v33 = vpop.f32.mrf.mxu1  ;;  %v6716_v59 = vpop.f32.mrf.mxu0  ;;  %v6076_v61 = vrot.slane %v6048_v30, %v8887_v39  ;;  %v6078_v62 = vcombine.high %v6062_v31, %v6062_v31  ;;  %v6079_v41 = vcombine.high %v6069_v49, %v6069_v49  ;;  %6090 = vst.msk [vmem:[%s8937_s25 + $0x1c] sm:$0x1] %vm921_vm3, %v6069_v49  ;;  %6091 = vst.msk [vmem:[%s8937_s25 + $0x2c] sm:$0x1] %vm921_vm3, %v6077_v56 }
 0x2d9   : > { %v6460_v40 = vadd.f32 %v6451_v33, %v6369_v20  ;;  %6093 = vst.msk [vmem:[%s8937_s25 + $0x4c] sm:$0x1] %vm921_vm3, %v6062_v31  ;;  %v4025_v45 = vrot.slane %v3995_v7, %v8925_v50  ;;  %v4029_v56 = vrot.slane %v3997_v21, %v8925_v50  ;;  %v4390_v33 = vcombine.high %v4388_v48, %v4388_v48 }
 0x2da   : > { %v6080_v38 = vcombine.high %v6076_v61, %v6076_v61  ;;  %6092 = vst.msk [vmem:[%s8937_s25 + $0x3c] sm:$0x1] %vm921_vm3, %v6079_v41  ;;  %6094 = vst.msk [vmem:[%s8937_s25 + $0x5c] sm:$0x1] %vm921_vm3, %v6076_v61  ;;  %v4426_v11 = vrot.slane %v4397_v58, %v8925_v50  ;;  %v4650_v51 = vadd.f32 %v9552_v24, %v9550_v43 }
 0x2db   : > { %v6463_v37 = vcombine.high %v6460_v40, %v6460_v40  ;;  %6095 = vst.msk [vmem:[%s8937_s25 + $0x6c] sm:$0x1] %vm921_vm3, %v6078_v62  ;;  %v6470_v47 = vrot.slane %v6460_v40, %v8887_v39  ;;  %4032 = vrot.lane.b32.xlu1 %v4005_v63, %s8410_s21  ;;  %4034 = vrot.lane.b32.xlu0 %v4009_v5, %s8410_s21 }
 0x2dc   : > { %v8221_v3 = vpop.f32.mrf.mxu1  ;;  %v8228_v4 = vpop.f32.mrf.mxu0  ;;  %6096 = vst.msk [vmem:[%s8937_s25 + $0x7c] sm:$0x1] %vm921_vm3, %v6080_v38  ;;  %v9828_v63 = vadd.f32 %v9574_v34, %v4650_v51  ;;  %v4404_v34 = vrot.slane %v4388_v48, %v8887_v39 }
 0x2dd   : > { %v6477_v9 = vrot.slane %v6463_v37, %v8887_v39  ;;  %v6478_v13 = vcombine.high %v6470_v47, %v6470_v47  ;;  %v6486_v17 = vrot.slane %v6470_v47, %v8887_v39  ;;  %v6805_v19 = vadd.f32 %v8221_v3, %v8214_v25 }
 0x2de   : > { %v6799_v18 = vpop.f32.mrf.mxu1  ;;  %v6882_v15 = vpop.f32.mrf.mxu0  ;;  %v4411_v25 = vrot.slane %v4389_v16, %v8887_v39 }
 0x2df   : > { %v6479_v29 = vcombine.high %v6477_v9, %v6477_v9  ;;  %v6493_v12 = vrot.slane %v6477_v9, %v8887_v39  ;;  %v6500_v28 = vrot.slane %v6478_v13, %v8887_v39  ;;  %v6508_v14 = vcombine.high %v6486_v17, %v6486_v17  ;;  %6520 = vst.msk [vmem:[%s8937_s25 + $0xd] sm:$0x1] %vm921_vm3, %v6486_v17 }
 0x2e0   : > { %4036 = vrot.lane.b32.xlu1 %v4013_v46, %s8410_s21  ;;  %v9792_v44 = vadd.f32 %v8228_v4, %v6805_v19  ;;  %v6800_v52 = vadd.f32 %v6799_v18, %v6716_v59  ;;  %4038 = vrot.lane.b32.xlu0 %v4017_v23, %s8410_s21  ;;  %v4419_v59 = vcombine.high %v4397_v58, %v4397_v58 }
 0x2e1   : > { %v6507_v2 = vrot.slane %v6479_v29, %v8887_v39  ;;  %v6509_v22 = vcombine.high %v6493_v12, %v6493_v12  ;;  %v6510_v35 = vcombine.high %v6500_v28, %v6500_v28  ;;  %6521 = vst.msk [vmem:[%s8937_s25 + $0x1d] sm:$0x1] %vm921_vm3, %v6500_v28  ;;  %6522 = vst.msk [vmem:[%s8937_s25 + $0x2d] sm:$0x1] %vm921_vm3, %v6508_v14 }
 0x2e2   : > { %6524 = vst.msk [vmem:[%s8937_s25 + $0x4d] sm:$0x1] %vm921_vm3, %v6493_v12  ;;  %v8235_v42 = vpop.f32.mrf.mxu1  ;;  %v8242_v26 = vpop.f32.mrf.mxu0  ;;  %v6891_v10 = vadd.f32 %v6882_v15, %v6800_v52  ;;  %v4421_v40 = vcombine.high %v4411_v25, %v4411_v25  ;;  %v4430_v24 = vrot.slane %v4411_v25, %v8925_v50  ;;  %v4434_v13 = vrot.slane %v4419_v59, %v8925_v50 }
 0x2e3   : > { %v7236_v53 = vadd.f32 %v8242_v26, %v8235_v42  ;;  %v6511_v54 = vcombine.high %v6507_v2, %v6507_v2  ;;  %6523 = vst.msk [vmem:[%s8937_s25 + $0x3d] sm:$0x1] %vm921_vm3, %v6510_v35  ;;  %6525 = vst.msk [vmem:[%s8937_s25 + $0x5d] sm:$0x1] %vm921_vm3, %v6507_v2  ;;  %v4418_v17 = vrot.slane %v4390_v33, %v8887_v39 }
 0x2e4   : > { %6526 = vst.msk [vmem:[%s8937_s25 + $0x6d] sm:$0x1] %vm921_vm3, %v6509_v22  ;;  %v7147_v36 = vpop.f32.mrf.mxu1  ;;  %4040 = vrot.lane.b32.xlu1 %v4021_v32, %s8410_s21  ;;  %v6894_v20 = vcombine.high %v6891_v10, %v6891_v10  ;;  %v1445_v30 = vpop.permute.xlu0 %1444  ;;  %v6901_v31 = vrot.slane %v6891_v10, %v8887_v39  ;;  %4042 = vrot.lane.b32.xlu0 %v4025_v45, %s8410_s21 }
 0x2e5   : > { %6527 = vst.msk [vmem:[%s8937_s25 + $0x7d] sm:$0x1] %vm921_vm3, %v6511_v54  ;;  %v7230_v49 = vpop.f32.mrf.mxu0  ;;  %v4812_v18 = vrot.slane %v9828_v63, %v8887_v39  ;;  %v4438_v19 = vrot.slane %v4421_v40, %v8925_v50  ;;  %v4420_v23 = vcombine.high %v4404_v34, %v4404_v34  ;;  %v4442_v52 = vrot.slane %v4404_v34, %v8925_v50 }
 0x2e6   : > { %1468 = vst.msk [vmem:[%s8937_s25 + $0x1] sm:$0x1] %vm1036_vm4, %v1445_v30  ;;  %v6908_v61 = vrot.slane %v6894_v20, %v8887_v39  ;;  %v6909_v62 = vcombine.high %v6901_v31, %v6901_v31  ;;  %v6917_v41 = vrot.slane %v6901_v31, %v8887_v39  ;;  %v7231_v0 = vadd.f32 %v7230_v49, %v7147_v36  ;;  %v1447_v16 = vpop.permute.xlu1 %1446 }
 0x2e7   : > { %v8249_v60 = vpop.f32.mrf.mxu1  ;;  %1469 = vst.msk [vmem:[%s8937_s25 + $0x11] sm:$0x1] %vm1036_vm4, %v1447_v16  ;;  %v4805_v32 = vcombine.high %v9828_v63, %v9828_v63  ;;  %v4820_v2 = vcombine.high %v4812_v18, %v4812_v18  ;;  %v4446_v22 = vrot.slane %v4418_v17, %v8925_v50  ;;  %v4422_v35 = vcombine.high %v4418_v17, %v4418_v17 }
 0x2e8   : > { %4044 = vrot.lane.b32.xlu1 %v4029_v56, %s8410_s21  ;;  %v9830_v37 = vadd.f32 %v8249_v60, %v7236_v53  ;;  %v6910_v38 = vcombine.high %v6908_v61, %v6908_v61  ;;  %v6924_v47 = vrot.slane %v6908_v61, %v8887_v39  ;;  %v6931_v3 = vrot.slane %v6909_v62, %v8887_v39 }
 0x2e9   : > { %v7313_v43 = vpop.f32.mrf.mxu1  ;;  %v6939_v4 = vcombine.high %v6917_v41, %v6917_v41  ;;  %6951 = vst.msk [vmem:[%s8937_s25 + $0xe] sm:$0x1] %vm921_vm3, %v6917_v41  ;;  %4455 = vrot.lane.b32.xlu0 %v4426_v11, %s8410_s21  ;;  %v1449_v14 = vpop.permute.xlu0 %1448  ;;  %v4828_v10 = vrot.slane %v4812_v18, %v8887_v39  ;;  %v4450_v45 = vrot.slane %v4420_v23, %v8925_v50 }
 0x2ea   : > { %v7322_v5 = vadd.f32 %v7313_v43, %v7231_v0  ;;  %v6938_v6 = vrot.slane %v6910_v38, %v8887_v39  ;;  %v6940_v7 = vcombine.high %v6924_v47, %v6924_v47  ;;  %v6941_v9 = vcombine.high %v6931_v3, %v6931_v3  ;;  %6952 = vst.msk [vmem:[%s8937_s25 + $0x1e] sm:$0x1] %vm921_vm3, %v6931_v3 }
 0x2eb   : > { %6953 = vst.msk [vmem:[%s8937_s25 + $0x2e] sm:$0x1] %vm921_vm3, %v6939_v4  ;;  %6955 = vst.msk [vmem:[%s8937_s25 + $0x4e] sm:$0x1] %vm921_vm3, %v6924_v47  ;;  %v1451_v58 = vpop.permute.xlu1 %1450  ;;  %v4819_v20 = vrot.slane %v4805_v32, %v8887_v39  ;;  %v4842_v30 = vrot.slane %v4820_v2, %v8887_v39  ;;  %v4454_v56 = vrot.slane %v4422_v35, %v8925_v50 }
 0x2ec   : > { %4457 = vrot.lane.b32.xlu1 %v4430_v24, %s8410_s21  ;;  %v7325_v15 = vcombine.high %v7322_v5, %v7322_v5  ;;  %v6942_v46 = vcombine.high %v6938_v6, %v6938_v6  ;;  %6954 = vst.msk [vmem:[%s8937_s25 + $0x3e] sm:$0x1] %vm921_vm3, %v6941_v9  ;;  %6956 = vst.msk [vmem:[%s8937_s25 + $0x5e] sm:$0x1] %vm921_vm3, %v6938_v6  ;;  %v7332_v27 = vrot.slane %v7322_v5, %v8887_v39 }
 0x2ed   : > { %6957 = vst.msk [vmem:[%s8937_s25 + $0x6e] sm:$0x1] %vm921_vm3, %v6940_v7  ;;  %4459 = vrot.lane.b32.xlu0 %v4434_v13, %s8410_s21  ;;  %v1453_v36 = vpop.permute.xlu0 %1452  ;;  %v4850_v33 = vcombine.high %v4828_v10, %v4828_v10  ;;  %v4857_v59 = vrot.slane %v4828_v10, %v8925_v50  ;;  %v4821_v51 = vcombine.high %v4819_v20, %v4819_v20 }
 0x2ee   : > { %6958 = vst.msk [vmem:[%s8937_s25 + $0x7e] sm:$0x1] %vm921_vm3, %v6942_v46  ;;  %v7339_v29 = vrot.slane %v7325_v15, %v8887_v39  ;;  %v7340_v12 = vcombine.high %v7332_v27, %v7332_v27  ;;  %v7348_v28 = vrot.slane %v7332_v27, %v8887_v39  ;;  %v4852_v60 = vcombine.high %v4842_v30, %v4842_v30 }
 0x2ef   : > { %1470 = vst.msk [vmem:[%s8937_s25 + $0x21] sm:$0x1] %vm1036_vm4, %v1449_v14  ;;  %1471 = vst.msk [vmem:[%s8937_s25 + $0x31] sm:$0x1] %vm1036_vm4, %v1451_v58  ;;  %v1455_v49 = vpop.permute.xlu1 %1454  ;;  %v4861_v61 = vrot.slane %v4842_v30, %v8925_v50  ;;  %v4835_v62 = vrot.slane %v4819_v20, %v8887_v39  ;;  %v4865_v63 = vrot.slane %v4850_v33, %v8925_v50 }
 0x2f0   : > { %4461 = vrot.lane.b32.xlu1 %v4438_v19, %s8410_s21  ;;  %v7341_v42 = vcombine.high %v7339_v29, %v7339_v29  ;;  %v7355_v26 = vrot.slane %v7339_v29, %v8887_v39  ;;  %v7362_v21 = vrot.slane %v7340_v12, %v8887_v39  ;;  %v7370_v48 = vcombine.high %v7348_v28, %v7348_v28 }
 0x2f1   : > { %7382 = vst.msk [vmem:[%s8937_s25 + $0xf] sm:$0x1] %vm921_vm3, %v7348_v28  ;;  %4463 = vrot.lane.b32.xlu0 %v4442_v52, %s8410_s21  ;;  %v1457_v11 = vpop.permute.xlu0 %1456  ;;  %v4849_v0 = vrot.slane %v4821_v51, %v8887_v39  ;;  %v5243_v43 = vrot.slane %v9622_v57, %v8887_v39  ;;  %v4869_v38 = vrot.slane %v4852_v60, %v8925_v50 }
 0x2f2   : > { %v7369_v53 = vrot.slane %v7341_v42, %v8887_v39  ;;  %v7371_v25 = vcombine.high %v7355_v26, %v7355_v26  ;;  %v7372_v54 = vcombine.high %v7362_v21, %v7362_v21  ;;  %7383 = vst.msk [vmem:[%s8937_s25 + $0x1f] sm:$0x1] %vm921_vm3, %v7362_v21  ;;  %7384 = vst.msk [vmem:[%s8937_s25 + $0x2f] sm:$0x1] %vm921_vm3, %v7370_v48 }
 0x2f3   : > { %7386 = vst.msk [vmem:[%s8937_s25 + $0x4f] sm:$0x1] %vm921_vm3, %v7355_v26  ;;  %v4851_v47 = vcombine.high %v4835_v62, %v4835_v62  ;;  %v4873_v4 = vrot.slane %v4835_v62, %v8925_v50  ;;  %v5236_v34 = vcombine.high %v9622_v57, %v9622_v57  ;;  %v5251_v5 = vcombine.high %v5243_v43, %v5243_v43 }
 0x2f4   : > { %4465 = vrot.lane.b32.xlu1 %v4446_v22, %s8410_s21  ;;  %1472 = vst.msk [vmem:[%s8937_s25 + $0x41] sm:$0x1] %vm1036_vm4, %v1453_v36  ;;  %v7373_v31 = vcombine.high %v7369_v53, %v7369_v53  ;;  %1473 = vst.msk [vmem:[%s8937_s25 + $0x51] sm:$0x1] %vm1036_vm4, %v1455_v49  ;;  %v1459_v40 = vpop.permute.xlu1 %1458  ;;  %v4877_v7 = vrot.slane %v4849_v0, %v8925_v50  ;;  %v4853_v9 = vcombine.high %v4849_v0, %v4849_v0 }
 0x2f5   : > { %7385 = vst.msk [vmem:[%s8937_s25 + $0x3f] sm:$0x1] %vm921_vm3, %v7372_v54  ;;  %7387 = vst.msk [vmem:[%s8937_s25 + $0x5f] sm:$0x1] %vm921_vm3, %v7369_v53  ;;  %4467 = vrot.lane.b32.xlu0 %v4450_v45, %s8410_s21  ;;  %v1876_v41 = vpop.permute.xlu0 %1875  ;;  %v5259_v13 = vrot.slane %v5243_v43, %v8887_v39  ;;  %v4881_v18 = vrot.slane %v4851_v47, %v8925_v50  ;;  %v5250_v57 = vrot.slane %v5236_v34, %v8887_v39 }
 0x2f6   : > { %7388 = vst.msk [vmem:[%s8937_s25 + $0x6f] sm:$0x1] %vm921_vm3, %v7371_v25  ;;  %7389 = vst.msk [vmem:[%s8937_s25 + $0x7f] sm:$0x1] %vm921_vm3, %v7373_v31  ;;  %v5273_v15 = vrot.slane %v5251_v5, %v8887_v39  ;;  %v4885_v27 = vrot.slane %v4853_v9, %v8925_v50  ;;  %v5674_v35 = vrot.slane %v9653_v1, %v8887_v39 }
 0x2f7   : > { %1474 = vst.msk [vmem:[%s8937_s25 + $0x61] sm:$0x1] %vm1036_vm4, %v1457_v11  ;;  %1475 = vst.msk [vmem:[%s8937_s25 + $0x71] sm:$0x1] %vm1036_vm4, %v1459_v40  ;;  %v5281_v16 = vcombine.high %v5259_v13, %v5259_v13  ;;  %v5288_v19 = vrot.slane %v5259_v13, %v8925_v50  ;;  %v5252_v29 = vcombine.high %v5250_v57, %v5250_v57 }
 0x2f8   : > { %4469 = vrot.lane.b32.xlu1 %v4454_v56, %s8410_s21  ;;  %1899 = vst.msk [vmem:[%s8937_s25 + $0x2] sm:$0x1] %vm1036_vm4, %v1876_v41  ;;  %v1878_v24 = vpop.permute.xlu1 %1877  ;;  %v5283_v12 = vcombine.high %v5273_v15, %v5273_v15  ;;  %v5292_v14 = vrot.slane %v5273_v15, %v8925_v50  ;;  %v5266_v52 = vrot.slane %v5250_v57, %v8887_v39 }
 0x2f9   : > { %4886 = vrot.lane.b32.xlu0 %v4857_v59, %s8410_s21  ;;  %1900 = vst.msk [vmem:[%s8937_s25 + $0x12] sm:$0x1] %vm1036_vm4, %v1878_v24  ;;  %v1880_v3 = vpop.permute.xlu0 %1879  ;;  %v5296_v2 = vrot.slane %v5281_v16, %v8925_v50  ;;  %v5280_v22 = vrot.slane %v5252_v29, %v8887_v39  ;;  %v5667_v10 = vcombine.high %v9653_v1, %v9653_v1 }
 0x2fa   : > { %1901 = vst.msk [vmem:[%s8937_s25 + $0x22] sm:$0x1] %vm1036_vm4, %v1880_v3  ;;  %v5300_v26 = vrot.slane %v5283_v12, %v8925_v50  ;;  %v5282_v21 = vcombine.high %v5266_v52, %v5266_v52  ;;  %v5304_v58 = vrot.slane %v5266_v52, %v8925_v50  ;;  %v5682_v53 = vcombine.high %v5674_v35, %v5674_v35 }
 0x2fb   : > { %v5308_v54 = vrot.slane %v5280_v22, %v8925_v50  ;;  %v5284_v36 = vcombine.high %v5280_v22, %v5280_v22  ;;  %v5690_v45 = vrot.slane %v5674_v35, %v8887_v39  ;;  %v5681_v1 = vrot.slane %v5667_v10, %v8887_v39 }
 0x2fc   : > { %4888 = vrot.lane.b32.xlu1 %v4861_v61, %s8410_s21  ;;  %v5312_v30 = vrot.slane %v5282_v21, %v8925_v50  ;;  %v5704_v31 = vrot.slane %v5682_v53, %v8887_v39  ;;  %v6105_v43 = vrot.slane %v9702_v8, %v8887_v39  ;;  %v6098_v34 = vcombine.high %v9702_v8, %v9702_v8 }
 0x2fd   : > { %4890 = vrot.lane.b32.xlu0 %v4865_v63, %s8410_s21  ;;  %v1882_v6 = vpop.permute.xlu1 %1881  ;;  %v1884_v17 = vpop.permute.xlu0 %1883  ;;  %v5316_v56 = vrot.slane %v5284_v36, %v8925_v50  ;;  %v5712_v33 = vcombine.high %v5690_v45, %v5690_v45  ;;  %v5719_v59 = vrot.slane %v5690_v45, %v8925_v50  ;;  %v5683_v51 = vcombine.high %v5681_v1, %v5681_v1 }
 0x2fe   : > { %1902 = vst.msk [vmem:[%s8937_s25 + $0x32] sm:$0x1] %vm1036_vm4, %v1882_v6  ;;  %1903 = vst.msk [vmem:[%s8937_s25 + $0x42] sm:$0x1] %vm1036_vm4, %v1884_v17  ;;  %v5714_v60 = vcombine.high %v5704_v31, %v5704_v31  ;;  %v5723_v61 = vrot.slane %v5704_v31, %v8925_v50  ;;  %v5697_v62 = vrot.slane %v5681_v1, %v8887_v39 }
 0x2ff   : > { %v5727_v63 = vrot.slane %v5712_v33, %v8925_v50  ;;  %v5711_v0 = vrot.slane %v5683_v51, %v8887_v39  ;;  %v6113_v5 = vcombine.high %v6105_v43, %v6105_v43  ;;  %v6121_v13 = vrot.slane %v6105_v43, %v8887_v39 }
 0x300   : > { %4892 = vrot.lane.b32.xlu1 %v4869_v38, %s8410_s21  ;;  %v5731_v38 = vrot.slane %v5714_v60, %v8925_v50  ;;  %v5713_v47 = vcombine.high %v5697_v62, %v5697_v62  ;;  %v6112_v8 = vrot.slane %v6098_v34, %v8887_v39  ;;  %v6536_v22 = vrot.slane %v9744_v55, %v8887_v39 }
 0x301   : > { %4894 = vrot.lane.b32.xlu0 %v4873_v4, %s8410_s21  ;;  %v1886_v46 = vpop.permute.xlu1 %1885  ;;  %v1888_v23 = vpop.permute.xlu0 %1887  ;;  %v5735_v4 = vrot.slane %v5697_v62, %v8925_v50  ;;  %v5715_v9 = vcombine.high %v5711_v0, %v5711_v0  ;;  %v6135_v57 = vrot.slane %v6113_v5, %v8887_v39  ;;  %v6150_v16 = vrot.slane %v6121_v13, %v8925_v50 }
 0x302   : > { %1904 = vst.msk [vmem:[%s8937_s25 + $0x52] sm:$0x1] %vm1036_vm4, %v1886_v46  ;;  %1905 = vst.msk [vmem:[%s8937_s25 + $0x62] sm:$0x1] %vm1036_vm4, %v1888_v23  ;;  %v6114_v23 = vcombine.high %v6112_v8, %v6112_v8  ;;  %v6544_v10 = vcombine.high %v6536_v22, %v6536_v22  ;;  %v6552_v36 = vrot.slane %v6536_v22, %v8887_v39 }
 0x303   : > { %v5747_v46 = vrot.slane %v5715_v9, %v8925_v50  ;;  %v6145_v29 = vcombine.high %v6135_v57, %v6135_v57 }
 0x304   : > { %4896 = vrot.lane.b32.xlu1 %v4877_v7, %s8410_s21  ;;  %v5739_v7 = vrot.slane %v5711_v0, %v8925_v50 }
 0x305   : > { %4898 = vrot.lane.b32.xlu0 %v4881_v18, %s8410_s21  ;;  %v1890_v28 = vpop.permute.xlu1 %1889  ;;  %v2307_v32 = vpop.permute.xlu0 %2306  ;;  %v5743_v18 = vrot.slane %v5713_v47, %v8925_v50 }
 0x306   : > { %1906 = vst.msk [vmem:[%s8937_s25 + $0x72] sm:$0x1] %vm1036_vm4, %v1890_v28  ;;  %2330 = vst.msk [vmem:[%s8937_s25 + $0x3] sm:$0x1] %vm1036_vm4, %v2307_v32  ;;  %v6154_v28 = vrot.slane %v6135_v57, %v8925_v50 }
 0x308   : > { %4900 = vrot.lane.b32.xlu1 %v4885_v27, %s8410_s21  ;;  %v6143_v27 = vcombine.high %v6121_v13, %v6121_v13 }
 0x309   : > { %5317 = vrot.lane.b32.xlu0 %v5288_v19, %s8410_s21  ;;  %v2309_v42 = vpop.permute.xlu1 %2308  ;;  %v2311_v48 = vpop.permute.xlu0 %2310 }
 0x30a   : > { %2331 = vst.msk [vmem:[%s8937_s25 + $0x13] sm:$0x1] %vm1036_vm4, %v2309_v42  ;;  %2332 = vst.msk [vmem:[%s8937_s25 + $0x23] sm:$0x1] %vm1036_vm4, %v2311_v48  ;;  %v6158_v32 = vrot.slane %v6143_v27, %v8925_v50  ;;  %v6162_v42 = vrot.slane %v6145_v29, %v8925_v50 }
 0x30c   : > { %5319 = vrot.lane.b32.xlu1 %v5292_v14, %s8410_s21  ;;  %v6128_v14 = vrot.slane %v6112_v8, %v8887_v39 }
 0x30d   : > { %5321 = vrot.lane.b32.xlu0 %v5296_v2, %s8410_s21  ;;  %v2313_v25 = vpop.permute.xlu1 %2312  ;;  %v2315_v20 = vpop.permute.xlu0 %2314  ;;  %v6142_v2 = vrot.slane %v6114_v23, %v8887_v39 }
 0x30e   : > { %2333 = vst.msk [vmem:[%s8937_s25 + $0x33] sm:$0x1] %vm1036_vm4, %v2313_v25  ;;  %2334 = vst.msk [vmem:[%s8937_s25 + $0x43] sm:$0x1] %vm1036_vm4, %v2315_v20  ;;  %v6166_v48 = vrot.slane %v6128_v14, %v8925_v50 }
 0x30f   : > { %v6170_v25 = vrot.slane %v6142_v2, %v8925_v50 }
 0x310   : > { %5323 = vrot.lane.b32.xlu1 %v5300_v26, %s8410_s21  ;;  %v6144_v26 = vcombine.high %v6128_v14, %v6128_v14 }
 0x311   : > { %5325 = vrot.lane.b32.xlu0 %v5304_v58, %s8410_s21  ;;  %v6529_v58 = vcombine.high %v9744_v55, %v9744_v55 }
 0x312   : > { %v2317_v49 = vpop.permute.xlu1 %2316  ;;  %v2319_v11 = vpop.permute.xlu0 %2318  ;;  %v6174_v20 = vrot.slane %v6144_v26, %v8925_v50  ;;  %v7391_v26 = vcombine.high %v9830_v37, %v9830_v37 }
 0x313   : > { %2335 = vst.msk [vmem:[%s8937_s25 + $0x53] sm:$0x1] %vm1036_vm4, %v2317_v49  ;;  %2336 = vst.msk [vmem:[%s8937_s25 + $0x63] sm:$0x1] %vm1036_vm4, %v2319_v11  ;;  %v6543_v55 = vrot.slane %v6529_v58, %v8887_v39  ;;  %v6574_v49 = vcombine.high %v6552_v36, %v6552_v36 }
 0x314   : > { %5327 = vrot.lane.b32.xlu1 %v5308_v54, %s8410_s21  ;;  %v6146_v54 = vcombine.high %v6142_v2, %v6142_v2 }
 0x315   : > { %5329 = vrot.lane.b32.xlu0 %v5312_v30, %s8410_s21  ;;  %v6566_v30 = vrot.slane %v6544_v10, %v8887_v39  ;;  %v6589_v62 = vrot.slane %v6574_v49, %v8925_v50 }
 0x316   : > { %v2321_v40 = vpop.permute.xlu1 %2320  ;;  %v2738_v41 = vpop.permute.xlu0 %2737  ;;  %v6178_v31 = vrot.slane %v6146_v54, %v8925_v50 }
 0x317   : > { %2337 = vst.msk [vmem:[%s8937_s25 + $0x73] sm:$0x1] %vm1036_vm4, %v2321_v40  ;;  %2761 = vst.msk [vmem:[%s8937_s25 + $0x4] sm:$0x1] %vm1036_vm4, %v2738_v41  ;;  %v6576_v11 = vcombine.high %v6566_v30, %v6566_v30  ;;  %v6585_v60 = vrot.slane %v6566_v30, %v8925_v50  ;;  %v6559_v40 = vrot.slane %v6543_v55, %v8887_v39 }
 0x318   : > { %5331 = vrot.lane.b32.xlu1 %v5316_v56, %s8410_s21  ;;  %v6581_v56 = vrot.slane %v6552_v36, %v8925_v50 }
 0x319   : > { %5748 = vrot.lane.b32.xlu0 %v5719_v59, %s8410_s21  ;;  %v6545_v59 = vcombine.high %v6543_v55, %v6543_v55  ;;  %v6593_v43 = vrot.slane %v6576_v11, %v8925_v50  ;;  %v6597_v47 = vrot.slane %v6559_v40, %v8925_v50 }
 0x31a   : > { %v2740_v24 = vpop.permute.xlu1 %2739  ;;  %v2742_v3 = vpop.permute.xlu0 %2741 }
 0x31b   : > { %2762 = vst.msk [vmem:[%s8937_s25 + $0x14] sm:$0x1] %vm1036_vm4, %v2740_v24  ;;  %2763 = vst.msk [vmem:[%s8937_s25 + $0x24] sm:$0x1] %vm1036_vm4, %v2742_v3  ;;  %v6573_v41 = vrot.slane %v6545_v59, %v8887_v39  ;;  %v6575_v24 = vcombine.high %v6559_v40, %v6559_v40  ;;  %v6960_v3 = vcombine.high %v9792_v44, %v9792_v44 }
 0x31c   : > { %5750 = vrot.lane.b32.xlu1 %v5723_v61, %s8410_s21 }
 0x31d   : > { %5752 = vrot.lane.b32.xlu0 %v5727_v63, %s8410_s21  ;;  %v6967_v63 = vrot.slane %v9792_v44, %v8887_v39  ;;  %v6601_v5 = vrot.slane %v6573_v41, %v8925_v50  ;;  %v6605_v13 = vrot.slane %v6575_v24, %v8925_v50  ;;  %v6974_v44 = vrot.slane %v6960_v3, %v8887_v39 }
 0x31e   : > { %v2744_v6 = vpop.permute.xlu1 %2743  ;;  %v2746_v17 = vpop.permute.xlu0 %2745 }
 0x31f   : > { %2764 = vst.msk [vmem:[%s8937_s25 + $0x34] sm:$0x1] %vm1036_vm4, %v2744_v6  ;;  %2765 = vst.msk [vmem:[%s8937_s25 + $0x44] sm:$0x1] %vm1036_vm4, %v2746_v17  ;;  %v6577_v6 = vcombine.high %v6573_v41, %v6573_v41  ;;  %v6976_v27 = vcombine.high %v6974_v44, %v6974_v44  ;;  %v6990_v29 = vrot.slane %v6974_v44, %v8887_v39 }
 0x320   : > { %5754 = vrot.lane.b32.xlu1 %v5731_v38, %s8410_s21 }
 0x321   : > { %5756 = vrot.lane.b32.xlu0 %v5735_v4, %s8410_s21  ;;  %v6975_v4 = vcombine.high %v6967_v63, %v6967_v63  ;;  %v6609_v8 = vrot.slane %v6577_v6, %v8925_v50  ;;  %v7004_v14 = vrot.slane %v6976_v27, %v8887_v39  ;;  %v7006_v22 = vcombine.high %v6990_v29, %v6990_v29 }
 0x322   : > { %v2748_v15 = vpop.permute.xlu1 %2747  ;;  %v2750_v19 = vpop.permute.xlu0 %2749 }
 0x323   : > { %2766 = vst.msk [vmem:[%s8937_s25 + $0x54] sm:$0x1] %vm1036_vm4, %v2748_v15  ;;  %2767 = vst.msk [vmem:[%s8937_s25 + $0x64] sm:$0x1] %vm1036_vm4, %v2750_v19  ;;  %v6997_v17 = vrot.slane %v6975_v4, %v8887_v39  ;;  %v7032_v58 = vrot.slane %v7004_v14, %v8925_v50  ;;  %v7008_v10 = vcombine.high %v7004_v14, %v7004_v14 }
 0x324   : > { %5758 = vrot.lane.b32.xlu1 %v5739_v7, %s8410_s21  ;;  %v6983_v7 = vrot.slane %v6967_v63, %v8887_v39  ;;  %v7036_v54 = vrot.slane %v7006_v22, %v8925_v50 }
 0x325   : > { %5760 = vrot.lane.b32.xlu0 %v5743_v18, %s8410_s21  ;;  %v7016_v23 = vrot.slane %v6997_v17, %v8925_v50 }
 0x326   : > { %v2752_v12 = vpop.permute.xlu1 %2751  ;;  %v7005_v57 = vcombine.high %v6983_v7, %v6983_v7  ;;  %v7012_v15 = vrot.slane %v6983_v7, %v8925_v50 }
 0x327   : > { %2768 = vst.msk [vmem:[%s8937_s25 + $0x74] sm:$0x1] %vm1036_vm4, %v2752_v12  ;;  %v3169_v52 = vpop.permute.xlu0 %3168 }
 0x328   : > { %5762 = vrot.lane.b32.xlu1 %v5747_v46, %s8410_s21  ;;  %3192 = vst.msk [vmem:[%s8937_s25 + $0x5] sm:$0x1] %vm1036_vm4, %v3169_v52  ;;  %v7398_v52 = vrot.slane %v9830_v37, %v8887_v39  ;;  %v7405_v37 = vrot.slane %v7391_v26, %v8887_v39 }
 0x329   : > { %6179 = vrot.lane.b32.xlu0 %v6150_v16, %s8410_s21  ;;  %v7007_v16 = vcombine.high %v6997_v17, %v6997_v17 }
 0x32a   : > { %v3171_v35 = vpop.permute.xlu1 %3170  ;;  %v7421_v59 = vrot.slane %v7405_v37, %v8887_v39 }
 0x32b   : > { %3193 = vst.msk [vmem:[%s8937_s25 + $0x15] sm:$0x1] %vm1036_vm4, %v3171_v35  ;;  %v3173_v21 = vpop.permute.xlu0 %3172  ;;  %v7024_v2 = vrot.slane %v7007_v16, %v8925_v50 }
 0x32c   : > { %6181 = vrot.lane.b32.xlu1 %v6154_v28, %s8410_s21  ;;  %3194 = vst.msk [vmem:[%s8937_s25 + $0x25] sm:$0x1] %vm1036_vm4, %v3173_v21  ;;  %v7020_v28 = vrot.slane %v7005_v57, %v8925_v50  ;;  %v7406_v21 = vcombine.high %v7398_v52, %v7398_v52  ;;  %v7459_v63 = vrot.slane %v7421_v59, %v8925_v50 }
 0x32d   : > { %6183 = vrot.lane.b32.xlu0 %v6158_v32, %s8410_s21 }
 0x32e   : > { %v3175_v53 = vpop.permute.xlu1 %3174  ;;  %v7428_v36 = vrot.slane %v7406_v21, %v8887_v39 }
 0x32f   : > { %3195 = vst.msk [vmem:[%s8937_s25 + $0x35] sm:$0x1] %vm1036_vm4, %v3175_v53  ;;  %v3177_v45 = vpop.permute.xlu0 %3176  ;;  %v7414_v53 = vrot.slane %v7398_v52, %v8887_v39 }
 0x330   : > { %6185 = vrot.lane.b32.xlu1 %v6162_v42, %s8410_s21  ;;  %3196 = vst.msk [vmem:[%s8937_s25 + $0x45] sm:$0x1] %vm1036_vm4, %v3177_v45  ;;  %v7028_v42 = vrot.slane %v6990_v29, %v8925_v50  ;;  %v7438_v49 = vcombine.high %v7428_v36, %v7428_v36 }
 0x331   : > { %6187 = vrot.lane.b32.xlu0 %v6166_v48, %s8410_s21  ;;  %v7436_v55 = vcombine.high %v7414_v53, %v7414_v53  ;;  %v7443_v30 = vrot.slane %v7414_v53, %v8925_v50 }
 0x332   : > { %v3179_v1 = vpop.permute.xlu1 %3178 }
 0x333   : > { %3197 = vst.msk [vmem:[%s8937_s25 + $0x55] sm:$0x1] %vm1036_vm4, %v3179_v1  ;;  %v3181_v33 = vpop.permute.xlu0 %3180 }
 0x334   : > { %6189 = vrot.lane.b32.xlu1 %v6170_v25, %s8410_s21  ;;  %3198 = vst.msk [vmem:[%s8937_s25 + $0x65] sm:$0x1] %vm1036_vm4, %v3181_v33  ;;  %v7447_v33 = vrot.slane %v7428_v36, %v8925_v50 }
 0x335   : > { %6191 = vrot.lane.b32.xlu0 %v6174_v20, %s8410_s21  ;;  %v7040_v20 = vrot.slane %v7008_v10, %v8925_v50 }
 0x337   : > { %v3183_v51 = vpop.permute.xlu1 %3182  ;;  %v3600_v61 = vpop.permute.xlu0 %3599 }
 0x338   : > { %6193 = vrot.lane.b32.xlu1 %v6178_v31, %s8410_s21  ;;  %3199 = vst.msk [vmem:[%s8937_s25 + $0x75] sm:$0x1] %vm1036_vm4, %v3183_v51  ;;  %3623 = vst.msk [vmem:[%s8937_s25 + $0x6] sm:$0x1] %vm1036_vm4, %v3600_v61  ;;  %v7407_v31 = vcombine.high %v7405_v37, %v7405_v37  ;;  %v7451_v51 = vrot.slane %v7436_v55, %v8925_v50  ;;  %v7455_v61 = vrot.slane %v7438_v49, %v8925_v50 }
 0x339   : > { %6610 = vrot.lane.b32.xlu0 %v6581_v56, %s8410_s21 }
 0x33b   : > { %v3602_v0 = vpop.permute.xlu1 %3601  ;;  %v3604_v38 = vpop.permute.xlu0 %3603 }
 0x33c   : > { %6612 = vrot.lane.b32.xlu1 %v6585_v60, %s8410_s21  ;;  %3624 = vst.msk [vmem:[%s8937_s25 + $0x16] sm:$0x1] %vm1036_vm4, %v3602_v0  ;;  %3625 = vst.msk [vmem:[%s8937_s25 + $0x26] sm:$0x1] %vm1036_vm4, %v3604_v38  ;;  %v7435_v60 = vrot.slane %v7407_v31, %v8887_v39 }
 0x33d   : > { %6614 = vrot.lane.b32.xlu0 %v6589_v62, %s8410_s21  ;;  %v7437_v62 = vcombine.high %v7421_v59, %v7421_v59 }
 0x33e   : > { %v7463_v39 = vrot.slane %v7435_v60, %v8925_v50 }
 0x33f   : > { %v7467_v38 = vrot.slane %v7437_v62, %v8925_v50 }
 0x340   : > { %6616 = vrot.lane.b32.xlu1 %v6593_v43, %s8410_s21  ;;  %v3606_v34 = vpop.permute.xlu1 %3605  ;;  %v3608_v9 = vpop.permute.xlu0 %3607  ;;  %v7439_v43 = vcombine.high %v7435_v60, %v7435_v60 }
 0x341   : > { %6618 = vrot.lane.b32.xlu0 %v6597_v47, %s8410_s21  ;;  %3626 = vst.msk [vmem:[%s8937_s25 + $0x36] sm:$0x1] %vm1036_vm4, %v3606_v34  ;;  %3627 = vst.msk [vmem:[%s8937_s25 + $0x46] sm:$0x1] %vm1036_vm4, %v3608_v9 }
 0x342   : > { %v7471_v3 = vrot.slane %v7439_v43, %v8925_v50 }
 0x344   : > { %6620 = vrot.lane.b32.xlu1 %v6601_v5, %s8410_s21  ;;  %v3610_v18 = vpop.permute.xlu1 %3609  ;;  %v3612_v46 = vpop.permute.xlu0 %3611 }
 0x345   : > { %6622 = vrot.lane.b32.xlu0 %v6605_v13, %s8410_s21  ;;  %3628 = vst.msk [vmem:[%s8937_s25 + $0x56] sm:$0x1] %vm1036_vm4, %v3610_v18  ;;  %3629 = vst.msk [vmem:[%s8937_s25 + $0x66] sm:$0x1] %vm1036_vm4, %v3612_v46 }
 0x348   : > { %6624 = vrot.lane.b32.xlu1 %v6609_v8, %s8410_s21 }
 0x349   : > { %v3614_v19 = vpop.permute.xlu1 %3613  ;;  %7041 = vrot.lane.b32.xlu0 %v7012_v15, %s8410_s21  ;;  %v4031_v12 = vpop.permute.xlu0 %4030 }
 0x34a   : > { %3630 = vst.msk [vmem:[%s8937_s25 + $0x76] sm:$0x1] %vm1036_vm4, %v3614_v19  ;;  %4054 = vst.msk [vmem:[%s8937_s25 + $0x7] sm:$0x1] %vm1036_vm4, %v4031_v12 }
 0x34c   : > { %7043 = vrot.lane.b32.xlu1 %v7016_v23, %s8410_s21 }
 0x34d   : > { %v4033_v32 = vpop.permute.xlu1 %4032  ;;  %7045 = vrot.lane.b32.xlu0 %v7020_v28, %s8410_s21  ;;  %v4035_v35 = vpop.permute.xlu0 %4034 }
 0x34e   : > { %4055 = vst.msk [vmem:[%s8937_s25 + $0x17] sm:$0x1] %vm1036_vm4, %v4033_v32  ;;  %4056 = vst.msk [vmem:[%s8937_s25 + $0x27] sm:$0x1] %vm1036_vm4, %v4035_v35 }
 0x350   : > { %7047 = vrot.lane.b32.xlu1 %v7024_v2, %s8410_s21 }
 0x351   : > { %7049 = vrot.lane.b32.xlu0 %v7028_v42, %s8410_s21 }
 0x352   : > { %v4037_v48 = vpop.permute.xlu1 %4036  ;;  %v4039_v25 = vpop.permute.xlu0 %4038 }
 0x353   : > { %4057 = vst.msk [vmem:[%s8937_s25 + $0x37] sm:$0x1] %vm1036_vm4, %v4037_v48  ;;  %4058 = vst.msk [vmem:[%s8937_s25 + $0x47] sm:$0x1] %vm1036_vm4, %v4039_v25 }
 0x354   : > { %7051 = vrot.lane.b32.xlu1 %v7032_v58, %s8410_s21 }
 0x355   : > { %7053 = vrot.lane.b32.xlu0 %v7036_v54, %s8410_s21 }
 0x356   : > { %v4041_v45 = vpop.permute.xlu1 %4040  ;;  %v4043_v1 = vpop.permute.xlu0 %4042 }
 0x357   : > { %4059 = vst.msk [vmem:[%s8937_s25 + $0x57] sm:$0x1] %vm1036_vm4, %v4041_v45  ;;  %4060 = vst.msk [vmem:[%s8937_s25 + $0x67] sm:$0x1] %vm1036_vm4, %v4043_v1 }
 0x358   : > { %7055 = vrot.lane.b32.xlu1 %v7040_v20, %s8410_s21 }
 0x359   : > { %7472 = vrot.lane.b32.xlu0 %v7443_v30, %s8410_s21 }
 0x35a   : > { %v4045_v56 = vpop.permute.xlu1 %4044 }
 0x35b   : > { %4061 = vst.msk [vmem:[%s8937_s25 + $0x77] sm:$0x1] %vm1036_vm4, %v4045_v56  ;;  %v4456_v11 = vpop.permute.xlu0 %4455 }
 0x35c   : > { %7474 = vrot.lane.b32.xlu1 %v7447_v33, %s8410_s21  ;;  %4479 = vst.msk [vmem:[%s8937_s25 + $0x8] sm:$0x1] %vm1036_vm4, %v4456_v11 }
 0x35d   : > { %7476 = vrot.lane.b32.xlu0 %v7451_v51, %s8410_s21 }
 0x35e   : > { %v4458_v40 = vpop.permute.xlu1 %4457 }
 0x35f   : > { %4480 = vst.msk [vmem:[%s8937_s25 + $0x18] sm:$0x1] %vm1036_vm4, %v4458_v40  ;;  %v4460_v41 = vpop.permute.xlu0 %4459 }
 0x360   : > { %7478 = vrot.lane.b32.xlu1 %v7455_v61, %s8410_s21  ;;  %4481 = vst.msk [vmem:[%s8937_s25 + $0x28] sm:$0x1] %vm1036_vm4, %v4460_v41 }
 0x361   : > { %7480 = vrot.lane.b32.xlu0 %v7459_v63, %s8410_s21 }
 0x362   : > { %v4462_v0 = vpop.permute.xlu1 %4461 }
 0x363   : > { %4482 = vst.msk [vmem:[%s8937_s25 + $0x38] sm:$0x1] %vm1036_vm4, %v4462_v0  ;;  %v4464_v24 = vpop.permute.xlu0 %4463 }
 0x364   : > { %7482 = vrot.lane.b32.xlu1 %v7463_v39, %s8410_s21  ;;  %4483 = vst.msk [vmem:[%s8937_s25 + $0x48] sm:$0x1] %vm1036_vm4, %v4464_v24 }
 0x365   : > { %7484 = vrot.lane.b32.xlu0 %v7467_v38, %s8410_s21 }
 0x366   : > { %v4466_v47 = vpop.permute.xlu1 %4465 }
 0x367   : > { %4484 = vst.msk [vmem:[%s8937_s25 + $0x58] sm:$0x1] %vm1036_vm4, %v4466_v47  ;;  %v4468_v4 = vpop.permute.xlu0 %4467 }
 0x368   : > { %7486 = vrot.lane.b32.xlu1 %v7471_v3, %s8410_s21  ;;  %4485 = vst.msk [vmem:[%s8937_s25 + $0x68] sm:$0x1] %vm1036_vm4, %v4468_v4  ;;  %s7721_s21 = sshll.u32 %s8393_s30, 11  ;;  %s10314_s30 = scalar_lea.sflag [#allocation3], %s321_s23 }
 0x369   : > { %s10304_s19 = scalar_lea.hbm %s10367_s8, %s7721_s21 }
 0x36a   : > { %v4470_v34 = vpop.permute.xlu1 %4469 }
 0x36b   : > { %4486 = vst.msk [vmem:[%s8937_s25 + $0x78] sm:$0x1] %vm1036_vm4, %v4470_v34  ;;  %v4887_v5 = vpop.permute.xlu0 %4886 }
 0x36c   : > { %4910 = vst.msk [vmem:[%s8937_s25 + $0x9] sm:$0x1] %vm1036_vm4, %v4887_v5 }
 0x36e   : > { %v4889_v6 = vpop.permute.xlu1 %4888 }
 0x36f   : > { %4911 = vst.msk [vmem:[%s8937_s25 + $0x19] sm:$0x1] %vm1036_vm4, %v4889_v6  ;;  %v4891_v50 = vpop.permute.xlu0 %4890 }
 0x370   : > { %4912 = vst.msk [vmem:[%s8937_s25 + $0x29] sm:$0x1] %vm1036_vm4, %v4891_v50 }
 0x372   : > { %v4893_v7 = vpop.permute.xlu1 %4892 }
 0x373   : > { %4913 = vst.msk [vmem:[%s8937_s25 + $0x39] sm:$0x1] %vm1036_vm4, %v4893_v7  ;;  %v4895_v9 = vpop.permute.xlu0 %4894 }
 0x374   : > { %4914 = vst.msk [vmem:[%s8937_s25 + $0x49] sm:$0x1] %vm1036_vm4, %v4895_v9 }
 0x376   : > { %v4897_v13 = vpop.permute.xlu1 %4896 }
 0x377   : > { %4915 = vst.msk [vmem:[%s8937_s25 + $0x59] sm:$0x1] %vm1036_vm4, %v4897_v13  ;;  %v4899_v44 = vpop.permute.xlu0 %4898 }
 0x378   : > { %4916 = vst.msk [vmem:[%s8937_s25 + $0x69] sm:$0x1] %vm1036_vm4, %v4899_v44 }
 0x37a   : > { %v4901_v17 = vpop.permute.xlu1 %4900 }
 0x37b   : > { %4917 = vst.msk [vmem:[%s8937_s25 + $0x79] sm:$0x1] %vm1036_vm4, %v4901_v17  ;;  %v5318_v18 = vpop.permute.xlu0 %5317 }
 0x37c   : > { %5341 = vst.msk [vmem:[%s8937_s25 + $0xa] sm:$0x1] %vm1036_vm4, %v5318_v18 }
 0x37e   : > { %v5320_v8 = vpop.permute.xlu1 %5319 }
 0x37f   : > { %5342 = vst.msk [vmem:[%s8937_s25 + $0x1a] sm:$0x1] %vm1036_vm4, %v5320_v8  ;;  %v5322_v57 = vpop.permute.xlu0 %5321 }
 0x380   : > { %5343 = vst.msk [vmem:[%s8937_s25 + $0x2a] sm:$0x1] %vm1036_vm4, %v5322_v57 }
 0x382   : > { %v5324_v15 = vpop.permute.xlu1 %5323 }
 0x383   : > { %5344 = vst.msk [vmem:[%s8937_s25 + $0x3a] sm:$0x1] %vm1036_vm4, %v5324_v15  ;;  %v5326_v46 = vpop.permute.xlu0 %5325 }
 0x384   : > { %5345 = vst.msk [vmem:[%s8937_s25 + $0x4a] sm:$0x1] %vm1036_vm4, %v5326_v46 }
 0x386   : > { %v5328_v27 = vpop.permute.xlu1 %5327 }
 0x387   : > { %5346 = vst.msk [vmem:[%s8937_s25 + $0x5a] sm:$0x1] %vm1036_vm4, %v5328_v27  ;;  %v5330_v16 = vpop.permute.xlu0 %5329 }
 0x388   : > { %5347 = vst.msk [vmem:[%s8937_s25 + $0x6a] sm:$0x1] %vm1036_vm4, %v5330_v16 }
 0x38a   : > { %v5332_v19 = vpop.permute.xlu1 %5331 }
 0x38b   : > { %5348 = vst.msk [vmem:[%s8937_s25 + $0x7a] sm:$0x1] %vm1036_vm4, %v5332_v19  ;;  %v5749_v23 = vpop.permute.xlu0 %5748 }
 0x38c   : > { %5772 = vst.msk [vmem:[%s8937_s25 + $0xb] sm:$0x1] %vm1036_vm4, %v5749_v23 }
 0x38e   : > { %v5751_v29 = vpop.permute.xlu1 %5750 }
 0x38f   : > { %5773 = vst.msk [vmem:[%s8937_s25 + $0x1b] sm:$0x1] %vm1036_vm4, %v5751_v29  ;;  %v5753_v12 = vpop.permute.xlu0 %5752 }
 0x390   : > { %5774 = vst.msk [vmem:[%s8937_s25 + $0x2b] sm:$0x1] %vm1036_vm4, %v5753_v12 }
 0x392   : > { %v5755_v28 = vpop.permute.xlu1 %5754 }
 0x393   : > { %5775 = vst.msk [vmem:[%s8937_s25 + $0x3b] sm:$0x1] %vm1036_vm4, %v5755_v28  ;;  %v5757_v14 = vpop.permute.xlu0 %5756 }
 0x394   : > { %5776 = vst.msk [vmem:[%s8937_s25 + $0x4b] sm:$0x1] %vm1036_vm4, %v5757_v14 }
 0x396   : > { %v5759_v52 = vpop.permute.xlu1 %5758 }
 0x397   : > { %5777 = vst.msk [vmem:[%s8937_s25 + $0x5b] sm:$0x1] %vm1036_vm4, %v5759_v52  ;;  %v5761_v32 = vpop.permute.xlu0 %5760 }
 0x398   : > { %5778 = vst.msk [vmem:[%s8937_s25 + $0x6b] sm:$0x1] %vm1036_vm4, %v5761_v32 }
 0x39a   : > { %v5763_v2 = vpop.permute.xlu1 %5762 }
 0x39b   : > { %5779 = vst.msk [vmem:[%s8937_s25 + $0x7b] sm:$0x1] %vm1036_vm4, %v5763_v2  ;;  %v6180_v22 = vpop.permute.xlu0 %6179 }
 0x39c   : > { %6203 = vst.msk [vmem:[%s8937_s25 + $0xc] sm:$0x1] %vm1036_vm4, %v6180_v22 }
 0x39e   : > { %v6182_v35 = vpop.permute.xlu1 %6181 }
 0x39f   : > { %6204 = vst.msk [vmem:[%s8937_s25 + $0x1c] sm:$0x1] %vm1036_vm4, %v6182_v35  ;;  %v6184_v42 = vpop.permute.xlu0 %6183 }
 0x3a0   : > { %6205 = vst.msk [vmem:[%s8937_s25 + $0x2c] sm:$0x1] %vm1036_vm4, %v6184_v42 }
 0x3a2   : > { %v6186_v26 = vpop.permute.xlu1 %6185 }
 0x3a3   : > { %6206 = vst.msk [vmem:[%s8937_s25 + $0x3c] sm:$0x1] %vm1036_vm4, %v6186_v26  ;;  %v6188_v21 = vpop.permute.xlu0 %6187 }
 0x3a4   : > { %6207 = vst.msk [vmem:[%s8937_s25 + $0x4c] sm:$0x1] %vm1036_vm4, %v6188_v21 }
 0x3a6   : > { %v6190_v48 = vpop.permute.xlu1 %6189 }
 0x3a7   : > { %6208 = vst.msk [vmem:[%s8937_s25 + $0x5c] sm:$0x1] %vm1036_vm4, %v6190_v48  ;;  %v6192_v58 = vpop.permute.xlu0 %6191 }
 0x3a8   : > { %6209 = vst.msk [vmem:[%s8937_s25 + $0x6c] sm:$0x1] %vm1036_vm4, %v6192_v58 }
 0x3aa   : > { %v6194_v10 = vpop.permute.xlu1 %6193 }
 0x3ab   : > { %6210 = vst.msk [vmem:[%s8937_s25 + $0x7c] sm:$0x1] %vm1036_vm4, %v6194_v10  ;;  %v6611_v53 = vpop.permute.xlu0 %6610 }
 0x3ac   : > { %6634 = vst.msk [vmem:[%s8937_s25 + $0xd] sm:$0x1] %vm1036_vm4, %v6611_v53 }
 0x3ae   : > { %v6613_v25 = vpop.permute.xlu1 %6612 }
 0x3af   : > { %6635 = vst.msk [vmem:[%s8937_s25 + $0x1d] sm:$0x1] %vm1036_vm4, %v6613_v25  ;;  %v6615_v54 = vpop.permute.xlu0 %6614 }
 0x3b0   : > { %6636 = vst.msk [vmem:[%s8937_s25 + $0x2d] sm:$0x1] %vm1036_vm4, %v6615_v54 }
 0x3b2   : > { %v6617_v37 = vpop.permute.xlu1 %6616 }
 0x3b3   : > { %6637 = vst.msk [vmem:[%s8937_s25 + $0x3d] sm:$0x1] %vm1036_vm4, %v6617_v37  ;;  %v6619_v36 = vpop.permute.xlu0 %6618 }
 0x3b4   : > { %6638 = vst.msk [vmem:[%s8937_s25 + $0x4d] sm:$0x1] %vm1036_vm4, %v6619_v36 }
 0x3b6   : > { %v6621_v45 = vpop.permute.xlu1 %6620 }
 0x3b7   : > { %6639 = vst.msk [vmem:[%s8937_s25 + $0x5d] sm:$0x1] %vm1036_vm4, %v6621_v45  ;;  %v6623_v20 = vpop.permute.xlu0 %6622 }
 0x3b8   : > { %6640 = vst.msk [vmem:[%s8937_s25 + $0x6d] sm:$0x1] %vm1036_vm4, %v6623_v20 }
 0x3ba   : > { %v6625_v55 = vpop.permute.xlu1 %6624 }
 0x3bb   : > { %6641 = vst.msk [vmem:[%s8937_s25 + $0x7d] sm:$0x1] %vm1036_vm4, %v6625_v55  ;;  %v7042_v30 = vpop.permute.xlu0 %7041 }
 0x3bc   : > { %7065 = vst.msk [vmem:[%s8937_s25 + $0xe] sm:$0x1] %vm1036_vm4, %v7042_v30 }
 0x3be   : > { %v7044_v1 = vpop.permute.xlu1 %7043 }
 0x3bf   : > { %7066 = vst.msk [vmem:[%s8937_s25 + $0x1e] sm:$0x1] %vm1036_vm4, %v7044_v1  ;;  %v7046_v31 = vpop.permute.xlu0 %7045 }
 0x3c0   : > { %7067 = vst.msk [vmem:[%s8937_s25 + $0x2e] sm:$0x1] %vm1036_vm4, %v7046_v31 }
 0x3c2   : > { %v7048_v49 = vpop.permute.xlu1 %7047 }
 0x3c3   : > { %7068 = vst.msk [vmem:[%s8937_s25 + $0x3e] sm:$0x1] %vm1036_vm4, %v7048_v49  ;;  %v7050_v56 = vpop.permute.xlu0 %7049 }
 0x3c4   : > { %7069 = vst.msk [vmem:[%s8937_s25 + $0x4e] sm:$0x1] %vm1036_vm4, %v7050_v56 }
 0x3c6   : > { %v7052_v33 = vpop.permute.xlu1 %7051 }
 0x3c7   : > { %7070 = vst.msk [vmem:[%s8937_s25 + $0x5e] sm:$0x1] %vm1036_vm4, %v7052_v33  ;;  %v7054_v59 = vpop.permute.xlu0 %7053 }
 0x3c8   : > { %7071 = vst.msk [vmem:[%s8937_s25 + $0x6e] sm:$0x1] %vm1036_vm4, %v7054_v59 }
 0x3ca   : > { %v7056_v11 = vpop.permute.xlu1 %7055 }
 0x3cb   : > { %7072 = vst.msk [vmem:[%s8937_s25 + $0x7e] sm:$0x1] %vm1036_vm4, %v7056_v11  ;;  %v7473_v51 = vpop.permute.xlu0 %7472 }
 0x3cc   : > { %7496 = vst.msk [vmem:[%s8937_s25 + $0xf] sm:$0x1] %vm1036_vm4, %v7473_v51 }
 0x3ce   : > { %v7475_v60 = vpop.permute.xlu1 %7474 }
 0x3cf   : > { %7497 = vst.msk [vmem:[%s8937_s25 + $0x1f] sm:$0x1] %vm1036_vm4, %v7475_v60  ;;  %v7477_v40 = vpop.permute.xlu0 %7476 }
 0x3d0   : > { %7498 = vst.msk [vmem:[%s8937_s25 + $0x2f] sm:$0x1] %vm1036_vm4, %v7477_v40 }
 0x3d2   : > { %v7479_v61 = vpop.permute.xlu1 %7478 }
 0x3d3   : > { %7499 = vst.msk [vmem:[%s8937_s25 + $0x3f] sm:$0x1] %vm1036_vm4, %v7479_v61  ;;  %v7481_v62 = vpop.permute.xlu0 %7480 }
 0x3d4   : > { %7500 = vst.msk [vmem:[%s8937_s25 + $0x4f] sm:$0x1] %vm1036_vm4, %v7481_v62 }
 0x3d6   : > { %v7483_v41 = vpop.permute.xlu1 %7482 }
 0x3d7   : > { %7501 = vst.msk [vmem:[%s8937_s25 + $0x5f] sm:$0x1] %vm1036_vm4, %v7483_v41  ;;  %v7485_v63 = vpop.permute.xlu0 %7484 }
 0x3d8   : > { %7502 = vst.msk [vmem:[%s8937_s25 + $0x6f] sm:$0x1] %vm1036_vm4, %v7485_v63 }
 0x3da   : > { %v7487_v0 = vpop.permute.xlu1 %7486 }
 0x3db   : > { %7503 = vst.msk [vmem:[%s8937_s25 + $0x7f] sm:$0x1] %vm1036_vm4, %v7487_v0 }
 0x3dc   : > { %8338 = shalt.err (!%p8335_p5)
}
 0x3dd   : > { %s8339_s23 = scalar_lea.hbm %s10304_s19, 2048  ;;  %s8343_s21 = scalar_lea.hbm %s10367_s8, 4096 }
 0x3de   : > { %p8340_p6 = scmp.ne.s32.totalorder %s10304_s19, %s8339_s23  ;;  %p8344_p10 = scmp.lt.s32.totalorder %s10304_s19, %s10367_s8 }
 0x3df   : > { %p8345_p11 = scmp.lt.s32.totalorder %s8343_s21, %s8339_s23 }
 0x3e0   : > { %p8341_p7 = pnand %p8340_p6, %p8501_p4 }
 0x3e1   : > { %p8346_p12 = por %p8345_p11, %p8344_p10 }
 0x3e2   : > { %p8342_p9 = pneg %p8341_p7 }
 0x3e4   : > { %p8347_p13 = pnand %p8346_p12, %p8342_p9 }
 0x3e6   : > { %8350 = shalt.err (!%p8347_p13)
}
 0x3e7   : > { %s8414_s22 = smov 128   ;;  %s8415_s24 = smov 8  }
 0x3e8   : > { %8250 = dma.vmem_to_hbm [thread:$0]  (%p8501_p4), %s10306_s14, 2048, %s10304_s19, %s10314_s30, %s8414_s22, %s8414_s22, %s8415_s24  }
 0x3e9 PF: > { %p8256_p0 = scmp.ge.s32.totalorder %s8401_s10, 2  ;;  %s7535_s26 = sand.u32 1, %s8381_s27  }
 0x3ea   : > { %s7536_s11 = scalar_lea.sflag [#allocation3], %s7535_s26 }
 0x3eb   : > { %p8253_p1 = pnand %p8256_p0, %p8508_p8 }
 0x3ed   : > { %p8254_p2 = pneg %p8253_p1 }
 0x3ef   : > { %8376 = dma.done.wait (%p8254_p2), %s7536_s11, 2048  }
 0x3f0   : > { %8378 = vsyncadd (%p8254_p2), %s7536_s11, 4294965248  ;;  %s21_s10 = sadd.s32 1, %s8401_s10   ;;  %s10370_s27 = smov %s8385_s28 }
 0x3f1   : > { %p18_p3 = scmp.ge.s32.totalorder %s21_s10, 4   ;;  %s10371_s28 = smov %s8389_s29 }
 0x3f2   : > { %s10372_s29 = smov %s8514_s18  ;;  %s10373_s30 = smov %s8397_s9 }
 0x3f3   : > { %s10374_s9 = smov %s10376_s13  ;;  %20 = sbr.rel (!%p18_p3) target bundleno = 4 (0x4), region = 87 }
 0x3f8   :  { %7541 = vsyncpa [#allocation3], 1 }
 0x3f9   :  { %7543 = vsyncpa [#allocation3 + $0x1], 1 }

</bundles_post_ra>
